<compile_context>
chip_gen: v7x
topology: tpu7x:2x2x1
jax: 0.10.0
libtpu: 0.0.40
codegen_flags: <defaults>
</compile_context>

<pallas_src>
import functools

import jax
import jax.numpy as jnp
from jax import lax
from jax.experimental import pallas as pl
from jax.experimental.pallas import tpu as pltpu

LAMBDA_PS = 0.4
LAMBDA_PE = 1.0
NUM_CLASSES = 9          # the reference module loops over 9 classes
# TEMPERATURE / BASE_TEMPERATURE / contrast_mode of the module are unused in
# this forward path, as are graph_cn / labels / mask.

# Keep the fused (weights-resident) head only if its VMEM footprint is below
# this fraction of physical VMEM; otherwise use the K-tiled two-stage path.
_FUSED_VMEM_FRACTION = 0.35   # sends dim_in=2048 down the K-tiled path on v7x


def _round_up(x, m):
    return ((x + m - 1) // m) * m


def _vmem_capacity_bytes():
    try:
        return int(pltpu.get_tpu_info().vmem_capacity_bytes)
    except Exception:
        return 64 * 1024 * 1024   # conservative (v7x per-TensorCore VMEM)


def _vmem_limit(est_bytes):
    cap = _vmem_capacity_bytes()
    return int(min(0.9 * cap, max(int(1.25 * est_bytes), 32 * 1024 * 1024)))


# ----------------------- fused head MLP kernel (weights resident) -----------

def fused_head_kernel(x_ref, w1_ref, b1_ref, w2_ref, b2_ref, o_ref):
    # x / w1 / w2 are bf16 MXU inputs; accumulation stays f32.
    h = jnp.dot(x_ref[...], w1_ref[...], preferred_element_type=jnp.float32)
    h = jnp.maximum(h + b1_ref[...], 0.0)                       # Linear + ReLU
    o_ref[...] = (jnp.dot(h.astype(jnp.bfloat16), w2_ref[...],
                          preferred_element_type=jnp.float32)
                  + b2_ref[...])                                # second Linear


def _mlp_head_fused(x, w1, b1, w2, b2, *, tile_n):
    N, D_in = x.shape
    D_h = w1.shape[1]
    D_out = w2.shape[1]

    # cdiv-based row tiling + padding (no silently dropped tail rows).
    n_tiles = pl.cdiv(N, tile_n)
    tile_n = _round_up(pl.cdiv(N, n_tiles), 8)
    n_pad = tile_n * n_tiles

    x_bf = x.astype(jnp.bfloat16)
    if n_pad != N:
        x_bf = jnp.pad(x_bf, ((0, n_pad - N), (0, 0)))

    # Weights / biases: whole-array resident in VMEM (single buffer, one DMA).
    resident = pl.BlockSpec(memory_space=pltpu.MemorySpace.VMEM)

    est = ((D_in * D_h + D_h * D_out) * 2      # bf16 weights, single-buffered
           + (D_h + D_out) * 4                 # biases
           + 2 * tile_n * D_in * 2             # x tiles (double-buffered)
           + 2 * tile_n * D_out * 4            # out tiles (double-buffered)
           + tile_n * D_h * 6                  # hidden temporaries
           + (2 << 20))

    out = pl.pallas_call(
        fused_head_kernel,
        out_shape=jax.ShapeDtypeStruct((n_pad, D_out), jnp.float32),
        grid=(n_tiles,),
        in_specs=[
            pl.BlockSpec((tile_n, D_in), lambda i: (i, 0)),
            resident, resident, resident, resident,
        ],
        out_specs=pl.BlockSpec((tile_n, D_out), lambda i: (i, 0)),
        compiler_params=pltpu.CompilerParams(
            dimension_semantics=("parallel",),
            vmem_limit_bytes=_vmem_limit(est)),
    )(x_bf, w1.astype(jnp.bfloat16), b1, w2.astype(jnp.bfloat16), b2)
    return out[:N] if n_pad != N else out


# -------------------- K-tiled linear kernel (large-dim fallback) ------------

def linear_kernel(x_ref, w_ref, b_ref, o_ref, acc_ref, *, apply_relu):
    k = pl.program_id(1)

    @pl.when(k == 0)
    def _():
        acc_ref[...] = jnp.zeros_like(acc_ref)

    acc_ref[...] += jnp.dot(x_ref[...], w_ref[...],
                            preferred_element_type=jnp.float32)

    @pl.when(k == pl.num_programs(1) - 1)
    def _():
        y = acc_ref[...] + b_ref[...]
        if apply_relu:
            y = jnp.maximum(y, 0.0)
        o_ref[...] = y.astype(o_ref.dtype)


def _linear_pallas(x, w, b, *, apply_relu, out_dtype, tile_n, tile_k):
    N, D_in = x.shape
    D_out = w.shape[1]

    n_tiles = pl.cdiv(N, tile_n)
    tile_n = _round_up(pl.cdiv(N, n_tiles), 8)
    n_pad = tile_n * n_tiles

    k_tiles = pl.cdiv(D_in, tile_k)
    tile_k = _round_up(pl.cdiv(D_in, k_tiles), 128)
    k_pad = tile_k * k_tiles

    x_bf = x.astype(jnp.bfloat16)
    w_bf = w.astype(jnp.bfloat16)
    if n_pad != N or k_pad != D_in:
        x_bf = jnp.pad(x_bf, ((0, n_pad - N), (0, k_pad - D_in)))
    if k_pad != D_in:
        w_bf = jnp.pad(w_bf, ((0, k_pad - D_in), (0, 0)))

    est = (2 * tile_n * tile_k * 2                      # x slabs
           + 2 * tile_k * D_out * 2                     # w slabs
           + 2 * tile_n * D_out * jnp.dtype(out_dtype).itemsize
           + tile_n * D_out * 4                         # f32 accumulator
           + D_out * 4                                  # bias
           + (2 << 20))

    out = pl.pallas_call(
        functools.partial(linear_kernel, apply_relu=apply_relu),
        out_shape=jax.ShapeDtypeStruct((n_pad, D_out), out_dtype),
        grid=(n_tiles, k_tiles),
        in_specs=[
            pl.BlockSpec((tile_n, tile_k), lambda i, k: (i, k)),
            pl.BlockSpec((tile_k, D_out), lambda i, k: (k, 0)),
            pl.BlockSpec(memory_space=pltpu.MemorySpace.VMEM),   # bias resident
        ],
        out_specs=pl.BlockSpec((tile_n, D_out), lambda i, k: (i, 0)),
        scratch_shapes=[pltpu.VMEM((tile_n, D_out), jnp.float32)],
        compiler_params=pltpu.CompilerParams(
            dimension_semantics=("parallel", "arbitrary"),
            vmem_limit_bytes=_vmem_limit(est)),
    )(x_bf, w_bf, b)
    return out[:N] if n_pad != N else out


def mlp_head_staged(x, w1, b1, w2, b2, *, tile_n=256, tile_k=512):
    """Two K-tiled linears (weight slabs only resident) — v7x / huge-dim path."""
    h = _linear_pallas(x, w1, b1, apply_relu=True, out_dtype=jnp.bfloat16,
                       tile_n=tile_n, tile_k=tile_k)
    return _linear_pallas(h, w2, b2, apply_relu=False, out_dtype=jnp.float32,
                          tile_n=tile_n, tile_k=tile_k)


def mlp_head(x, w1, b1, w2, b2, *, tile_n=256, tile_k=512):
    """Projection head.  tile_n=256 fills the 256-row MXU (v6e/v7x); use 128 on v5e."""
    D_in = x.shape[1]
    D_h, D_out = w1.shape[1], w2.shape[1]
    fused_bytes = ((D_in * D_h + D_h * D_out) * 2        # resident bf16 weights
                   + 2 * tile_n * max(D_in, D_out) * 6   # pipeline row tiles
                   + tile_n * D_h * 6)                   # hidden temporaries
    if fused_bytes <= _FUSED_VMEM_FRACTION * _vmem_capacity_bytes():
        return _mlp_head_fused(x, w1, b1, w2, b2, tile_n=tile_n)
    return mlp_head_staged(x, w1, b1, w2, b2, tile_n=tile_n, tile_k=tile_k)


# ------------------------------- loss kernel --------------------------------

def _argmax_lastdim(x):
    """First-occurrence argmax along last axis of a 2D array, keepdims -> (N,1)."""
    C = x.shape[-1]
    m = jnp.max(x, axis=-1, keepdims=True)
    idx = lax.broadcasted_iota(jnp.int32, x.shape, 1)
    cand = jnp.where(x == m, idx, C)
    return jnp.min(cand, axis=-1, keepdims=True)


def _log_softmax(x):
    x = x - jnp.max(x, axis=-1, keepdims=True)
    return x - jnp.log(jnp.sum(jnp.exp(x), axis=-1, keepdims=True))


def loss_kernel(t_feat_ref, t_logi_ref, s_feat_ref, s_logi_ref,
                loss_sym_ref, loss_pe_ref):
    t_feat = t_feat_ref[...]          # (Nt, D)  head_2 output
    t_logi = t_logi_ref[...]          # (Nt, C)
    s_feat = s_feat_ref[...]          # (Ns, D)  head_1 output
    s_logi = s_logi_ref[...]          # (Ns, C)

    Nt = t_feat.shape[0]
    Ns, C = s_logi.shape

    # ---- per-class teacher centroids: fold count + mean into ONE matmul by
    #      pre-scaling one-hot columns with 1/count (EUP reciprocal; the scale
    #      error cancels under the L2 normalization below).  Empty classes give
    #      all-zero one-hot columns -> zero centroid rows, matching the module.
    t_arg = _argmax_lastdim(t_logi)                                     # (Nt,1)
    cls_iota_t = lax.broadcasted_iota(jnp.int32, (Nt, C), 1)
    onehot_t = (t_arg == cls_iota_t).astype(jnp.float32)                # (Nt,C)
    cnt = jnp.sum(onehot_t, axis=0, keepdims=True)                      # (1,C)
    inv_cnt = pl.reciprocal(jnp.maximum(cnt, 1.0), approx=True)         # (1,C)
    onehot_mean = onehot_t * inv_cnt                                    # (Nt,C)
    centroids = lax.dot_general(onehot_mean, t_feat, (((0,), (0,)), ((), ())),
                                preferred_element_type=jnp.float32)     # (C,D)

    # ---- L2 normalize via rsqrt on the EUP; equals x / max(||x||, eps) ----
    eps = 1e-12
    s_sq = jnp.sum(s_feat * s_feat, axis=1, keepdims=True)
    s_feat_nor = s_feat * lax.rsqrt(jnp.maximum(s_sq, eps * eps))
    c_sq = jnp.sum(centroids * centroids, axis=1, keepdims=True)
    cent_nor = centroids * lax.rsqrt(jnp.maximum(c_sq, eps * eps))

    # ---- cosine logits student vs centroids ----
    logits_centr = lax.dot_general(s_feat_nor, cent_nor,
                                   (((1,), (1,)), ((), ())),
                                   preferred_element_type=jnp.float32)  # (Ns,C)

    lc_arg = _argmax_lastdim(logits_centr)   # (Ns,1)
    s_arg = _argmax_lastdim(s_logi)          # (Ns,1)

    ls_s = _log_softmax(s_logi)              # (Ns,C)
    ls_c = _log_softmax(logits_centr)        # (Ns,C)

    cls_iota_s = lax.broadcasted_iota(jnp.int32, (Ns, C), 1)
    onehot_lc = (lc_arg == cls_iota_s).astype(jnp.float32)
    onehot_sa = (s_arg == cls_iota_s).astype(jnp.float32)

    # cross_entropy(s_logi, logits_centr_arg) and cross_entropy(logits_centr, s_logi_arg)
    ce_cs = -jnp.sum(onehot_lc * ls_s, axis=1, keepdims=True)           # (Ns,1)
    ce_sc = -jnp.sum(onehot_sa * ls_c, axis=1, keepdims=True)           # (Ns,1)
    loss_sym = (jnp.sum(ce_cs, axis=0, keepdims=True)
                + jnp.sum(ce_sc, axis=0, keepdims=True)) * (1.0 / Ns)   # (1,1)

    # F.cross_entropy(s_logi, s_logi_arg with disagreements -> ignore_index=-1)
    valid = (s_arg == lc_arg).astype(jnp.float32)                       # (Ns,1)
    ce_pe = -jnp.sum(onehot_sa * ls_s, axis=1, keepdims=True)           # (Ns,1)
    n_valid = jnp.sum(valid, axis=0, keepdims=True)                     # (1,1)
    # mean over non-ignored rows (NaN if none agree, matching PyTorch)
    loss_pe = (jnp.sum(valid * ce_pe, axis=0, keepdims=True)
               * pl.reciprocal(n_valid, approx=True))                   # (1,1)

    loss_sym_ref[...] = loss_sym * LAMBDA_PS
    loss_pe_ref[...] = loss_pe * LAMBDA_PE


def loss_pc_losses(t_feat, t_logi0, s_feat, s_logi0):
    # Tiny, latency-dominated kernel: all operands fully resident in VMEM,
    # consumed straight from the head outputs (no relayout in between).
    vmem = pl.BlockSpec(memory_space=pltpu.MemorySpace.VMEM)
    return pl.pallas_call(
        loss_kernel,
        out_shape=(jax.ShapeDtypeStruct((1, 1), jnp.float32),
                   jax.ShapeDtypeStruct((1, 1), jnp.float32)),
        in_specs=[vmem, vmem, vmem, vmem],
        out_specs=(vmem, vmem),
    )(t_feat, t_logi0, s_feat, s_logi0)


# ------------------------------- module wrapper ------------------------------

def init_params(key, dim_in, feat_dim):
    """Deterministic synthetic init (uniform +/- 1/sqrt(fan_in)), weights as (in, out)."""
    ks = jax.random.split(key, 8)
    lim = 1.0 / jnp.sqrt(dim_in)

    def lin(k_w, k_b, d_in, d_out):
        w = jax.random.uniform(k_w, (d_in, d_out), jnp.float32, -lim, lim)
        b = jax.random.uniform(k_b, (1, d_out), jnp.float32, -lim, lim)
        return w, b

    h1_w1, h1_b1 = lin(ks[0], ks[1], dim_in, dim_in)
    h1_w2, h1_b2 = lin(ks[2], ks[3], dim_in, feat_dim)
    h2_w1, h2_b1 = lin(ks[4], ks[5], dim_in, dim_in)
    h2_w2, h2_b2 = lin(ks[6], ks[7], dim_in, feat_dim)
    return dict(head_1=(h1_w1, h1_b1, h1_w2, h1_b2),
                head_2=(h2_w1, h2_b1, h2_w2, h2_b2))


def loss_pc_forward(params, t_feat, t_logi, s_feat, s_logi,
                    graph_cn=None, labels=None, mask=None):
    # graph_cn / labels / mask are unused by the reference forward.
    s_proj = mlp_head(s_feat, *params["head_1"])   # head_1(s_feat)
    t_proj = mlp_head(t_feat, *params["head_2"])   # head_2(t_feat)
    loss_sym, loss_pe = loss_pc_losses(t_proj, t_logi[0], s_proj, s_logi[0])
    return loss_sym[0, 0], loss_pe[0, 0]


if __name__ == "__main__":
    # Small shapes consistent with the forward (the real module uses dim_in=2048).
    N_T, N_S, DIM, C = 128, 128, 256, NUM_CLASSES

    key = jax.random.PRNGKey(0)
    k_p, k_tf, k_tl, k_sf, k_sl = jax.random.split(key, 5)

    params = init_params(k_p, DIM, DIM)
    t_feat = jax.random.normal(k_tf, (N_T, DIM), jnp.float32)
    t_logi = jax.random.normal(k_tl, (1, N_T, C), jnp.float32)
    s_feat = jax.random.normal(k_sf, (N_S, DIM), jnp.float32)
    s_logi = jax.random.normal(k_sl, (1, N_S, C), jnp.float32)

    loss_sym, loss_pe = jax.jit(loss_pc_forward)(params, t_feat, t_logi, s_feat, s_logi)
    jax.block_until_ready((loss_sym, loss_pe))

    # Also exercise the K-tiled two-stage head (the v7x / dim_in=2048 fallback)
    # and check it agrees with the fused, weights-resident head.
    w1, b1, w2, b2 = params["head_1"]
    fused = mlp_head(s_feat, w1, b1, w2, b2)
    staged = mlp_head_staged(s_feat, w1, b1, w2, b2, tile_n=64, tile_k=128)
    err = float(jnp.max(jnp.abs(fused - staged)))
    assert err < 5e-2, f"fused vs K-tiled head mismatch: {err}"

    print("KERNEL_OK")
</pallas_src>

<mosaic_0001>
module attributes {stable_mosaic.version = 11 : i64} {
  func.func @fused_head_kernel(%arg0: i32, %arg1: memref<128x256xbf16, #tpu.memory_space<vmem>>, %arg2: memref<256x256xbf16, #tpu.memory_space<vmem>>, %arg3: memref<1x256xf32, #tpu.memory_space<vmem>>, %arg4: memref<256x256xbf16, #tpu.memory_space<vmem>>, %arg5: memref<1x256xf32, #tpu.memory_space<vmem>>, %arg6: memref<128x256xf32, #tpu.memory_space<vmem>>) attributes {dimension_semantics = [#tpu.dimension_semantics<parallel>], iteration_bounds = array<i64: 1>, scalar_prefetch = 0 : i64, scratch_operands = 0 : i64, tpu.core_type = #tpu.core_type<tc>, window_params = [{transform_indices = @transform_0, window_bounds = array<i64: 128, 256>}, {pipeline_mode = #tpu.pipeline_mode<synchronous>, transform_indices = @transform_1, window_bounds = array<i64: 256, 256>}, {pipeline_mode = #tpu.pipeline_mode<synchronous>, transform_indices = @transform_2, window_bounds = array<i64: 1, 256>}, {pipeline_mode = #tpu.pipeline_mode<synchronous>, transform_indices = @transform_3, window_bounds = array<i64: 256, 256>}, {pipeline_mode = #tpu.pipeline_mode<synchronous>, transform_indices = @transform_4, window_bounds = array<i64: 1, 256>}, {transform_indices = @transform_5, window_bounds = array<i64: 128, 256>}]} {
    %c0 = arith.constant 0 : index
    %c0_0 = arith.constant 0 : index
    %0 = vector.load %arg1[%c0, %c0_0] : memref<128x256xbf16, #tpu.memory_space<vmem>>, vector<128x256xbf16>
    %c0_1 = arith.constant 0 : index
    %c0_2 = arith.constant 0 : index
    %1 = vector.load %arg2[%c0_1, %c0_2] : memref<256x256xbf16, #tpu.memory_space<vmem>>, vector<256x256xbf16>
    %cst = arith.constant dense<0.000000e+00> : vector<128x256xf32>
    %2 = tpu.matmul %0, %1, %cst {dimension_numbers = #tpu.dot_dimension_numbers<[1], [0], [0], [1], [0, 0, 1, 1], [], []>} : vector<128x256xbf16>, vector<256x256xbf16>, vector<128x256xf32> -> vector<128x256xf32>
    %c0_3 = arith.constant 0 : index
    %c0_4 = arith.constant 0 : index
    %3 = vector.load %arg3[%c0_3, %c0_4] : memref<1x256xf32, #tpu.memory_space<vmem>>, vector<1x256xf32>
    %4 = vector.broadcast %3 : vector<1x256xf32> to vector<128x256xf32>
    %5 = arith.addf %2, %4 : vector<128x256xf32>
    %cst_5 = arith.constant 0.000000e+00 : f32
    %6 = vector.broadcast %cst_5 : f32 to vector<128x256xf32>
    %7 = arith.maximumf %5, %6 : vector<128x256xf32>
    %8 = arith.truncf %7 : vector<128x256xf32> to vector<128x256xbf16>
    %c0_6 = arith.constant 0 : index
    %c0_7 = arith.constant 0 : index
    %9 = vector.load %arg4[%c0_6, %c0_7] : memref<256x256xbf16, #tpu.memory_space<vmem>>, vector<256x256xbf16>
    %cst_8 = arith.constant dense<0.000000e+00> : vector<128x256xf32>
    %10 = tpu.matmul %8, %9, %cst_8 {dimension_numbers = #tpu.dot_dimension_numbers<[1], [0], [0], [1], [0, 0, 1, 1], [], []>} : vector<128x256xbf16>, vector<256x256xbf16>, vector<128x256xf32> -> vector<128x256xf32>
    %c0_9 = arith.constant 0 : index
    %c0_10 = arith.constant 0 : index
    %11 = vector.load %arg5[%c0_9, %c0_10] : memref<1x256xf32, #tpu.memory_space<vmem>>, vector<1x256xf32>
    %12 = vector.broadcast %11 : vector<1x256xf32> to vector<128x256xf32>
    %13 = arith.addf %10, %12 : vector<128x256xf32>
    %c0_11 = arith.constant 0 : index
    %c0_12 = arith.constant 0 : index
    %14 = vector.load %arg6[%c0_11, %c0_12] : memref<128x256xf32, #tpu.memory_space<vmem>>, vector<128x256xf32>
    tpu.vector_store %arg6[%c0_11, %c0_12], %13 {strides = array<i32>} : memref<128x256xf32, #tpu.memory_space<vmem>>, vector<128x256xf32>,
    return
  }
  func.func @transform_0(%arg0: i32) -> (i32, i32) {
    %c0_i32 = arith.constant 0 : i32
    %c0_i32_0 = arith.constant 0 : i32
    return %arg0, %c0_i32 : i32, i32
  }
  func.func @transform_1(%arg0: i32) -> (i32, i32) {
    %c0_i32 = arith.constant 0 : i32
    %c0_i32_0 = arith.constant 0 : i32
    %c0_i32_1 = arith.constant 0 : i32
    return %c0_i32, %c0_i32_0 : i32, i32
  }
  func.func @transform_2(%arg0: i32) -> (i32, i32) {
    %c0_i32 = arith.constant 0 : i32
    %c0_i32_0 = arith.constant 0 : i32
    %c0_i32_1 = arith.constant 0 : i32
    return %c0_i32, %c0_i32_0 : i32, i32
  }
  func.func @transform_3(%arg0: i32) -> (i32, i32) {
    %c0_i32 = arith.constant 0 : i32
    %c0_i32_0 = arith.constant 0 : i32
    %c0_i32_1 = arith.constant 0 : i32
    return %c0_i32, %c0_i32_0 : i32, i32
  }
  func.func @transform_4(%arg0: i32) -> (i32, i32) {
    %c0_i32 = arith.constant 0 : i32
    %c0_i32_0 = arith.constant 0 : i32
    %c0_i32_1 = arith.constant 0 : i32
    return %c0_i32, %c0_i32_0 : i32, i32
  }
  func.func @transform_5(%arg0: i32) -> (i32, i32) {
    %c0_i32 = arith.constant 0 : i32
    %c0_i32_0 = arith.constant 0 : i32
    return %arg0, %c0_i32 : i32, i32
  }
}

module attributes {stable_mosaic.version = 11 : i64} {
  func.func @loss_kernel(%arg0: memref<128x256xf32, #tpu.memory_space<vmem>>, %arg1: memref<128x9xf32, #tpu.memory_space<vmem>>, %arg2: memref<128x256xf32, #tpu.memory_space<vmem>>, %arg3: memref<128x9xf32, #tpu.memory_space<vmem>>, %arg4: memref<1x1xf32, #tpu.memory_space<vmem>>, %arg5: memref<1x1xf32, #tpu.memory_space<vmem>>) attributes {dimension_semantics = [], scalar_prefetch = 0 : i64, scratch_operands = 0 : i64, tpu.core_type = #tpu.core_type<tc>} {
    %c0 = arith.constant 0 : index
    %c0_0 = arith.constant 0 : index
    %0 = vector.load %arg0[%c0, %c0_0] : memref<128x256xf32, #tpu.memory_space<vmem>>, vector<128x256xf32>
    %c0_1 = arith.constant 0 : index
    %c0_2 = arith.constant 0 : index
    %1 = vector.load %arg1[%c0_1, %c0_2] : memref<128x9xf32, #tpu.memory_space<vmem>>, vector<128x9xf32>
    %c0_3 = arith.constant 0 : index
    %c0_4 = arith.constant 0 : index
    %2 = vector.load %arg2[%c0_3, %c0_4] : memref<128x256xf32, #tpu.memory_space<vmem>>, vector<128x256xf32>
    %c0_5 = arith.constant 0 : index
    %c0_6 = arith.constant 0 : index
    %3 = vector.load %arg3[%c0_5, %c0_6] : memref<128x9xf32, #tpu.memory_space<vmem>>, vector<128x9xf32>
    %cst = arith.constant dense<0xFF800000> : vector<128xf32>
    %4 = vector.multi_reduction <maximumf>, %1, %cst [1] : vector<128x9xf32> to vector<128xf32>
    %5 = vector.shape_cast %4 : vector<128xf32> to vector<128x1xf32>
    %6 = tpu.iota {dimensions = array<i32: 1>} : vector<128x9xi32>
    %7 = vector.broadcast %5 : vector<128x1xf32> to vector<128x9xf32>
    %8 = arith.cmpf oeq, %1, %7 : vector<128x9xf32>
    %c9_i32 = arith.constant 9 : i32
    %9 = vector.broadcast %c9_i32 : i32 to vector<128x9xi32>
    %10 = arith.select %8, %6, %9 : vector<128x9xi1>, vector<128x9xi32>
    %cst_7 = arith.constant dense<2147483647> : vector<128xi32>
    %11 = vector.multi_reduction <minsi>, %10, %cst_7 [1] : vector<128x9xi32> to vector<128xi32>
    %12 = vector.shape_cast %11 : vector<128xi32> to vector<128x1xi32>
    %13 = tpu.iota {dimensions = array<i32: 1>} : vector<128x9xi32>
    %14 = vector.broadcast %12 : vector<128x1xi32> to vector<128x9xi32>
    %15 = arith.cmpi eq, %14, %13 : vector<128x9xi32>
    %16 = arith.extui %15 : vector<128x9xi1> to vector<128x9xi32>
    %17 = arith.sitofp %16 : vector<128x9xi32> to vector<128x9xf32>
    %cst_8 = arith.constant dense<0.000000e+00> : vector<9xf32>
    %18 = vector.multi_reduction <add>, %17, %cst_8 [0] : vector<128x9xf32> to vector<9xf32>
    %19 = vector.shape_cast %18 : vector<9xf32> to vector<1x9xf32>
    %cst_9 = arith.constant 1.000000e+00 : f32
    %20 = vector.broadcast %cst_9 : f32 to vector<1x9xf32>
    %21 = arith.maximumf %19, %20 : vector<1x9xf32>
    %22 = tpu.reciprocal %21 {approx = true} : vector<1x9xf32> -> vector<1x9xf32>
    %23 = vector.broadcast %22 : vector<1x9xf32> to vector<128x9xf32>
    %24 = arith.mulf %17, %23 : vector<128x9xf32>
    %cst_10 = arith.constant dense<0.000000e+00> : vector<9x256xf32>
    %25 = tpu.matmul %24, %0, %cst_10 {dimension_numbers = #tpu.dot_dimension_numbers<[0], [0], [1], [1], [0, 1, 1, 1], [], []>} : vector<128x9xf32>, vector<128x256xf32>, vector<9x256xf32> -> vector<9x256xf32>
    %26 = arith.mulf %2, %2 : vector<128x256xf32>
    %cst_11 = arith.constant dense<0.000000e+00> : vector<128xf32>
    %27 = vector.multi_reduction <add>, %26, %cst_11 [1] : vector<128x256xf32> to vector<128xf32>
    %28 = vector.shape_cast %27 : vector<128xf32> to vector<128x1xf32>
    %cst_12 = arith.constant 1.000000e-24 : f32
    %29 = vector.broadcast %cst_12 : f32 to vector<128x1xf32>
    %30 = arith.maximumf %28, %29 : vector<128x1xf32>
    %31 = math.rsqrt %30 : vector<128x1xf32>
    %32 = vector.broadcast %31 : vector<128x1xf32> to vector<128x256xf32>
    %33 = arith.mulf %2, %32 : vector<128x256xf32>
    %34 = arith.mulf %25, %25 : vector<9x256xf32>
    %cst_13 = arith.constant dense<0.000000e+00> : vector<9xf32>
    %35 = vector.multi_reduction <add>, %34, %cst_13 [1] : vector<9x256xf32> to vector<9xf32>
    %36 = vector.shape_cast %35 : vector<9xf32> to vector<9x1xf32>
    %cst_14 = arith.constant 1.000000e-24 : f32
    %37 = vector.broadcast %cst_14 : f32 to vector<9x1xf32>
    %38 = arith.maximumf %36, %37 : vector<9x1xf32>
    %39 = math.rsqrt %38 : vector<9x1xf32>
    %40 = vector.broadcast %39 : vector<9x1xf32> to vector<9x256xf32>
    %41 = arith.mulf %25, %40 : vector<9x256xf32>
    %cst_15 = arith.constant dense<0.000000e+00> : vector<128x9xf32>
    %42 = tpu.matmul %33, %41, %cst_15 {dimension_numbers = #tpu.dot_dimension_numbers<[1], [1], [0], [0], [0, 0, 1, 0], [], []>} : vector<128x256xf32>, vector<9x256xf32>, vector<128x9xf32> -> vector<128x9xf32>
    %cst_16 = arith.constant dense<0xFF800000> : vector<128xf32>
    %43 = vector.multi_reduction <maximumf>, %42, %cst_16 [1] : vector<128x9xf32> to vector<128xf32>
    %44 = vector.shape_cast %43 : vector<128xf32> to vector<128x1xf32>
    %45 = tpu.iota {dimensions = array<i32: 1>} : vector<128x9xi32>
    %46 = vector.broadcast %44 : vector<128x1xf32> to vector<128x9xf32>
    %47 = arith.cmpf oeq, %42, %46 : vector<128x9xf32>
    %c9_i32_17 = arith.constant 9 : i32
    %48 = vector.broadcast %c9_i32_17 : i32 to vector<128x9xi32>
    %49 = arith.select %47, %45, %48 : vector<128x9xi1>, vector<128x9xi32>
    %cst_18 = arith.constant dense<2147483647> : vector<128xi32>
    %50 = vector.multi_reduction <minsi>, %49, %cst_18 [1] : vector<128x9xi32> to vector<128xi32>
    %51 = vector.shape_cast %50 : vector<128xi32> to vector<128x1xi32>
    %cst_19 = arith.constant dense<0xFF800000> : vector<128xf32>
    %52 = vector.multi_reduction <maximumf>, %3, %cst_19 [1] : vector<128x9xf32> to vector<128xf32>
    %53 = vector.shape_cast %52 : vector<128xf32> to vector<128x1xf32>
    %54 = tpu.iota {dimensions = array<i32: 1>} : vector<128x9xi32>
    %55 = vector.broadcast %53 : vector<128x1xf32> to vector<128x9xf32>
    %56 = arith.cmpf oeq, %3, %55 : vector<128x9xf32>
    %c9_i32_20 = arith.constant 9 : i32
    %57 = vector.broadcast %c9_i32_20 : i32 to vector<128x9xi32>
    %58 = arith.select %56, %54, %57 : vector<128x9xi1>, vector<128x9xi32>
    %cst_21 = arith.constant dense<2147483647> : vector<128xi32>
    %59 = vector.multi_reduction <minsi>, %58, %cst_21 [1] : vector<128x9xi32> to vector<128xi32>
    %60 = vector.shape_cast %59 : vector<128xi32> to vector<128x1xi32>
    %cst_22 = arith.constant dense<0xFF800000> : vector<128xf32>
    %61 = vector.multi_reduction <maximumf>, %3, %cst_22 [1] : vector<128x9xf32> to vector<128xf32>
    %62 = vector.shape_cast %61 : vector<128xf32> to vector<128x1xf32>
    %63 = vector.broadcast %62 : vector<128x1xf32> to vector<128x9xf32>
    %64 = arith.subf %3, %63 : vector<128x9xf32>
    %65 = math.exp %64 : vector<128x9xf32>
    %cst_23 = arith.constant dense<0.000000e+00> : vector<128xf32>
    %66 = vector.multi_reduction <add>, %65, %cst_23 [1] : vector<128x9xf32> to vector<128xf32>
    %67 = vector.shape_cast %66 : vector<128xf32> to vector<128x1xf32>
    %68 = math.log %67 : vector<128x1xf32>
    %69 = vector.broadcast %68 : vector<128x1xf32> to vector<128x9xf32>
    %70 = arith.subf %64, %69 : vector<128x9xf32>
    %cst_24 = arith.constant dense<0xFF800000> : vector<128xf32>
    %71 = vector.multi_reduction <maximumf>, %42, %cst_24 [1] : vector<128x9xf32> to vector<128xf32>
    %72 = vector.shape_cast %71 : vector<128xf32> to vector<128x1xf32>
    %73 = vector.broadcast %72 : vector<128x1xf32> to vector<128x9xf32>
    %74 = arith.subf %42, %73 : vector<128x9xf32>
    %75 = math.exp %74 : vector<128x9xf32>
    %cst_25 = arith.constant dense<0.000000e+00> : vector<128xf32>
    %76 = vector.multi_reduction <add>, %75, %cst_25 [1] : vector<128x9xf32> to vector<128xf32>
    %77 = vector.shape_cast %76 : vector<128xf32> to vector<128x1xf32>
    %78 = math.log %77 : vector<128x1xf32>
    %79 = vector.broadcast %78 : vector<128x1xf32> to vector<128x9xf32>
    %80 = arith.subf %74, %79 : vector<128x9xf32>
    %81 = tpu.iota {dimensions = array<i32: 1>} : vector<128x9xi32>
    %82 = vector.broadcast %51 : vector<128x1xi32> to vector<128x9xi32>
    %83 = arith.cmpi eq, %82, %81 : vector<128x9xi32>
    %84 = arith.extui %83 : vector<128x9xi1> to vector<128x9xi32>
    %85 = arith.sitofp %84 : vector<128x9xi32> to vector<128x9xf32>
    %86 = vector.broadcast %60 : vector<128x1xi32> to vector<128x9xi32>
    %87 = arith.cmpi eq, %86, %81 : vector<128x9xi32>
    %88 = arith.extui %87 : vector<128x9xi1> to vector<128x9xi32>
    %89 = arith.sitofp %88 : vector<128x9xi32> to vector<128x9xf32>
    %90 = arith.mulf %85, %70 : vector<128x9xf32>
    %cst_26 = arith.constant dense<0.000000e+00> : vector<128xf32>
    %91 = vector.multi_reduction <add>, %90, %cst_26 [1] : vector<128x9xf32> to vector<128xf32>
    %92 = vector.shape_cast %91 : vector<128xf32> to vector<128x1xf32>
    %cst_27 = arith.constant 0.000000e+00 : f32
    %93 = vector.broadcast %cst_27 : f32 to vector<128x1xf32>
    %94 = arith.subf %93, %92 : vector<128x1xf32>
    %95 = arith.mulf %89, %80 : vector<128x9xf32>
    %cst_28 = arith.constant dense<0.000000e+00> : vector<128xf32>
    %96 = vector.multi_reduction <add>, %95, %cst_28 [1] : vector<128x9xf32> to vector<128xf32>
    %97 = vector.shape_cast %96 : vector<128xf32> to vector<128x1xf32>
    %cst_29 = arith.constant 0.000000e+00 : f32
    %98 = vector.broadcast %cst_29 : f32 to vector<128x1xf32>
    %99 = arith.subf %98, %97 : vector<128x1xf32>
    %cst_30 = arith.constant dense<0.000000e+00> : vector<1xf32>
    %100 = vector.multi_reduction <add>, %94, %cst_30 [0] : vector<128x1xf32> to vector<1xf32>
    %101 = vector.shape_cast %100 : vector<1xf32> to vector<1x1xf32>
    %cst_31 = arith.constant dense<0.000000e+00> : vector<1xf32>
    %102 = vector.multi_reduction <add>, %99, %cst_31 [0] : vector<128x1xf32> to vector<1xf32>
    %103 = vector.shape_cast %102 : vector<1xf32> to vector<1x1xf32>
    %104 = arith.addf %101, %103 : vector<1x1xf32>
    %cst_32 = arith.constant 7.812500e-03 : f32
    %105 = vector.broadcast %cst_32 : f32 to vector<1x1xf32>
    %106 = arith.mulf %104, %105 : vector<1x1xf32>
    %107 = arith.cmpi eq, %60, %51 : vector<128x1xi32>
    %108 = arith.extui %107 : vector<128x1xi1> to vector<128x1xi32>
    %109 = arith.sitofp %108 : vector<128x1xi32> to vector<128x1xf32>
    %110 = arith.mulf %89, %70 : vector<128x9xf32>
    %cst_33 = arith.constant dense<0.000000e+00> : vector<128xf32>
    %111 = vector.multi_reduction <add>, %110, %cst_33 [1] : vector<128x9xf32> to vector<128xf32>
    %112 = vector.shape_cast %111 : vector<128xf32> to vector<128x1xf32>
    %cst_34 = arith.constant 0.000000e+00 : f32
    %113 = vector.broadcast %cst_34 : f32 to vector<128x1xf32>
    %114 = arith.subf %113, %112 : vector<128x1xf32>
    %cst_35 = arith.constant dense<0.000000e+00> : vector<1xf32>
    %115 = vector.multi_reduction <add>, %109, %cst_35 [0] : vector<128x1xf32> to vector<1xf32>
    %116 = vector.shape_cast %115 : vector<1xf32> to vector<1x1xf32>
    %117 = arith.mulf %109, %114 : vector<128x1xf32>
    %cst_36 = arith.constant dense<0.000000e+00> : vector<1xf32>
    %118 = vector.multi_reduction <add>, %117, %cst_36 [0] : vector<128x1xf32> to vector<1xf32>
    %119 = vector.shape_cast %118 : vector<1xf32> to vector<1x1xf32>
    %120 = tpu.reciprocal %116 {approx = true} : vector<1x1xf32> -> vector<1x1xf32>
    %121 = arith.mulf %119, %120 : vector<1x1xf32>
    %cst_37 = arith.constant 4.000000e-01 : f32
    %122 = vector.broadcast %cst_37 : f32 to vector<1x1xf32>
    %123 = arith.mulf %106, %122 : vector<1x1xf32>
    %c0_38 = arith.constant 0 : index
    %c0_39 = arith.constant 0 : index
    %124 = vector.load %arg4[%c0_38, %c0_39] : memref<1x1xf32, #tpu.memory_space<vmem>>, vector<1x1xf32>
    tpu.vector_store %arg4[%c0_38, %c0_39], %123 {strides = array<i32>} : memref<1x1xf32, #tpu.memory_space<vmem>>, vector<1x1xf32>,
    %cst_40 = arith.constant 1.000000e+00 : f32
    %125 = vector.broadcast %cst_40 : f32 to vector<1x1xf32>
    %126 = arith.mulf %121, %125 : vector<1x1xf32>
    %c0_41 = arith.constant 0 : index
    %c0_42 = arith.constant 0 : index
    %127 = vector.load %arg5[%c0_41, %c0_42] : memref<1x1xf32, #tpu.memory_space<vmem>>, vector<1x1xf32>
    tpu.vector_store %arg5[%c0_41, %c0_42], %126 {strides = array<i32>} : memref<1x1xf32, #tpu.memory_space<vmem>>, vector<1x1xf32>,
    return
  }
}

</mosaic_0001>

<bundles_post_ra>
// kernel: loss_pc_forward.3
= control target key start
LH: loop header
LB: loop body
LE: loop exit
PB: predicated region body
PF: predicated region fallthrough
CT: control target
= control target key end

     0   :  { %s1490_s1 = inlined_call_operand.vmem [shape: bf16[256,256], index: 1, kind: input, shape index: {}]   ;;  %s1491_s0 = inlined_call_operand.vmem [shape: bf16[128,256], index: 0, kind: input, shape index: {}]   ;;  %s1492_s3 = inlined_call_operand.vmem [shape: bf16[256,256], index: 3, kind: input, shape index: {}]   ;;  %s1493_s2 = inlined_call_operand.vmem [shape: f32[1,256], index: 2, kind: input, shape index: {}]   ;;  %s1494_s4 = inlined_call_operand.vmem [shape: f32[1,256], index: 4, kind: input, shape index: {}]   ;;  %s1495_s5 = inlined_call_operand.vmem [shape: f32[128,256], index: 5, kind: output, shape index: {}]  }
   0x1   :  { %v914_v0 = vld [vmem:[%s1490_s1 + $0x4] ss:$8 sps:$4 sm:$0xff]   ;;  %v916_v1 = vld [vmem:[%s1490_s1] ss:$8 sps:$4 sm:$0xff]   ;;  %v917_v2 = vld [vmem:[%s1490_s1 + $0x14] ss:$8 sps:$4 sm:$0xff]  }
   0x2   :  { %320 = vmatprep.subr.bf16.mxu0 %v914_v0  ;;  %v919_v3 = vld [vmem:[%s1490_s1 + $0x10] ss:$8 sps:$4 sm:$0xff]   ;;  %v920_v4 = vld [vmem:[%s1490_s1 + $0x24] ss:$8 sps:$4 sm:$0xff]   ;;  %v922_v5 = vld [vmem:[%s1490_s1 + $0x20] ss:$8 sps:$4 sm:$0xff]  }
   0x3   :  { %321 = vmatpush1.bf16.msra.mxu0 %v916_v1  ;;  %v923_v6 = vld [vmem:[%s1490_s1 + $0x34] ss:$8 sps:$4 sm:$0xff]   ;;  %v925_v7 = vld [vmem:[%s1490_s1 + $0x30] ss:$8 sps:$4 sm:$0xff]   ;;  %v926_v8 = vld [vmem:[%s1490_s1 + $0x44] ss:$8 sps:$4 sm:$0xff]  }
   0x4   :  { %322 = vmatprep.subr.bf16.mxu0 %v917_v2  ;;  %v928_v9 = vld [vmem:[%s1490_s1 + $0x40] ss:$8 sps:$4 sm:$0xff]   ;;  %v929_v10 = vld [vmem:[%s1490_s1 + $0x54] ss:$8 sps:$4 sm:$0xff]   ;;  %v931_v11 = vld [vmem:[%s1490_s1 + $0x50] ss:$8 sps:$4 sm:$0xff]  }
   0x5   :  { %v932_v12 = vld [vmem:[%s1490_s1 + $0x64] ss:$8 sps:$4 sm:$0xff]   ;;  %v934_v14 = vld [vmem:[%s1490_s1 + $0x60] ss:$8 sps:$4 sm:$0xff]   ;;  %v935_v15 = vld [vmem:[%s1490_s1 + $0x74] ss:$8 sps:$4 sm:$0xff]  }
   0x6   :  { %v964_v13 = vld [vmem:[%s1491_s0 + $0x4] ss:$8 sps:$4 sm:$0xff]   ;;  %v937_v16 = vld [vmem:[%s1490_s1 + $0x70] ss:$8 sps:$4 sm:$0xff]   ;;  %v940_v18 = vld [vmem:[%s1490_s1 + $0x80] ss:$8 sps:$4 sm:$0xff]  }
   0x7   :  { %323 = vmatpush1.bf16.msra.mxu0 %v919_v3  ;;  %352 = vmatprep.mubr.bf16.mxu0 %v964_v13  ;;  %v938_v17 = vld [vmem:[%s1490_s1 + $0x84] ss:$8 sps:$4 sm:$0xff]   ;;  %v941_v19 = vld [vmem:[%s1490_s1 + $0x94] ss:$8 sps:$4 sm:$0xff]   ;;  %v988_v21 = vld [vmem:[%s1492_s3] ss:$8 sps:$4 sm:$0xff]  }
   0x8   :  { %324 = vmatprep.subr.bf16.mxu0 %v920_v4  ;;  %v986_v20 = vld [vmem:[%s1492_s3 + $0x4] ss:$8 sps:$4 sm:$0xff]   ;;  %v943_v22 = vld [vmem:[%s1490_s1 + $0x90] ss:$8 sps:$4 sm:$0xff]   ;;  %v989_v23 = vld [vmem:[%s1492_s3 + $0x14] ss:$8 sps:$4 sm:$0xff]  }
   0x9   :  { %685 = vmatprep.subr.bf16.mxu1 %v986_v20  ;;  %v944_v24 = vld [vmem:[%s1490_s1 + $0xa4] ss:$8 sps:$4 sm:$0xff]   ;;  %v991_v25 = vld [vmem:[%s1492_s3 + $0x10] ss:$8 sps:$4 sm:$0xff]   ;;  %v946_v27 = vld [vmem:[%s1490_s1 + $0xa0] ss:$8 sps:$4 sm:$0xff]  }
   0xa   :  { %686 = vmatpush1.bf16.msra.mxu1 %v988_v21  ;;  %v992_v26 = vld [vmem:[%s1492_s3 + $0x24] ss:$8 sps:$4 sm:$0xff]   ;;  %v947_v28 = vld [vmem:[%s1490_s1 + $0xb4] ss:$8 sps:$4 sm:$0xff]   ;;  %v994_v29 = vld [vmem:[%s1492_s3 + $0x20] ss:$8 sps:$4 sm:$0xff]  }
   0xb   :  { %325 = vmatpush1.bf16.msra.mxu0 %v922_v5  ;;  %687 = vmatprep.subr.bf16.mxu1 %v989_v23  ;;  %v995_v30 = vld [vmem:[%s1492_s3 + $0x34] ss:$8 sps:$4 sm:$0xff]   ;;  %v949_v31 = vld [vmem:[%s1490_s1 + $0xb0] ss:$8 sps:$4 sm:$0xff]   ;;  %v950_v32 = vld [vmem:[%s1490_s1 + $0xc4] ss:$8 sps:$4 sm:$0xff]  }
   0xc   :  { %326 = vmatprep.subr.bf16.mxu0 %v923_v6  ;;  %v997_v33 = vld [vmem:[%s1492_s3 + $0x30] ss:$8 sps:$4 sm:$0xff]   ;;  %v998_v34 = vld [vmem:[%s1492_s3 + $0x44] ss:$8 sps:$4 sm:$0xff]   ;;  %v952_v35 = vld [vmem:[%s1490_s1 + $0xc0] ss:$8 sps:$4 sm:$0xff]  }
   0xd   :  { %v953_v36 = vld [vmem:[%s1490_s1 + $0xd4] ss:$8 sps:$4 sm:$0xff]   ;;  %v1000_v37 = vld [vmem:[%s1492_s3 + $0x40] ss:$8 sps:$4 sm:$0xff]   ;;  %v955_v39 = vld [vmem:[%s1490_s1 + $0xd0] ss:$8 sps:$4 sm:$0xff]  }
   0xe   :  { %688 = vmatpush1.bf16.msra.mxu1 %v991_v25  ;;  %v1001_v38 = vld [vmem:[%s1492_s3 + $0x54] ss:$8 sps:$4 sm:$0xff]   ;;  %v1003_v40 = vld [vmem:[%s1492_s3 + $0x50] ss:$8 sps:$4 sm:$0xff]   ;;  %v956_v41 = vld [vmem:[%s1490_s1 + $0xe4] ss:$8 sps:$4 sm:$0xff]  }
   0xf   :  { %327 = vmatpush1.bf16.msra.mxu0 %v925_v7  ;;  %689 = vmatprep.subr.bf16.mxu1 %v992_v26  ;;  %v1004_v42 = vld [vmem:[%s1492_s3 + $0x64] ss:$8 sps:$4 sm:$0xff]   ;;  %v958_v43 = vld [vmem:[%s1490_s1 + $0xe0] ss:$8 sps:$4 sm:$0xff]   ;;  %v959_v45 = vld [vmem:[%s1490_s1 + $0xf4] ss:$8 sps:$4 sm:$0xff]  }
  0x10   :  { %328 = vmatprep.subr.bf16.mxu0 %v926_v8  ;;  %v1006_v44 = vld [vmem:[%s1492_s3 + $0x60] ss:$8 sps:$4 sm:$0xff]   ;;  %v1007_v46 = vld [vmem:[%s1492_s3 + $0x74] ss:$8 sps:$4 sm:$0xff]   ;;  %v961_v47 = vld [vmem:[%s1490_s1 + $0xf0] ss:$8 sps:$4 sm:$0xff]  }
  0x11   :  { %v1009_v48 = vld [vmem:[%s1492_s3 + $0x70] ss:$8 sps:$4 sm:$0xff]   ;;  %v1010_v49 = vld [vmem:[%s1492_s3 + $0x84] ss:$8 sps:$4 sm:$0xff]   ;;  %v962_v50 = vld [vmem:[%s1491_s0] ss:$8 sps:$4 sm:$0xff]  }
  0x12   :  { %690 = vmatpush1.bf16.msra.mxu1 %v994_v29  ;;  %v965_v51 = vld [vmem:[%s1491_s0 + $0x14] ss:$8 sps:$4 sm:$0xff]   ;;  %v1012_v52 = vld [vmem:[%s1492_s3 + $0x80] ss:$8 sps:$4 sm:$0xff]   ;;  %v1015_v54 = vld [vmem:[%s1492_s3 + $0x90] ss:$8 sps:$4 sm:$0xff]  }
  0x13   :  { %329 = vmatpush1.bf16.msra.mxu0 %v928_v9  ;;  %691 = vmatprep.subr.bf16.mxu1 %v995_v30  ;;  %v1013_v53 = vld [vmem:[%s1492_s3 + $0x94] ss:$8 sps:$4 sm:$0xff]   ;;  %v1016_v55 = vld [vmem:[%s1492_s3 + $0xa4] ss:$8 sps:$4 sm:$0xff]   ;;  %v967_v56 = vld [vmem:[%s1491_s0 + $0x10] ss:$8 sps:$4 sm:$0xff]  }
  0x14   :  { %330 = vmatprep.subr.bf16.mxu0 %v929_v10  ;;  %v968_v57 = vld [vmem:[%s1491_s0 + $0x24] ss:$8 sps:$4 sm:$0xff]   ;;  %v1018_v58 = vld [vmem:[%s1492_s3 + $0xa0] ss:$8 sps:$4 sm:$0xff]   ;;  %v1019_v59 = vld [vmem:[%s1492_s3 + $0xb4] ss:$8 sps:$4 sm:$0xff]  }
  0x15   :  { %v1021_v60 = vld [vmem:[%s1492_s3 + $0xb0] ss:$8 sps:$4 sm:$0xff]   ;;  %v1022_v61 = vld [vmem:[%s1492_s3 + $0xc4] ss:$8 sps:$4 sm:$0xff]   ;;  %v970_v62 = vld [vmem:[%s1491_s0 + $0x20] ss:$8 sps:$4 sm:$0xff]  }
  0x16   :  { %692 = vmatpush1.bf16.msra.mxu1 %v997_v33  ;;  %v971_v63 = vld [vmem:[%s1491_s0 + $0x34] ss:$8 sps:$4 sm:$0xff]   ;;  %v1024_v0 = vld [vmem:[%s1492_s3 + $0xc0] ss:$8 sps:$4 sm:$0xff]   ;;  %v973_v2 = vld [vmem:[%s1491_s0 + $0x30] ss:$8 sps:$4 sm:$0xff]  }
  0x17   :  { %331 = vmatpush1.bf16.msra.mxu0 %v931_v11  ;;  %693 = vmatprep.subr.bf16.mxu1 %v998_v34  ;;  %v1025_v1 = vld [vmem:[%s1492_s3 + $0xd4] ss:$8 sps:$4 sm:$0xff]   ;;  %v974_v3 = vld [vmem:[%s1491_s0 + $0x44] ss:$8 sps:$4 sm:$0xff]   ;;  %v976_v4 = vld [vmem:[%s1491_s0 + $0x40] ss:$8 sps:$4 sm:$0xff]  }
  0x18   :  { %332 = vmatprep.subr.bf16.mxu0 %v932_v12  ;;  %v977_v5 = vld [vmem:[%s1491_s0 + $0x54] ss:$8 sps:$4 sm:$0xff]   ;;  %v979_v6 = vld [vmem:[%s1491_s0 + $0x50] ss:$8 sps:$4 sm:$0xff]   ;;  %v980_v7 = vld [vmem:[%s1491_s0 + $0x64] ss:$8 sps:$4 sm:$0xff]  }
  0x19   :  { %v982_v8 = vld [vmem:[%s1491_s0 + $0x60] ss:$8 sps:$4 sm:$0xff]   ;;  %v983_v9 = vld [vmem:[%s1491_s0 + $0x74] ss:$8 sps:$4 sm:$0xff]   ;;  %v985_v10 = vld [vmem:[%s1491_s0 + $0x70] ss:$8 sps:$4 sm:$0xff]  }
  0x1a   :  { %694 = vmatpush1.bf16.msra.mxu1 %v1000_v37  ;;  %v1027_v11 = vld [vmem:[%s1492_s3 + $0xd0] ss:$8 sps:$4 sm:$0xff]   ;;  %v1028_v12 = vld [vmem:[%s1492_s3 + $0xe4] ss:$8 sps:$4 sm:$0xff]   ;;  %v1030_v13 = vld [vmem:[%s1492_s3 + $0xe0] ss:$8 sps:$4 sm:$0xff]  }
  0x1b   :  { %333 = vmatpush1.bf16.msra.mxu0 %v934_v14  ;;  %695 = vmatprep.subr.bf16.mxu1 %v1001_v38  ;;  %v1031_v14 = vld [vmem:[%s1492_s3 + $0xf4] ss:$8 sps:$4 sm:$0xff]  }
  0x1c   :  { %334 = vmatprep.subr.bf16.mxu0 %v935_v15  ;;  %v1033_v15 = vld [vmem:[%s1492_s3 + $0xf0] ss:$8 sps:$4 sm:$0xff]  }
  0x1e   :  { %696 = vmatpush1.bf16.msra.mxu1 %v1003_v40 }
  0x1f   :  { %335 = vmatpush1.bf16.msra.mxu0 %v937_v16  ;;  %697 = vmatprep.subr.bf16.mxu1 %v1004_v42  ;;  %v70_v16 = vlaneseq }
  0x20   :  { %336 = vmatprep.subr.bf16.mxu0 %v938_v17 }
  0x21   :  { %v1304_v17 = vshrl.u32 %v70_v16, 7 }
  0x22   :  { %698 = vmatpush1.bf16.msra.mxu1 %v1006_v44 }
  0x23   :  { %337 = vmatpush1.bf16.msra.mxu0 %v940_v18  ;;  %699 = vmatprep.subr.bf16.mxu1 %v1007_v46  ;;  %v72_v18 = vsub.s32 0, %v1304_v17  ;;  %v76_v20 = vsub.s32 1, %v1304_v17 }
  0x24   :  { %338 = vmatprep.subr.bf16.mxu0 %v941_v19  ;;  %v68_v19 = vld [vmem:[%s1493_s2] sm:$0x3] }
  0x25   :  { %v1313_v21 = vrot.slane %v68_v19, %v72_v18 }
  0x26   :  { %700 = vmatpush1.bf16.msra.mxu1 %v1009_v48 }
  0x27   :  { %339 = vmatpush1.bf16.msra.mxu0 %v943_v22  ;;  %701 = vmatprep.subr.bf16.mxu1 %v1010_v49  ;;  %v1317_v22 = vrot.slane %v68_v19, %v76_v20 }
  0x28   :  { %340 = vmatprep.subr.bf16.mxu0 %v944_v24 }
  0x2a   :  { %702 = vmatpush1.bf16.msra.mxu1 %v1012_v52 }
  0x2b   :  { %341 = vmatpush1.bf16.msra.mxu0 %v946_v27  ;;  %703 = vmatprep.subr.bf16.mxu1 %v1013_v53 }
  0x2c   :  { %342 = vmatprep.subr.bf16.mxu0 %v947_v28 }
  0x2e   :  { %704 = vmatpush1.bf16.msra.mxu1 %v1015_v54 }
  0x2f   :  { %343 = vmatpush1.bf16.msra.mxu0 %v949_v31  ;;  %705 = vmatprep.subr.bf16.mxu1 %v1016_v55 }
  0x30   :  { %344 = vmatprep.subr.bf16.mxu0 %v950_v32 }
  0x32   :  { %706 = vmatpush1.bf16.msra.mxu1 %v1018_v58 }
  0x33   :  { %345 = vmatpush1.bf16.msra.mxu0 %v952_v35  ;;  %707 = vmatprep.subr.bf16.mxu1 %v1019_v59 }
  0x34   :  { %346 = vmatprep.subr.bf16.mxu0 %v953_v36 }
  0x36   :  { %708 = vmatpush1.bf16.msra.mxu1 %v1021_v60 }
  0x37   :  { %347 = vmatpush1.bf16.msra.mxu0 %v955_v39  ;;  %709 = vmatprep.subr.bf16.mxu1 %v1022_v61 }
  0x38   :  { %348 = vmatprep.subr.bf16.mxu0 %v956_v41 }
  0x3a   :  { %710 = vmatpush1.bf16.msra.mxu1 %v1024_v0 }
  0x3b   :  { %349 = vmatpush1.bf16.msra.mxu0 %v958_v43  ;;  %711 = vmatprep.subr.bf16.mxu1 %v1025_v1 }
  0x3c   :  { %350 = vmatprep.subr.bf16.mxu0 %v959_v45 }
  0x3e   :  { %712 = vmatpush1.bf16.msra.mxu1 %v1027_v11 }
  0x3f   :  { %351 = vmatpush1.bf16.msra.mxu0 %v961_v47  ;;  %713 = vmatprep.subr.bf16.mxu1 %v1028_v12 }
  0x42   :  { %353 = vmatmul.mubr.bf16.vlgmr.msra.gmra.mrb[0].mxu0 %v962_v50  ;;  %714 = vmatpush1.bf16.msra.mxu1 %v1030_v13 }
  0x43   :  { %362 = vmatprep.mubr.bf16.mxu0 %v965_v51  ;;  %715 = vmatprep.subr.bf16.mxu1 %v1031_v14 }
  0x46   :  { %716 = vmatpush1.bf16.msra.mxu1 %v1033_v15 }
  0x4a   :  { %363 = vmatmul.mubr.bf16.gmra.mrb[4].mxu0 %v967_v56 }
  0x4b   :  { %372 = vmatprep.mubr.bf16.mxu0 %v968_v57 }
  0x52   :  { %373 = vmatmul.mubr.bf16.gmra.mrb[8].mxu0 %v970_v62 }
  0x53   :  { %382 = vmatprep.mubr.bf16.mxu0 %v971_v63 }
  0x5a   :  { %383 = vmatmul.mubr.bf16.gmra.mrb[12].mxu0 %v973_v2 }
  0x5b   :  { %392 = vmatprep.mubr.bf16.mxu0 %v974_v3 }
  0x62   :  { %393 = vmatmul.mubr.bf16.gmra.mrb[16].mxu0 %v976_v4 }
  0x63   :  { %402 = vmatprep.mubr.bf16.mxu0 %v977_v5 }
  0x6a   :  { %403 = vmatmul.mubr.bf16.gmra.mrb[20].mxu0 %v979_v6 }
  0x6b   :  { %412 = vmatprep.mubr.bf16.mxu0 %v980_v7 }
  0x72   :  { %413 = vmatmul.mubr.bf16.gmra.mrb[24].mxu0 %v982_v8 }
  0x73   :  { %422 = vmatprep.mubr.bf16.mxu0 %v983_v9 }
  0x7a   :  { %423 = vmatmul.mubr.bf16.gmra.mrb[28].mxu0 %v985_v10 }
 0x115   :  { %v354_v23 = vpop.f32.mrb[0].mxu0 }
 0x116   :  { %v355_v24 = vadd.f32 %v354_v23, %v1313_v21  ;;  %v356_v25 = vpop.f32.mrb[1].mxu0 }
 0x117   :  { %v357_v26 = vadd.f32 %v356_v25, %v1317_v22  ;;  %v358_v27 = vpop.f32.mrb[2].mxu0 }
 0x118   :  { %v359_v28 = vadd.f32 %v358_v27, %v1313_v21  ;;  %v360_v29 = vpop.f32.mrb[3].mxu0  ;;  %v433_v31 = vmax.f32 %v355_v24, 0.0 }
 0x119   :  { %v361_v30 = vadd.f32 %v360_v29, %v1317_v22  ;;  %v434_v33 = vmax.f32 %v357_v26, 0.0 }
 0x11a   :  { %v435_v32 = vmax.f32 %v359_v28, 0.0 }
 0x11b   :  { %v436_v34 = vmax.f32 %v361_v30, 0.0 }
 0x11c   :  { %v465_v35 = vpack.c.bf16 %v435_v32, %v433_v31 }
 0x11d   :  { %v364_v36 = vpop.f32.mrb[4].mxu0  ;;  %v466_v37 = vpack.c.bf16 %v436_v34, %v434_v33 }
 0x11e   :  { %v365_v38 = vadd.f32 %v364_v36, %v1313_v21  ;;  %v366_v39 = vpop.f32.mrb[5].mxu0 }
 0x11f   :  { %v367_v40 = vadd.f32 %v366_v39, %v1317_v22  ;;  %v368_v41 = vpop.f32.mrb[6].mxu0  ;;  %717 = vmatprep.mubr.bf16.mxu1 %v466_v37 }
 0x120   :  { %v369_v42 = vadd.f32 %v368_v41, %v1313_v21  ;;  %v370_v43 = vpop.f32.mrb[7].mxu0  ;;  %718 = vmatmul.mubr.bf16.vlgmr.msra.gmra.mrb[0].mxu1 %v465_v35  ;;  %v437_v45 = vmax.f32 %v365_v38, 0.0 }
 0x121   :  { %v371_v44 = vadd.f32 %v370_v43, %v1317_v22  ;;  %v438_v47 = vmax.f32 %v367_v40, 0.0 }
 0x122   :  { %v439_v46 = vmax.f32 %v369_v42, 0.0 }
 0x123   :  { %v440_v48 = vmax.f32 %v371_v44, 0.0 }
 0x124   :  { %v467_v49 = vpack.c.bf16 %v439_v46, %v437_v45 }
 0x125   :  { %v468_v50 = vpack.c.bf16 %v440_v48, %v438_v47  ;;  %v374_v51 = vpop.f32.mrb[8].mxu0 }
 0x126   :  { %v375_v52 = vadd.f32 %v374_v51, %v1313_v21  ;;  %v376_v53 = vpop.f32.mrb[9].mxu0 }
 0x127   :  { %v377_v54 = vadd.f32 %v376_v53, %v1317_v22  ;;  %v378_v55 = vpop.f32.mrb[10].mxu0  ;;  %727 = vmatprep.mubr.bf16.mxu1 %v468_v50 }
 0x128   :  { %v379_v56 = vadd.f32 %v378_v55, %v1313_v21  ;;  %v380_v57 = vpop.f32.mrb[11].mxu0  ;;  %728 = vmatmul.mubr.bf16.gmra.mrb[4].mxu1 %v467_v49  ;;  %v441_v59 = vmax.f32 %v375_v52, 0.0 }
 0x129   :  { %v381_v58 = vadd.f32 %v380_v57, %v1317_v22  ;;  %v442_v61 = vmax.f32 %v377_v54, 0.0 }
 0x12a   :  { %v443_v60 = vmax.f32 %v379_v56, 0.0 }
 0x12b   :  { %v444_v62 = vmax.f32 %v381_v58, 0.0 }
 0x12c   :  { %v469_v63 = vpack.c.bf16 %v443_v60, %v441_v59 }
 0x12d   :  { %v470_v0 = vpack.c.bf16 %v444_v62, %v442_v61  ;;  %v384_v1 = vpop.f32.mrb[12].mxu0 }
 0x12e   :  { %v385_v2 = vadd.f32 %v384_v1, %v1313_v21  ;;  %v386_v3 = vpop.f32.mrb[13].mxu0 }
 0x12f   :  { %v387_v4 = vadd.f32 %v386_v3, %v1317_v22  ;;  %v388_v5 = vpop.f32.mrb[14].mxu0  ;;  %737 = vmatprep.mubr.bf16.mxu1 %v470_v0 }
 0x130   :  { %v389_v6 = vadd.f32 %v388_v5, %v1313_v21  ;;  %v390_v7 = vpop.f32.mrb[15].mxu0  ;;  %738 = vmatmul.mubr.bf16.gmra.mrb[8].mxu1 %v469_v63  ;;  %v445_v9 = vmax.f32 %v385_v2, 0.0 }
 0x131   :  { %v391_v8 = vadd.f32 %v390_v7, %v1317_v22  ;;  %v446_v11 = vmax.f32 %v387_v4, 0.0 }
 0x132   :  { %v447_v10 = vmax.f32 %v389_v6, 0.0 }
 0x133   :  { %v448_v12 = vmax.f32 %v391_v8, 0.0 }
 0x134   :  { %v471_v13 = vpack.c.bf16 %v447_v10, %v445_v9 }
 0x135   :  { %v472_v14 = vpack.c.bf16 %v448_v12, %v446_v11  ;;  %v394_v15 = vpop.f32.mrb[16].mxu0  ;;  %v513_v12 = vld [vmem:[%s1494_s4] sm:$0x3] }
 0x136   :  { %v395_v16 = vadd.f32 %v394_v15, %v1313_v21  ;;  %v396_v19 = vpop.f32.mrb[17].mxu0 }
 0x137   :  { %v397_v23 = vadd.f32 %v396_v19, %v1317_v22  ;;  %v398_v24 = vpop.f32.mrb[18].mxu0  ;;  %747 = vmatprep.mubr.bf16.mxu1 %v472_v14 }
 0x138   :  { %v399_v25 = vadd.f32 %v398_v24, %v1313_v21  ;;  %v400_v26 = vpop.f32.mrb[19].mxu0  ;;  %748 = vmatmul.mubr.bf16.gmra.mrb[12].mxu1 %v471_v13  ;;  %v449_v28 = vmax.f32 %v395_v16, 0.0  ;;  %v1356_v13 = vrot.slane %v513_v12, %v72_v18 }
 0x139   :  { %v401_v27 = vadd.f32 %v400_v26, %v1317_v22  ;;  %v450_v30 = vmax.f32 %v397_v23, 0.0 }
 0x13a   :  { %v451_v29 = vmax.f32 %v399_v25, 0.0 }
 0x13b   :  { %v452_v31 = vmax.f32 %v401_v27, 0.0 }
 0x13c   :  { %v473_v32 = vpack.c.bf16 %v451_v29, %v449_v28 }
 0x13d   :  { %v474_v33 = vpack.c.bf16 %v452_v31, %v450_v30  ;;  %v404_v34 = vpop.f32.mrb[20].mxu0 }
 0x13e   :  { %v405_v35 = vadd.f32 %v404_v34, %v1313_v21  ;;  %v406_v36 = vpop.f32.mrb[21].mxu0 }
 0x13f   :  { %v407_v37 = vadd.f32 %v406_v36, %v1317_v22  ;;  %v408_v38 = vpop.f32.mrb[22].mxu0  ;;  %757 = vmatprep.mubr.bf16.mxu1 %v474_v33 }
 0x140   :  { %v409_v39 = vadd.f32 %v408_v38, %v1313_v21  ;;  %v410_v40 = vpop.f32.mrb[23].mxu0  ;;  %758 = vmatmul.mubr.bf16.gmra.mrb[16].mxu1 %v473_v32  ;;  %v453_v42 = vmax.f32 %v405_v35, 0.0 }
 0x141   :  { %v411_v41 = vadd.f32 %v410_v40, %v1317_v22  ;;  %v454_v44 = vmax.f32 %v407_v37, 0.0 }
 0x142   :  { %v455_v43 = vmax.f32 %v409_v39, 0.0 }
 0x143   :  { %v456_v45 = vmax.f32 %v411_v41, 0.0 }
 0x144   :  { %v475_v46 = vpack.c.bf16 %v455_v43, %v453_v42 }
 0x145   :  { %v476_v47 = vpack.c.bf16 %v456_v45, %v454_v44  ;;  %v414_v48 = vpop.f32.mrb[24].mxu0 }
 0x146   :  { %v415_v49 = vadd.f32 %v414_v48, %v1313_v21  ;;  %v416_v50 = vpop.f32.mrb[25].mxu0 }
 0x147   :  { %v417_v51 = vadd.f32 %v416_v50, %v1317_v22  ;;  %v418_v52 = vpop.f32.mrb[26].mxu0  ;;  %767 = vmatprep.mubr.bf16.mxu1 %v476_v47 }
 0x148   :  { %v419_v53 = vadd.f32 %v418_v52, %v1313_v21  ;;  %v420_v54 = vpop.f32.mrb[27].mxu0  ;;  %768 = vmatmul.mubr.bf16.gmra.mrb[20].mxu1 %v475_v46  ;;  %v457_v56 = vmax.f32 %v415_v49, 0.0 }
 0x149   :  { %v421_v55 = vadd.f32 %v420_v54, %v1317_v22  ;;  %v458_v58 = vmax.f32 %v417_v51, 0.0 }
 0x14a   :  { %v459_v57 = vmax.f32 %v419_v53, 0.0 }
 0x14b   :  { %v460_v59 = vmax.f32 %v421_v55, 0.0 }
 0x14c   :  { %v477_v60 = vpack.c.bf16 %v459_v57, %v457_v56 }
 0x14d   :  { %v478_v61 = vpack.c.bf16 %v460_v59, %v458_v58  ;;  %v424_v62 = vpop.f32.mrb[28].mxu0 }
 0x14e   :  { %v425_v63 = vadd.f32 %v424_v62, %v1313_v21  ;;  %v426_v0 = vpop.f32.mrb[29].mxu0 }
 0x14f   :  { %v427_v1 = vadd.f32 %v426_v0, %v1317_v22  ;;  %v428_v2 = vpop.f32.mrb[30].mxu0  ;;  %777 = vmatprep.mubr.bf16.mxu1 %v478_v61 }
 0x150   :  { %v429_v3 = vadd.f32 %v428_v2, %v1313_v21  ;;  %v430_v4 = vpop.f32.mrb[31].mxu0  ;;  %778 = vmatmul.mubr.bf16.gmra.mrb[24].mxu1 %v477_v60  ;;  %v461_v6 = vmax.f32 %v425_v63, 0.0  ;;  %v1360_v21 = vrot.slane %v513_v12, %v76_v20 }
 0x151   :  { %v431_v5 = vadd.f32 %v430_v4, %v1317_v22  ;;  %v462_v8 = vmax.f32 %v427_v1, 0.0 }
 0x152   :  { %v463_v7 = vmax.f32 %v429_v3, 0.0 }
 0x153   :  { %v464_v9 = vmax.f32 %v431_v5, 0.0 }
 0x154   :  { %v479_v10 = vpack.c.bf16 %v463_v7, %v461_v6 }
 0x155   :  { %v480_v11 = vpack.c.bf16 %v464_v9, %v462_v8 }
 0x157   :  { %787 = vmatprep.mubr.bf16.mxu1 %v480_v11 }
 0x158   :  { %788 = vmatmul.mubr.bf16.gmra.mrb[28].mxu1 %v479_v10 }
 0x1f3   :  { %v719_v22 = vpop.f32.mrb[0].mxu1 }
 0x1f4   :  { %v720_v14 = vadd.f32 %v719_v22, %v1356_v13  ;;  %v721_v15 = vpop.f32.mrb[1].mxu1 }
 0x1f5   :  { %v722_v16 = vadd.f32 %v721_v15, %v1360_v21  ;;  %v723_v19 = vpop.f32.mrb[2].mxu1 }
 0x1f6   :  { %798 = vst [vmem:[%s1495_s5] sm:$0xff] %v720_v14  ;;  %v724_v23 = vadd.f32 %v723_v19, %v1356_v13  ;;  %v725_v24 = vpop.f32.mrb[3].mxu1 }
 0x1f7   :  { %799 = vst [vmem:[%s1495_s5 + $0x8] sm:$0xff] %v722_v16  ;;  %v726_v17 = vadd.f32 %v725_v24, %v1360_v21 }
 0x1f8   :  { %800 = vst [vmem:[%s1495_s5 + $0x10] sm:$0xff] %v724_v23 }
 0x1f9   :  { %801 = vst [vmem:[%s1495_s5 + $0x18] sm:$0xff] %v726_v17 }
 0x1fb   :  { %v729_v18 = vpop.f32.mrb[4].mxu1 }
 0x1fc   :  { %v730_v20 = vadd.f32 %v729_v18, %v1356_v13  ;;  %v731_v25 = vpop.f32.mrb[5].mxu1 }
 0x1fd   :  { %v732_v26 = vadd.f32 %v731_v25, %v1360_v21  ;;  %v733_v27 = vpop.f32.mrb[6].mxu1 }
 0x1fe   :  { %802 = vst [vmem:[%s1495_s5 + $0x20] sm:$0xff] %v730_v20  ;;  %v734_v28 = vadd.f32 %v733_v27, %v1356_v13  ;;  %v735_v29 = vpop.f32.mrb[7].mxu1 }
 0x1ff   :  { %803 = vst [vmem:[%s1495_s5 + $0x28] sm:$0xff] %v732_v26  ;;  %v736_v30 = vadd.f32 %v735_v29, %v1360_v21 }
 0x200   :  { %804 = vst [vmem:[%s1495_s5 + $0x30] sm:$0xff] %v734_v28 }
 0x201   :  { %805 = vst [vmem:[%s1495_s5 + $0x38] sm:$0xff] %v736_v30 }
 0x203   :  { %v739_v31 = vpop.f32.mrb[8].mxu1 }
 0x204   :  { %v740_v32 = vadd.f32 %v739_v31, %v1356_v13  ;;  %v741_v33 = vpop.f32.mrb[9].mxu1 }
 0x205   :  { %v742_v34 = vadd.f32 %v741_v33, %v1360_v21  ;;  %v743_v35 = vpop.f32.mrb[10].mxu1 }
 0x206   :  { %806 = vst [vmem:[%s1495_s5 + $0x40] sm:$0xff] %v740_v32  ;;  %v744_v36 = vadd.f32 %v743_v35, %v1356_v13  ;;  %v745_v37 = vpop.f32.mrb[11].mxu1 }
 0x207   :  { %807 = vst [vmem:[%s1495_s5 + $0x48] sm:$0xff] %v742_v34  ;;  %v746_v38 = vadd.f32 %v745_v37, %v1360_v21 }
 0x208   :  { %808 = vst [vmem:[%s1495_s5 + $0x50] sm:$0xff] %v744_v36 }
 0x209   :  { %809 = vst [vmem:[%s1495_s5 + $0x58] sm:$0xff] %v746_v38 }
 0x20b   :  { %v749_v39 = vpop.f32.mrb[12].mxu1 }
 0x20c   :  { %v750_v40 = vadd.f32 %v749_v39, %v1356_v13  ;;  %v751_v41 = vpop.f32.mrb[13].mxu1 }
 0x20d   :  { %v752_v42 = vadd.f32 %v751_v41, %v1360_v21  ;;  %v753_v43 = vpop.f32.mrb[14].mxu1 }
 0x20e   :  { %810 = vst [vmem:[%s1495_s5 + $0x60] sm:$0xff] %v750_v40  ;;  %v754_v44 = vadd.f32 %v753_v43, %v1356_v13  ;;  %v755_v45 = vpop.f32.mrb[15].mxu1 }
 0x20f   :  { %811 = vst [vmem:[%s1495_s5 + $0x68] sm:$0xff] %v752_v42  ;;  %v756_v46 = vadd.f32 %v755_v45, %v1360_v21 }
 0x210   :  { %812 = vst [vmem:[%s1495_s5 + $0x70] sm:$0xff] %v754_v44 }
 0x211   :  { %813 = vst [vmem:[%s1495_s5 + $0x78] sm:$0xff] %v756_v46 }
 0x213   :  { %v759_v47 = vpop.f32.mrb[16].mxu1 }
 0x214   :  { %v760_v48 = vadd.f32 %v759_v47, %v1356_v13  ;;  %v761_v49 = vpop.f32.mrb[17].mxu1 }
 0x215   :  { %v762_v50 = vadd.f32 %v761_v49, %v1360_v21  ;;  %v763_v51 = vpop.f32.mrb[18].mxu1 }
 0x216   :  { %814 = vst [vmem:[%s1495_s5 + $0x80] sm:$0xff] %v760_v48  ;;  %v764_v52 = vadd.f32 %v763_v51, %v1356_v13  ;;  %v765_v53 = vpop.f32.mrb[19].mxu1 }
 0x217   :  { %815 = vst [vmem:[%s1495_s5 + $0x88] sm:$0xff] %v762_v50  ;;  %v766_v54 = vadd.f32 %v765_v53, %v1360_v21 }
 0x218   :  { %816 = vst [vmem:[%s1495_s5 + $0x90] sm:$0xff] %v764_v52 }
 0x219   :  { %817 = vst [vmem:[%s1495_s5 + $0x98] sm:$0xff] %v766_v54 }
 0x21b   :  { %v769_v55 = vpop.f32.mrb[20].mxu1 }
 0x21c   :  { %v770_v56 = vadd.f32 %v769_v55, %v1356_v13  ;;  %v771_v57 = vpop.f32.mrb[21].mxu1 }
 0x21d   :  { %v772_v58 = vadd.f32 %v771_v57, %v1360_v21  ;;  %v773_v59 = vpop.f32.mrb[22].mxu1 }
 0x21e   :  { %818 = vst [vmem:[%s1495_s5 + $0xa0] sm:$0xff] %v770_v56  ;;  %v774_v60 = vadd.f32 %v773_v59, %v1356_v13  ;;  %v775_v61 = vpop.f32.mrb[23].mxu1 }
 0x21f   :  { %819 = vst [vmem:[%s1495_s5 + $0xa8] sm:$0xff] %v772_v58  ;;  %v776_v62 = vadd.f32 %v775_v61, %v1360_v21 }
 0x220   :  { %820 = vst [vmem:[%s1495_s5 + $0xb0] sm:$0xff] %v774_v60 }
 0x221   :  { %821 = vst [vmem:[%s1495_s5 + $0xb8] sm:$0xff] %v776_v62 }
 0x223   :  { %v779_v63 = vpop.f32.mrb[24].mxu1 }
 0x224   :  { %v780_v0 = vadd.f32 %v779_v63, %v1356_v13  ;;  %v781_v1 = vpop.f32.mrb[25].mxu1 }
 0x225   :  { %v782_v2 = vadd.f32 %v781_v1, %v1360_v21  ;;  %v783_v3 = vpop.f32.mrb[26].mxu1 }
 0x226   :  { %822 = vst [vmem:[%s1495_s5 + $0xc0] sm:$0xff] %v780_v0  ;;  %v784_v4 = vadd.f32 %v783_v3, %v1356_v13  ;;  %v785_v5 = vpop.f32.mrb[27].mxu1 }
 0x227   :  { %823 = vst [vmem:[%s1495_s5 + $0xc8] sm:$0xff] %v782_v2  ;;  %v786_v6 = vadd.f32 %v785_v5, %v1360_v21 }
 0x228   :  { %824 = vst [vmem:[%s1495_s5 + $0xd0] sm:$0xff] %v784_v4 }
 0x229   :  { %825 = vst [vmem:[%s1495_s5 + $0xd8] sm:$0xff] %v786_v6 }
 0x22b   :  { %v789_v7 = vpop.f32.mrb[28].mxu1 }
 0x22c   :  { %v790_v8 = vadd.f32 %v789_v7, %v1356_v13  ;;  %v791_v9 = vpop.f32.mrb[29].mxu1 }
 0x22d   :  { %v792_v10 = vadd.f32 %v791_v9, %v1360_v21  ;;  %v793_v11 = vpop.f32.mrb[30].mxu1 }
 0x22e   :  { %826 = vst [vmem:[%s1495_s5 + $0xe0] sm:$0xff] %v790_v8  ;;  %v794_v12 = vadd.f32 %v793_v11, %v1356_v13  ;;  %v795_v22 = vpop.f32.mrb[31].mxu1 }
 0x22f   :  { %827 = vst [vmem:[%s1495_s5 + $0xe8] sm:$0xff] %v792_v10  ;;  %v796_v14 = vadd.f32 %v795_v22, %v1360_v21 }
 0x230   :  { %828 = vst [vmem:[%s1495_s5 + $0xf0] sm:$0xff] %v794_v12 }
 0x231   :  { %829 = vst [vmem:[%s1495_s5 + $0xf8] sm:$0xff] %v796_v14 }

// kernel: loss_pc_forward.5
= control target key start
LH: loop header
LB: loop body
LE: loop exit
PB: predicated region body
PF: predicated region fallthrough
CT: control target
= control target key end

     0   :  { %11 = vsyncpa [#allocation3], 0  ;;  %vm117_vm0 = vcmask 72704   ;;  %s5089_s0 = inlined_call_operand.vmem [shape: f32[128,256], index: 0, kind: input, shape index: {}]   ;;  %s5090_s1 = inlined_call_operand.vmem [shape: f32[128,9], index: 1, kind: input, shape index: {}]   ;;  %s5091_s2 = inlined_call_operand.vmem [shape: f32[128,256], index: 2, kind: input, shape index: {}]   ;;  %s5092_s3 = inlined_call_operand.vmem [shape: f32[128,9], index: 3, kind: input, shape index: {}]   ;;  %s5093_s4 = inlined_call_operand.hbm [shape: f32[1,1], index: 4, kind: output, shape index: {0}]   ;;  %s5094_s5 = inlined_call_operand.hbm [shape: f32[1,1], index: 5, kind: output, shape index: {1}]  }
   0x1   :  { %v53_v0 = vld [vmem:[%s5090_s1] sm:$0xff]  ;;  %v55_v1 = vld [vmem:[%s5090_s1 + $0x10] sm:$0xff]  ;;  %v2777_v2 = vld [vmem:[%s5090_s1 + $0x8] sm:$0xff] }
   0x2   :  { %v118_v3 = vsel %vm117_vm0, %v53_v0, -inf  ;;  %v124_v4 = vsel %vm117_vm0, %v55_v1, -inf  ;;  %v56_v5 = vld [vmem:[%s5090_s1 + $0x18] sm:$0xff]  ;;  %v121_v6 = vsel %vm117_vm0, %v2777_v2, -inf  ;;  %v2790_v8 = vld [vmem:[%s5090_s1 + $0x20] sm:$0xff]  ;;  %v2795_v9 = vld [vmem:[%s5090_s1 + $0x28] sm:$0xff] }
   0x3   :  { %119 = vmax.xlane.f32.xlu0 %v118_v3  ;;  %125 = vmax.xlane.f32.xlu1 %v124_v4  ;;  %v127_v7 = vsel %vm117_vm0, %v56_v5, -inf }
   0x7   :  { %122 = vmax.xlane.f32.xlu0 %v121_v6  ;;  %128 = vmax.xlane.f32.xlu1 %v127_v7 }
   0x8   :  { %12 = vsyncpa [#allocation5], 0  ;;  %v130_v10 = vsel %vm117_vm0, %v2790_v8, -inf  ;;  %v133_v11 = vsel %vm117_vm0, %v2795_v9, -inf  ;;  %v2804_v12 = vld [vmem:[%s5090_s1 + $0x30] sm:$0xff]  ;;  %v2809_v13 = vld [vmem:[%s5090_s1 + $0x38] sm:$0xff]  ;;  %v166_v32 = vlaneseq }
   0x9   :  { %v136_v14 = vsel %vm117_vm0, %v2804_v12, -inf  ;;  %v139_v15 = vsel %vm117_vm0, %v2809_v13, -inf  ;;  %v2818_v16 = vld [vmem:[%s5090_s1 + $0x40] sm:$0xff]  ;;  %v2823_v17 = vld [vmem:[%s5090_s1 + $0x48] sm:$0xff]  ;;  %v2832_v20 = vld [vmem:[%s5090_s1 + $0x50] sm:$0xff]  ;;  %s2737_s7 = smov [#allocation4]  }
   0xa   :  { %v142_v18 = vsel %vm117_vm0, %v2818_v16, -inf  ;;  %v145_v19 = vsel %vm117_vm0, %v2823_v17, -inf  ;;  %v2837_v21 = vld [vmem:[%s5090_s1 + $0x58] sm:$0xff]  ;;  %v148_v22 = vsel %vm117_vm0, %v2832_v20, -inf  ;;  %v2846_v24 = vld [vmem:[%s5090_s1 + $0x60] sm:$0xff]  ;;  %v2851_v25 = vld [vmem:[%s5090_s1 + $0x68] sm:$0xff] }
   0xb   :  { %131 = vmax.xlane.f32.xlu0 %v130_v10  ;;  %134 = vmax.xlane.f32.xlu1 %v133_v11  ;;  %v151_v23 = vsel %vm117_vm0, %v2837_v21, -inf  ;;  %v154_v26 = vsel %vm117_vm0, %v2846_v24, -inf  ;;  %v157_v27 = vsel %vm117_vm0, %v2851_v25, -inf  ;;  %v2860_v28 = vld [vmem:[%s5090_s1 + $0x70] sm:$0xff]  ;;  %v2865_v29 = vld [vmem:[%s5090_s1 + $0x78] sm:$0xff]  ;;  %v2871_v33 = vand.u32 127, %v166_v32 }
   0xc   :  { %v160_v30 = vsel %vm117_vm0, %v2860_v28, -inf  ;;  %v163_v31 = vsel %vm117_vm0, %v2865_v29, -inf  ;;  %s2398_s8 = sshll.u32 %s2737_s7, 4  ;;  %s5057_s8 = int_to_ptr.vmem [resolvable:$true] %s2398_s8 }
   0xf   :  { %137 = vmax.xlane.f32.xlu0 %v136_v14  ;;  %140 = vmax.xlane.f32.xlu1 %v139_v15 }
  0x13   :  { %143 = vmax.xlane.f32.xlu0 %v142_v18  ;;  %146 = vmax.xlane.f32.xlu1 %v145_v19 }
  0x17   :  { %149 = vmax.xlane.f32.xlu0 %v148_v22  ;;  %152 = vmax.xlane.f32.xlu1 %v151_v23 }
  0x1b   :  { %155 = vmax.xlane.f32.xlu0 %v154_v26  ;;  %158 = vmax.xlane.f32.xlu1 %v157_v27 }
  0x1f   :  { %161 = vmax.xlane.f32.xlu0 %v160_v30  ;;  %164 = vmax.xlane.f32.xlu1 %v163_v31 }
  0x90   :  { %v120_v34 = vpop.xlane.xlu0 %119  ;;  %v126_v35 = vpop.xlane.xlu1 %125 }
  0x91   :  { %vm168_vm1 = vcmp.eq.f32.partialorder %v53_v0, %v120_v34  ;;  %vm170_vm2 = vcmp.eq.f32.partialorder %v55_v1, %v126_v35 }
  0x92   :  { %v184_v36 = vsel %vm168_vm1, %v2871_v33, 9  ;;  %v186_v37 = vsel %vm170_vm2, %v2871_v33, 9 }
  0x93   :  { %v2876_v38 = vsel %vm117_vm0, %v184_v36, 2147483647  ;;  %v2879_v39 = vsel %vm117_vm0, %v186_v37, 2147483647 }
  0x94   :  { %v123_v40 = vpop.xlane.xlu0 %122  ;;  %v129_v41 = vpop.xlane.xlu1 %128  ;;  %v202_v42 = vshra.s32 %v2876_v38, 16  ;;  %v232_v43 = vshra.s32 %v2879_v39, 16 }
  0x95   :  { %vm169_vm3 = vcmp.eq.f32.partialorder %v2777_v2, %v123_v40  ;;  %vm171_vm4 = vcmp.eq.f32.partialorder %v56_v5, %v129_v41 }
  0x96   :  { %v185_v44 = vsel %vm169_vm3, %v2871_v33, 9  ;;  %v187_v45 = vsel %vm171_vm4, %v2871_v33, 9  ;;  %v2886_v46 = vcvt.s32.f32 %v202_v42  ;;  %v2895_v51 = vcvt.s32.f32 %v232_v43 }
  0x97   :  { %v2889_v47 = vsel %vm117_vm0, %v185_v44, 2147483647  ;;  %v2892_v48 = vsel %vm117_vm0, %v187_v45, 2147483647 }
  0x98   :  { %205 = vmin.xlane.f32.xlu0 %v2886_v46  ;;  %v132_v49 = vpop.xlane.xlu0 %131  ;;  %v135_v50 = vpop.xlane.xlu1 %134  ;;  %v217_v52 = vshra.s32 %v2889_v47, 16  ;;  %v247_v53 = vshra.s32 %v2892_v48, 16 }
  0x99   :  { %vm172_vm5 = vcmp.eq.f32.partialorder %v2790_v8, %v132_v49  ;;  %vm173_vm6 = vcmp.eq.f32.partialorder %v2795_v9, %v135_v50 }
  0x9a   :  { %v188_v54 = vsel %vm172_vm5, %v2871_v33, 9  ;;  %v189_v55 = vsel %vm173_vm6, %v2871_v33, 9  ;;  %v2903_v56 = vcvt.s32.f32 %v217_v52  ;;  %v2913_v61 = vcvt.s32.f32 %v247_v53 }
  0x9b   :  { %v2906_v57 = vsel %vm117_vm0, %v188_v54, 2147483647  ;;  %v2909_v58 = vsel %vm117_vm0, %v189_v55, 2147483647 }
  0x9c   :  { %235 = vmin.xlane.f32.xlu0 %v2895_v51  ;;  %220 = vmin.xlane.f32.xlu1 %v2903_v56  ;;  %v138_v59 = vpop.xlane.xlu0 %137  ;;  %v141_v60 = vpop.xlane.xlu1 %140  ;;  %v262_v62 = vshra.s32 %v2906_v57, 16  ;;  %v277_v63 = vshra.s32 %v2909_v58, 16 }
  0x9d   :  { %vm174_vm7 = vcmp.eq.f32.partialorder %v2804_v12, %v138_v59  ;;  %vm175_vm8 = vcmp.eq.f32.partialorder %v2809_v13, %v141_v60  ;;  %v201_v60 = vand.u32 65535, %v2876_v38  ;;  %v246_v38 = vand.u32 65535, %v2892_v48 }
  0x9e   :  { %v190_v0 = vsel %vm174_vm7, %v2871_v33, 9  ;;  %v191_v1 = vsel %vm175_vm8, %v2871_v33, 9  ;;  %v2921_v2 = vcvt.s32.f32 %v262_v62  ;;  %v2931_v7 = vcvt.s32.f32 %v277_v63 }
  0x9f   :  { %v2924_v3 = vsel %vm117_vm0, %v190_v0, 2147483647  ;;  %v2927_v4 = vsel %vm117_vm0, %v191_v1, 2147483647  ;;  %v203_v63 = vcvt.s32.f32 %v201_v60  ;;  %v216_v0 = vand.u32 65535, %v2889_v47 }
  0xa0   :  { %250 = vmin.xlane.f32.xlu1 %v2913_v61  ;;  %265 = vmin.xlane.f32.xlu0 %v2921_v2  ;;  %v144_v5 = vpop.xlane.xlu0 %143  ;;  %v147_v6 = vpop.xlane.xlu1 %146  ;;  %v292_v8 = vshra.s32 %v2924_v3, 16  ;;  %v307_v9 = vshra.s32 %v2927_v4, 16  ;;  %v231_v1 = vand.u32 65535, %v2879_v39  ;;  %v276_v48 = vand.u32 65535, %v2909_v58 }
  0xa1   :  { %vm176_vm9 = vcmp.eq.f32.partialorder %v2818_v16, %v144_v5  ;;  %vm177_vm10 = vcmp.eq.f32.partialorder %v2823_v17, %v147_v6  ;;  %v306_v58 = vand.u32 65535, %v2927_v4 }
  0xa2   :  { %v192_v10 = vsel %vm176_vm9, %v2871_v33, 9  ;;  %v193_v11 = vsel %vm177_vm10, %v2871_v33, 9  ;;  %v2939_v12 = vcvt.s32.f32 %v292_v8  ;;  %v2949_v18 = vcvt.s32.f32 %v307_v9 }
  0xa3   :  { %v2942_v13 = vsel %vm117_vm0, %v192_v10, 2147483647  ;;  %v2945_v14 = vsel %vm117_vm0, %v193_v11, 2147483647  ;;  %v218_v9 = vcvt.s32.f32 %v216_v0  ;;  %v233_v10 = vcvt.s32.f32 %v231_v1 }
  0xa4   :  { %280 = vmin.xlane.f32.xlu1 %v2931_v7  ;;  %295 = vmin.xlane.f32.xlu0 %v2939_v12  ;;  %v150_v15 = vpop.xlane.xlu0 %149  ;;  %v153_v16 = vpop.xlane.xlu1 %152  ;;  %v322_v17 = vshra.s32 %v2942_v13, 16  ;;  %v337_v19 = vshra.s32 %v2945_v14, 16  ;;  %v261_v11 = vand.u32 65535, %v2906_v57  ;;  %v291_v57 = vand.u32 65535, %v2924_v3 }
  0xa5   :  { %vm178_vm11 = vcmp.eq.f32.partialorder %v2832_v20, %v150_v15  ;;  %vm179_vm12 = vcmp.eq.f32.partialorder %v2837_v21, %v153_v16  ;;  %v248_v16 = vcvt.s32.f32 %v246_v38  ;;  %v321_v3 = vand.u32 65535, %v2942_v13 }
  0xa6   :  { %v194_v22 = vsel %vm178_vm11, %v2871_v33, 9  ;;  %v195_v23 = vsel %vm179_vm12, %v2871_v33, 9  ;;  %v2957_v26 = vcvt.s32.f32 %v322_v17  ;;  %v2967_v32 = vcvt.s32.f32 %v337_v19 }
  0xa7   :  { %v2960_v27 = vsel %vm117_vm0, %v194_v22, 2147483647  ;;  %v2963_v30 = vsel %vm117_vm0, %v195_v23, 2147483647  ;;  %v263_v17 = vcvt.s32.f32 %v261_v11  ;;  %v278_v23 = vcvt.s32.f32 %v276_v48  ;;  %v23_v48 = vld [vmem:[%s5089_s0 + $0x10] sm:$0xff] }
  0xa8   :  { %310 = vmin.xlane.f32.xlu1 %v2949_v18  ;;  %325 = vmin.xlane.f32.xlu0 %v2957_v26  ;;  %v156_v31 = vpop.xlane.xlu0 %155  ;;  %v159_v20 = vpop.xlane.xlu1 %158  ;;  %v352_v21 = vshra.s32 %v2960_v27, 16  ;;  %v367_v34 = vshra.s32 %v2963_v30, 16  ;;  %v336_v4 = vand.u32 65535, %v2945_v14  ;;  %v351_v13 = vand.u32 65535, %v2960_v27 }
  0xa9   :  { %vm180_vm13 = vcmp.eq.f32.partialorder %v2846_v24, %v156_v31  ;;  %vm181_vm14 = vcmp.eq.f32.partialorder %v2851_v25, %v159_v20  ;;  %v293_v31 = vcvt.s32.f32 %v291_v57  ;;  %v366_v14 = vand.u32 65535, %v2963_v30  ;;  %v26_v57 = vld [vmem:[%s5089_s0 + $0x28] sm:$0xff] }
  0xaa   :  { %v196_v35 = vsel %vm180_vm13, %v2871_v33, 9  ;;  %v197_v36 = vsel %vm181_vm14, %v2871_v33, 9  ;;  %v2975_v37 = vcvt.s32.f32 %v352_v21  ;;  %v2985_v43 = vcvt.s32.f32 %v367_v34 }
  0xab   :  { %v2978_v40 = vsel %vm117_vm0, %v196_v35, 2147483647  ;;  %v2981_v41 = vsel %vm117_vm0, %v197_v36, 2147483647  ;;  %v308_v34 = vcvt.s32.f32 %v306_v58  ;;  %v323_v35 = vcvt.s32.f32 %v321_v3  ;;  %v30_v58 = vld [vmem:[%s5089_s0 + $0x48] sm:$0xff] }
  0xac   :  { %340 = vmin.xlane.f32.xlu1 %v2967_v32  ;;  %355 = vmin.xlane.f32.xlu0 %v2975_v37  ;;  %v162_v42 = vpop.xlane.xlu0 %161  ;;  %v165_v24 = vpop.xlane.xlu1 %164  ;;  %v382_v25 = vshra.s32 %v2978_v40, 16  ;;  %v397_v44 = vshra.s32 %v2981_v41, 16  ;;  %v381_v27 = vand.u32 65535, %v2978_v40  ;;  %v396_v30 = vand.u32 65535, %v2981_v41 }
  0xad   :  { %vm182_vm15 = vcmp.eq.f32.partialorder %v2860_v28, %v162_v42  ;;  %vm183_vm1 = vcmp.eq.f32.partialorder %v2865_v29, %v165_v24  ;;  %v338_v24 = vcvt.s32.f32 %v336_v4  ;;  %v32_v4 = vld [vmem:[%s5089_s0 + $0x58] sm:$0xff] }
  0xae   :  { %v198_v45 = vsel %vm182_vm15, %v2871_v33, 9  ;;  %v199_v49 = vsel %vm183_vm1, %v2871_v33, 9  ;;  %v2993_v50 = vcvt.s32.f32 %v382_v25  ;;  %v3003_v54 = vcvt.s32.f32 %v397_v44 }
  0xaf   :  { %v2996_v52 = vsel %vm117_vm0, %v198_v45, 2147483647  ;;  %v2999_v53 = vsel %vm117_vm0, %v199_v49, 2147483647  ;;  %v353_v25 = vcvt.s32.f32 %v351_v13  ;;  %v368_v49 = vcvt.s32.f32 %v366_v14 }
  0xb0   :  { %370 = vmin.xlane.f32.xlu1 %v2985_v43  ;;  %385 = vmin.xlane.f32.xlu0 %v2993_v50  ;;  %v412_v28 = vshra.s32 %v2996_v52, 16  ;;  %v427_v29 = vshra.s32 %v2999_v53, 16  ;;  %v411_v40 = vand.u32 65535, %v2996_v52  ;;  %v398_v41 = vcvt.s32.f32 %v396_v30  ;;  %v34_v30 = vld [vmem:[%s5089_s0 + $0x68] sm:$0xff] }
  0xb1   :  { %v426_v52 = vand.u32 65535, %v2999_v53 }
  0xb2   :  { %v3007_v55 = vcvt.s32.f32 %v412_v28  ;;  %v3011_v59 = vcvt.s32.f32 %v427_v29  ;;  %v383_v28 = vcvt.s32.f32 %v381_v27  ;;  %v5095_v29 = vmov 0.0  }
  0xb3   :  { %639 = vmatprep.mubr.f32.mxu0 %v5095_v29  ;;  %v413_v0 = vcvt.s32.f32 %v411_v40  ;;  %v2482_v27 = vpack.c.bf16 %v32_v4, %v30_v58  ;;  %v36_v40 = vld [vmem:[%s5089_s0 + $0x78] sm:$0xff] }
  0xb4   :  { %400 = vmin.xlane.f32.xlu1 %v3003_v54  ;;  %415 = vmin.xlane.f32.xlu0 %v3007_v55 }
  0xb8   :  { %430 = vmin.xlane.f32.xlu1 %v3011_v59 }
 0x125   :  { %v3015_v62 = vpop.xlane.xlu0 %205 }
 0x126   :  { %vm207_vm2 = vcmp.eq.f32.partialorder %v2886_v46, %v3015_v62  ;;  %v212_v53 = vcvt.f32.s32 %v3015_v62  ;;  %v21_v62 = vld [vmem:[%s5089_s0] sm:$0xff] }
 0x127   :  { %v208_v5 = vsel %vm207_vm2, %v203_v63, inf }
 0x128   :  { %209 = vmin.xlane.f32.xlu0 %v208_v5  ;;  %v428_v5 = vcvt.s32.f32 %v426_v52  ;;  %v213_v11 = vshll.u32 %v212_v53, 16 }
 0x129   :  { %v3021_v6 = vpop.xlane.xlu1 %220  ;;  %v3023_v8 = vpop.xlane.xlu0 %235 }
 0x12a   :  { %vm222_vm3 = vcmp.eq.f32.partialorder %v2903_v56, %v3021_v6  ;;  %vm237_vm4 = vcmp.eq.f32.partialorder %v2895_v51, %v3023_v8 }
 0x12b   :  { %v223_v39 = vsel %vm222_vm3, %v218_v9, inf  ;;  %v238_v46 = vsel %vm237_vm4, %v233_v10, inf  ;;  %v227_v10 = vcvt.f32.s32 %v3021_v6 }
 0x12c   :  { %224 = vmin.xlane.f32.xlu1 %v223_v39  ;;  %239 = vmin.xlane.f32.xlu0 %v238_v46 }
 0x12d   :  { %v3031_v47 = vpop.xlane.xlu1 %250  ;;  %v3033_v15 = vpop.xlane.xlu0 %265  ;;  %v228_v39 = vshll.u32 %v227_v10, 16 }
 0x12e   :  { %vm252_vm5 = vcmp.eq.f32.partialorder %v2913_v61, %v3031_v47  ;;  %vm267_vm6 = vcmp.eq.f32.partialorder %v2921_v2, %v3033_v15  ;;  %v272_v6 = vcvt.f32.s32 %v3033_v15 }
 0x12f   :  { %v253_v51 = vsel %vm252_vm5, %v248_v16, inf  ;;  %v268_v56 = vsel %vm267_vm6, %v263_v17, inf  ;;  %v22_v16 = vld [vmem:[%s5089_s0 + $0x8] sm:$0xff] }
 0x130   :  { %254 = vmin.xlane.f32.xlu1 %v253_v51  ;;  %269 = vmin.xlane.f32.xlu0 %v268_v56  ;;  %v28_v51 = vld [vmem:[%s5089_s0 + $0x38] sm:$0xff] }
 0x131   :  { %v3041_v19 = vpop.xlane.xlu1 %280  ;;  %v3043_v22 = vpop.xlane.xlu0 %295 }
 0x132   :  { %vm282_vm7 = vcmp.eq.f32.partialorder %v2931_v7, %v3041_v19  ;;  %vm297_vm8 = vcmp.eq.f32.partialorder %v2939_v12, %v3043_v22 }
 0x133   :  { %v283_v61 = vsel %vm282_vm7, %v278_v23, inf  ;;  %v298_v2 = vsel %vm297_vm8, %v293_v31, inf  ;;  %v2476_v23 = vpack.c.bf16 %v23_v48, %v21_v62  ;;  %v27_v31 = vld [vmem:[%s5089_s0 + $0x30] sm:$0xff] }
 0x134   :  { %284 = vmin.xlane.f32.xlu1 %v283_v61  ;;  %299 = vmin.xlane.f32.xlu0 %v298_v2 }
 0x135   :  { %v3051_v20 = vpop.xlane.xlu1 %310  ;;  %v3053_v21 = vpop.xlane.xlu0 %325 }
 0x136   :  { %vm312_vm9 = vcmp.eq.f32.partialorder %v2949_v18, %v3051_v20  ;;  %vm327_vm10 = vcmp.eq.f32.partialorder %v2957_v26, %v3053_v21  ;;  %v317_v56 = vcvt.f32.s32 %v3051_v20  ;;  %v332_v2 = vcvt.f32.s32 %v3053_v21  ;;  %v31_v21 = vld [vmem:[%s5089_s0 + $0x50] sm:$0xff] }
 0x137   :  { %v313_v7 = vsel %vm312_vm9, %v308_v34, inf  ;;  %v328_v12 = vsel %vm327_vm10, %v323_v35, inf }
 0x138   :  { %314 = vmin.xlane.f32.xlu1 %v313_v7  ;;  %329 = vmin.xlane.f32.xlu0 %v328_v12 }
 0x139   :  { %v3061_v36 = vpop.xlane.xlu1 %340  ;;  %v3063_v42 = vpop.xlane.xlu0 %355 }
 0x13a   :  { %vm342_vm11 = vcmp.eq.f32.partialorder %v2967_v32, %v3061_v36  ;;  %vm357_vm12 = vcmp.eq.f32.partialorder %v2975_v37, %v3063_v42  ;;  %v347_v20 = vcvt.f32.s32 %v3061_v36  ;;  %v273_v36 = vshll.u32 %v272_v6, 16 }
 0x13b   :  { %v343_v18 = vsel %vm342_vm11, %v338_v24, inf  ;;  %v358_v26 = vsel %vm357_vm12, %v353_v25, inf  ;;  %v29_v24 = vld [vmem:[%s5089_s0 + $0x40] sm:$0xff]  ;;  %v362_v14 = vcvt.f32.s32 %v3063_v42 }
 0x13c   :  { %344 = vmin.xlane.f32.xlu1 %v343_v18  ;;  %359 = vmin.xlane.f32.xlu0 %v358_v26  ;;  %v3143_v26 = vshll.u32 %v317_v56, 16  ;;  %v2484_v52 = vpack.c.bf16 %v31_v21, %v29_v24  ;;  %v37_v56 = vld [vmem:[%s5089_s0 + $0x80] sm:$0xff] }
 0x13d   :  { %v3071_v44 = vpop.xlane.xlu1 %370  ;;  %v3073_v45 = vpop.xlane.xlu0 %385  ;;  %v3168_v53 = vshll.u32 %v362_v14, 16  ;;  %v41_v21 = vld [vmem:[%s5089_s0 + $0xa0] sm:$0xff] }
 0x13e   :  { %vm372_vm13 = vcmp.eq.f32.partialorder %v2985_v43, %v3071_v44  ;;  %vm387_vm14 = vcmp.eq.f32.partialorder %v2993_v50, %v3073_v45  ;;  %v377_v62 = vcvt.f32.s32 %v3071_v44  ;;  %v39_v44 = vld [vmem:[%s5089_s0 + $0x90] sm:$0xff] }
 0x13f   :  { %v373_v32 = vsel %vm372_vm13, %v368_v49, inf  ;;  %v388_v37 = vsel %vm387_vm14, %v383_v28, inf }
 0x140   :  { %374 = vmin.xlane.f32.xlu1 %v373_v32  ;;  %389 = vmin.xlane.f32.xlu0 %v388_v37  ;;  %v3151_v32 = vshll.u32 %v332_v2, 16  ;;  %v3153_v37 = vshll.u32 %v347_v20, 16  ;;  %v42_v2 = vld [vmem:[%s5089_s0 + $0xa8] sm:$0xff]  ;;  %v44_v20 = vld [vmem:[%s5089_s0 + $0xb8] sm:$0xff] }
 0x141   :  { %v3082_v60 = vpop.xlane.xlu1 %400  ;;  %v3084_v63 = vpop.xlane.xlu0 %415 }
 0x142   :  { %vm402_vm15 = vcmp.eq.f32.partialorder %v3003_v54, %v3082_v60  ;;  %vm417_vm1 = vcmp.eq.f32.partialorder %v3007_v55, %v3084_v63  ;;  %v242_v54 = vcvt.f32.s32 %v3023_v8  ;;  %v257_v55 = vcvt.f32.s32 %v3031_v47 }
 0x143   :  { %v403_v43 = vsel %vm402_vm15, %v398_v41, inf  ;;  %v418_v50 = vsel %vm417_vm1, %v413_v0, inf  ;;  %v287_v8 = vcvt.f32.s32 %v3041_v19  ;;  %v302_v47 = vcvt.f32.s32 %v3043_v22  ;;  %v25_v22 = vld [vmem:[%s5089_s0 + $0x20] sm:$0xff] }
 0x144   :  { %404 = vmin.xlane.f32.xlu1 %v403_v43  ;;  %419 = vmin.xlane.f32.xlu0 %v418_v50  ;;  %v2478_v19 = vpack.c.bf16 %v28_v51, %v26_v57  ;;  %v243_v3 = vshll.u32 %v242_v54, 16  ;;  %v258_v61 = vshll.u32 %v257_v55, 16  ;;  %v2480_v12 = vpack.c.bf16 %v27_v31, %v25_v22 }
 0x145   :  { %v3091_v1 = vpop.xlane.xlu1 %430  ;;  %v288_v25 = vshll.u32 %v287_v8, 16  ;;  %v303_v18 = vshll.u32 %v302_v47, 16  ;;  %v2486_v55 = vpack.c.bf16 %v36_v40, %v34_v30  ;;  %v392_v31 = vcvt.f32.s32 %v3073_v45 }
 0x146   :  { %vm432_vm2 = vcmp.eq.f32.partialorder %v3011_v59, %v3091_v1  ;;  %v24_v59 = vld [vmem:[%s5089_s0 + $0x18] sm:$0xff] }
 0x147   :  { %v433_v9 = vsel %vm432_vm2, %v428_v5, inf  ;;  %v2474_v17 = vpack.c.bf16 %v24_v59, %v22_v16  ;;  %v33_v5 = vld [vmem:[%s5089_s0 + $0x60] sm:$0xff]  ;;  %v38_v16 = vld [vmem:[%s5089_s0 + $0x88] sm:$0xff]  ;;  %v40_v59 = vld [vmem:[%s5089_s0 + $0x98] sm:$0xff] }
 0x148   :  { %434 = vmin.xlane.f32.xlu1 %v433_v9  ;;  %v35_v9 = vld [vmem:[%s5089_s0 + $0x70] sm:$0xff]  ;;  %v2490_v22 = vpack.c.bf16 %v40_v59, %v38_v16  ;;  %v422_v59 = vcvt.f32.s32 %v3084_v63 }
 0x149   :  { %2475 = vmatprep.subr.bf16.mxu0 %v2474_v17  ;;  %v2488_v48 = vpack.c.bf16 %v35_v9, %v33_v5 }
 0x14a   :  { %2477 = vmatpush1.bf16.msra.mxu0 %v2476_v23 }
 0x14b   :  { %2479 = vmatprep.subr.bf16.mxu0 %v2478_v19 }
 0x14e   :  { %2481 = vmatpush1.bf16.msra.mxu0 %v2480_v12 }
 0x14f   :  { %2483 = vmatprep.subr.bf16.mxu0 %v2482_v27 }
 0x152   :  { %2485 = vmatpush1.bf16.msra.mxu0 %v2484_v52  ;;  %v407_v52 = vcvt.f32.s32 %v3082_v60  ;;  %v47_v60 = vld [vmem:[%s5089_s0 + $0xd0] sm:$0xff] }
 0x153   :  { %2487 = vmatprep.subr.bf16.mxu0 %v2486_v55 }
 0x156   :  { %2489 = vmatpush1.bf16.msra.mxu0 %v2488_v48  ;;  %v408_v48 = vshll.u32 %v407_v52, 16 }
 0x157   :  { %2491 = vmatprep.subr.bf16.mxu0 %v2490_v22  ;;  %v51_v22 = vld [vmem:[%s5089_s0 + $0xf0] sm:$0xff] }
 0x1b5   :  { %v210_v38 = vpop.xlane.xlu0 %209 }
 0x1b6   :  { %v211_v46 = vcvt.f32.s32 %v210_v38 }
 0x1b8   :  { %v214_v15 = vadd.s32 %v213_v11, %v211_v46 }
 0x1b9   :  { %v225_v34 = vpop.xlane.xlu1 %224  ;;  %v240_v35 = vpop.xlane.xlu0 %239 }
 0x1ba   :  { %v226_v13 = vcvt.f32.s32 %v225_v34  ;;  %v241_v7 = vcvt.f32.s32 %v240_v35  ;;  %vm440_vm3 = vcmp.eq.s32.totalorder %v214_v15, %v2871_v33  ;;  %v3212_v34 = vshll.u32 %v377_v62, 16 }
 0x1bb   :  { %v3158_v0 = vsel %vm440_vm3, 1.0, %v5095_v29 }
 0x1bc   :  { %v229_v49 = vadd.s32 %v228_v39, %v226_v13  ;;  %v244_v28 = vadd.s32 %v243_v3, %v241_v7  ;;  %v488_v39 = vsel %vm117_vm0, %v3158_v0, 0.0  ;;  %v2492_v7 = vpack.c.bf16 %v39_v44, %v37_v56 }
 0x1bd   :  { %v255_v42 = vpop.xlane.xlu1 %254  ;;  %v270_v41 = vpop.xlane.xlu0 %269 }
 0x1be   :  { %vm441_vm4 = vcmp.eq.s32.totalorder %v229_v49, %v2871_v33  ;;  %vm442_vm5 = vcmp.eq.s32.totalorder %v244_v28, %v2871_v33  ;;  %v256_v43 = vcvt.f32.s32 %v255_v42  ;;  %v271_v50 = vcvt.f32.s32 %v270_v41  ;;  %v46_v42 = vld [vmem:[%s5089_s0 + $0xc8] sm:$0xff]  ;;  %v48_v41 = vld [vmem:[%s5089_s0 + $0xd8] sm:$0xff]  ;;  %2493 = vmatpush1.bf16.msra.mxu0 %v2492_v7 }
 0x1bf   :  { %v3171_v10 = vsel %vm442_vm5, 1.0, %v5095_v29  ;;  %v3174_v54 = vsel %vm441_vm4, 1.0, %v5095_v29  ;;  %v393_v49 = vshll.u32 %v392_v31, 16  ;;  %v2498_v16 = vpack.c.bf16 %v48_v41, %v46_v42 }
 0x1c0   :  { %v259_v38 = vadd.s32 %v258_v61, %v256_v43  ;;  %v274_v11 = vadd.s32 %v273_v36, %v271_v50  ;;  %v489_v46 = vsel %vm117_vm0, %v3174_v54, 0.0  ;;  %v491_v17 = vsel %vm117_vm0, %v3171_v10, 0.0  ;;  %v43_v36 = vld [vmem:[%s5089_s0 + $0xb0] sm:$0xff] }
 0x1c1   :  { %v285_v6 = vpop.xlane.xlu1 %284  ;;  %v300_v8 = vpop.xlane.xlu0 %299  ;;  %v490_v47 = vadd.f32 %v489_v46, %v488_v39  ;;  %v2496_v55 = vpack.c.bf16 %v43_v36, %v41_v21  ;;  %vm803_vm4 = vcmask 1040384  }
 0x1c2   :  { %vm443_vm6 = vcmp.eq.s32.totalorder %v259_v38, %v2871_v33  ;;  %vm444_vm7 = vcmp.eq.s32.totalorder %v274_v11, %v2871_v33  ;;  %v286_v57 = vcvt.f32.s32 %v285_v6  ;;  %v301_v51 = vcvt.f32.s32 %v300_v8  ;;  %v45_v38 = vld [vmem:[%s5089_s0 + $0xc0] sm:$0xff] }
 0x1c3   :  { %v3198_v15 = vsel %vm443_vm6, 1.0, %v5095_v29  ;;  %v3201_v23 = vsel %vm444_vm7, 1.0, %v5095_v29  ;;  %v492_v19 = vadd.f32 %v491_v17, %v490_v47  ;;  %v50_v47 = vld [vmem:[%s5089_s0 + $0xe8] sm:$0xff]  ;;  %v52_v17 = vld [vmem:[%s5089_s0 + $0xf8] sm:$0xff]  ;;  %v2500_v44 = vpack.c.bf16 %v47_v60, %v45_v38 }
 0x1c4   :  { %v493_v58 = vsel %vm117_vm0, %v3198_v15, 0.0  ;;  %v289_v3 = vadd.s32 %v288_v25, %v286_v57  ;;  %v304_v61 = vadd.s32 %v303_v18, %v301_v51  ;;  %v495_v35 = vsel %vm117_vm0, %v3201_v23, 0.0 }
 0x1c5   :  { %v315_v4 = vpop.xlane.xlu1 %314  ;;  %v330_v45 = vpop.xlane.xlu0 %329  ;;  %v494_v13 = vadd.f32 %v493_v58, %v492_v19  ;;  %v2494_v18 = vpack.c.bf16 %v44_v20, %v42_v2  ;;  %v49_v19 = vld [vmem:[%s5089_s0 + $0xe0] sm:$0xff]  ;;  %v423_v2 = vshll.u32 %v422_v59, 16 }
 0x1c6   :  { %vm445_vm8 = vcmp.eq.s32.totalorder %v289_v3, %v2871_v33  ;;  %vm446_vm9 = vcmp.eq.s32.totalorder %v304_v61, %v2871_v33  ;;  %v316_v12 = vcvt.f32.s32 %v315_v4  ;;  %v331_v24 = vcvt.f32.s32 %v330_v45 }
 0x1c7   :  { %v3225_v25 = vsel %vm445_vm8, 1.0, %v5095_v29  ;;  %v3228_v14 = vsel %vm446_vm9, 1.0, %v5095_v29  ;;  %v496_v27 = vadd.f32 %v495_v35, %v494_v13  ;;  %2495 = vmatprep.subr.bf16.mxu0 %v2494_v18  ;;  %v2502_v61 = vpack.c.bf16 %v52_v17, %v50_v47 }
 0x1c8   :  { %v497_v28 = vsel %vm117_vm0, %v3225_v25, 0.0  ;;  %v319_v30 = vadd.s32 %v3143_v26, %v316_v12  ;;  %v334_v40 = vadd.s32 %v3151_v32, %v331_v24  ;;  %v499_v43 = vsel %vm117_vm0, %v3228_v14, 0.0  ;;  %2497 = vmatpush1.bf16.msra.mxu0 %v2496_v55 }
 0x1c9   :  { %v345_v50 = vpop.xlane.xlu1 %344  ;;  %v360_v5 = vpop.xlane.xlu0 %359  ;;  %v498_v9 = vadd.f32 %v497_v28, %v496_v27  ;;  %2499 = vmatprep.subr.bf16.mxu0 %v2498_v16  ;;  %v437_v45 = vcvt.f32.s32 %v3091_v1  ;;  %v2504_v21 = vpack.c.bf16 %v51_v22, %v49_v19  ;;  %v3321_v19 = vld [vmem:[%s5091_s2 + $0x48] sm:$0xff] }
 0x1ca   :  { %vm447_vm10 = vcmp.eq.s32.totalorder %v319_v30, %v2871_v33  ;;  %vm448_vm11 = vcmp.eq.s32.totalorder %v334_v40, %v2871_v33  ;;  %v346_v26 = vcvt.f32.s32 %v345_v50  ;;  %v361_v32 = vcvt.f32.s32 %v360_v5 }
 0x1cb   :  { %v3252_v11 = vsel %vm447_vm10, 1.0, %v5095_v29  ;;  %v3255_v39 = vsel %vm448_vm11, 1.0, %v5095_v29  ;;  %v500_v46 = vadd.f32 %v499_v43, %v498_v9  ;;  %v438_v40 = vshll.u32 %v437_v45, 16 }
 0x1cc   :  { %v501_v62 = vsel %vm117_vm0, %v3252_v11, 0.0  ;;  %v349_v6 = vadd.s32 %v3153_v37, %v346_v26  ;;  %v364_v8 = vadd.s32 %v3168_v53, %v361_v32  ;;  %v503_v57 = vsel %vm117_vm0, %v3255_v39, 0.0  ;;  %2501 = vmatpush1.bf16.msra.mxu0 %v2500_v44 }
 0x1cd   :  { %v375_v63 = vpop.xlane.xlu1 %374  ;;  %v390_v51 = vpop.xlane.xlu0 %389  ;;  %v502_v56 = vadd.f32 %v501_v62, %v500_v46  ;;  %2503 = vmatprep.subr.bf16.mxu0 %v2502_v61 }
 0x1ce   :  { %vm449_vm12 = vcmp.eq.s32.totalorder %v349_v6, %v2871_v33  ;;  %vm450_vm13 = vcmp.eq.s32.totalorder %v364_v8, %v2871_v33  ;;  %v376_v37 = vcvt.f32.s32 %v375_v63  ;;  %v391_v53 = vcvt.f32.s32 %v390_v51 }
 0x1cf   :  { %v3279_v31 = vsel %vm449_vm12, 1.0, %v5095_v29  ;;  %v3282_v58 = vsel %vm450_vm13, 1.0, %v5095_v29  ;;  %v504_v3 = vadd.f32 %v503_v57, %v502_v56 }
 0x1d0   :  { %v505_v20 = vsel %vm117_vm0, %v3279_v31, 0.0  ;;  %v379_v35 = vadd.s32 %v3212_v34, %v376_v37  ;;  %v394_v4 = vadd.s32 %v393_v49, %v391_v53  ;;  %v507_v13 = vsel %vm117_vm0, %v3282_v58, 0.0  ;;  %2505 = vmatpush1.bf16.msra.mxu0 %v2504_v21  ;;  %v3316_v53 = vld [vmem:[%s5091_s2 + $0x40] sm:$0xff] }
 0x1d1   :  { %v405_v7 = vpop.xlane.xlu1 %404  ;;  %v420_v12 = vpop.xlane.xlu0 %419  ;;  %v506_v24 = vadd.f32 %v505_v20, %v504_v3  ;;  %v661_v3 = vmul.f32 %v3321_v19, %v3321_v19 }
 0x1d2   :  { %vm451_vm14 = vcmp.eq.s32.totalorder %v379_v35, %v2871_v33  ;;  %vm452_vm15 = vcmp.eq.s32.totalorder %v394_v4, %v2871_v33  ;;  %v406_v36 = vcvt.f32.s32 %v405_v7  ;;  %v421_v27 = vcvt.f32.s32 %v420_v12 }
 0x1d3   :  { %v3293_v18 = vsel %vm451_vm14, 1.0, %v5095_v29  ;;  %v3296_v34 = vsel %vm452_vm15, 1.0, %v5095_v29  ;;  %v508_v1 = vadd.f32 %v507_v13, %v506_v24  ;;  %v3356_v24 = vld [vmem:[%s5092_s3 + $0x20] sm:$0xff] }
 0x1d4   :  { %v509_v49 = vsel %vm117_vm0, %v3293_v18, 0.0  ;;  %v409_v28 = vadd.s32 %v408_v48, %v406_v36  ;;  %v424_v30 = vadd.s32 %v423_v2, %v421_v27  ;;  %v511_v52 = vsel %vm117_vm0, %v3296_v34, 0.0  ;;  %v3363_v36 = vld [vmem:[%s5092_s3 + $0x50] sm:$0xff]  ;;  %v3368_v27 = vld [vmem:[%s5092_s3 + $0x58] sm:$0xff] }
 0x1d5   :  { %v435_v42 = vpop.xlane.xlu1 %434  ;;  %v510_v41 = vadd.f32 %v509_v49, %v508_v1  ;;  %v1294_v21 = vsel %vm117_vm0, %v3356_v24, -inf  ;;  %5155 = vst [vmem:[#allocation8_spill] sm:$0xff] %v3368_v27  ;;  %v3377_v1 = vld [vmem:[%s5092_s3 + $0x60] sm:$0xff] }
 0x1d6   :  { %vm453_vm1 = vcmp.eq.s32.totalorder %v409_v28, %v2871_v33  ;;  %vm454_vm2 = vcmp.eq.s32.totalorder %v424_v30, %v2871_v33  ;;  %v436_v43 = vcvt.f32.s32 %v435_v42  ;;  %5156 = vst [vmem:[#allocation9_spill] sm:$0xff] %v3377_v1  ;;  %v1318_v49 = vsel %vm117_vm0, %v3377_v1, -inf  ;;  %v3384_v28 = vld [vmem:[%s5092_s3 + $0x68] sm:$0xff] }
 0x1d7   :  { %v2423_v50 = vsel %vm453_vm1, 1.0, %v5095_v29  ;;  %v2424_v5 = vsel %vm454_vm2, 1.0, %v5095_v29  ;;  %v512_v9 = vadd.f32 %v511_v52, %v510_v41  ;;  %5157 = vst [vmem:[#allocation10_spill] sm:$0xff] %v3384_v28  ;;  %v1321_v30 = vsel %vm117_vm0, %v3384_v28, -inf  ;;  %v3398_v41 = vld [vmem:[%s5092_s3 + $0x78] sm:$0xff] }
 0x1d8   :  { %v513_v55 = vsel %vm117_vm0, %v2423_v50, 0.0  ;;  %v439_v26 = vadd.s32 %v438_v40, %v436_v43  ;;  %v515_v38 = vsel %vm117_vm0, %v2424_v5, 0.0  ;;  %v3391_v40 = vld [vmem:[%s5092_s3 + $0x70] sm:$0xff]  ;;  %5159 = vst [vmem:[#allocation12_spill] sm:$0xff] %v3398_v41  ;;  %v1327_v52 = vsel %vm117_vm0, %v3398_v41, -inf }
 0x1d9   :  { %v514_v32 = vadd.f32 %v513_v55, %v512_v9  ;;  %5158 = vst [vmem:[#allocation11_spill] sm:$0xff] %v3391_v40  ;;  %v1324_v42 = vsel %vm117_vm0, %v3391_v40, -inf }
 0x1da   :  { %vm455_vm3 = vcmp.eq.s32.totalorder %v439_v26, %v2871_v33 }
 0x1db   :  { %v2425_v60 = vsel %vm455_vm3, 1.0, %v5095_v29  ;;  %v516_v46 = vadd.f32 %v515_v38, %v514_v32  ;;  %v3415_v32 = vld [vmem:[%s5091_s2] sm:$0xff]  ;;  %v3420_v38 = vld [vmem:[%s5091_s2 + $0x8] sm:$0xff] }
 0x1dc   :  { %v517_v16 = vsel %vm117_vm0, %v2425_v60, 0.0 }
 0x1dd   :  { %v518_v59 = vadd.f32 %v517_v16, %v516_v46 }
 0x1df   :  { %v519_v62 = vrot.slane %v518_v59, 4 }
 0x1e1   :  { %v520_v6 = vadd.f32 %v519_v62, %v518_v59  ;;  %v652_v62 = vmul.f32 %v3415_v32, %v3415_v32 }
 0x1e3   :  { %v521_v8 = vrot.slane %v520_v6, 2 }
 0x1e5   :  { %v522_v47 = vadd.f32 %v521_v8, %v520_v6  ;;  %v653_v6 = vmul.f32 %v3420_v38, %v3420_v38 }
 0x1e7   :  { %v523_v17 = vrot.slane %v522_v47, 1 }
 0x1e9   :  { %v524_v48 = vadd.f32 %v523_v17, %v522_v47  ;;  %v3435_v17 = vld [vmem:[%s5091_s2 + $0x60] sm:$0xff] }
 0x1eb   :  { %v525_v57 = vmax.f32 %v524_v48, 1.0  ;;  %v3440_v48 = vld [vmem:[%s5091_s2 + $0x68] sm:$0xff] }
 0x1ed   :  { %2515 = vrcp.f32 %v525_v57 }
 0x1f7   :  { %v2516_v63 = vpop.eup %2515 }
 0x1f8   :  { %v527_v51 = vmul.f32 %v2516_v63, %v3158_v0  ;;  %v541_v56 = vmul.f32 %v2516_v63, %v2424_v5  ;;  %v542_v44 = vmul.f32 %v2516_v63, %v2425_v60  ;;  %v528_v37 = vmul.f32 %v2516_v63, %v3174_v54 }
 0x1f9   :  { %v529_v22 = vmul.f32 %v2516_v63, %v3171_v10  ;;  %v660_v0 = vmul.f32 %v3316_v53, %v3316_v53  ;;  %v530_v61 = vmul.f32 %v2516_v63, %v3198_v15  ;;  %v531_v2 = vmul.f32 %v2516_v63, %v3201_v23 }
 0x1fa   :  { %543 = vxpose.xlu0.b32.start [1/16] (narrow) %v527_v51, 16  ;;  %v532_v20 = vmul.f32 %v2516_v63, %v3225_v25  ;;  %v533_v10 = vmul.f32 %v2516_v63, %v3228_v14  ;;  %v534_v35 = vmul.f32 %v2516_v63, %v3252_v11  ;;  %v535_v4 = vmul.f32 %v2516_v63, %v3255_v39 }
 0x1fb   :  { %v696_v54 = vadd.f32 %v661_v3, %v660_v0  ;;  %v536_v45 = vmul.f32 %v2516_v63, %v3279_v31  ;;  %v537_v15 = vmul.f32 %v2516_v63, %v3282_v58  ;;  %v538_v23 = vmul.f32 %v2516_v63, %v3293_v18  ;;  %v3342_v31 = vld [vmem:[%s5091_s2 + $0x50] sm:$0xff]  ;;  %v3347_v58 = vld [vmem:[%s5091_s2 + $0x58] sm:$0xff] }
 0x1fc   :  { %v539_v25 = vmul.f32 %v2516_v63, %v3296_v34  ;;  %v540_v14 = vmul.f32 %v2516_v63, %v2423_v50  ;;  %v662_v13 = vmul.f32 %v3342_v31, %v3342_v31  ;;  %v663_v7 = vmul.f32 %v3347_v58, %v3347_v58 }
 0x1fd   :  { %697 = vadd.xlane.f32.xlu1 %v696_v54  ;;  %v1312_v18 = vsel %vm117_vm0, %v3363_v36, -inf  ;;  %v1315_v34 = vsel %vm117_vm0, %v3368_v27, -inf  ;;  %v684_v51 = vadd.f32 %v653_v6, %v652_v62 }
 0x1fe   :  { %544 = vxpose.xlu0.b32.cont [2/16] (narrow) %v528_v37, 16  ;;  %v699_v12 = vadd.f32 %v663_v7, %v662_v13  ;;  %v3449_v37 = vld [vmem:[%s5091_s2 + $0x10] sm:$0xff] }
 0x1ff   :  { %v654_v3 = vmul.f32 %v3449_v37, %v3449_v37 }
 0x201   :  { %700 = vadd.xlane.f32.xlu1 %v699_v12 }
 0x202   :  { %545 = vxpose.xlu0.b32.cont [3/16] (narrow) %v529_v22, 16  ;;  %v3454_v22 = vld [vmem:[%s5091_s2 + $0x18] sm:$0xff] }
 0x203   :  { %v655_v54 = vmul.f32 %v3454_v22, %v3454_v22 }
 0x206   :  { %546 = vxpose.xlu0.b32.cont [4/16] (narrow) %v530_v61, 16  ;;  %v3463_v61 = vld [vmem:[%s5091_s2 + $0x70] sm:$0xff] }
 0x20a   :  { %547 = vxpose.xlu0.b32.cont [5/16] (narrow) %v531_v2, 16  ;;  %v3468_v2 = vld [vmem:[%s5091_s2 + $0x78] sm:$0xff] }
 0x20e   :  { %548 = vxpose.xlu0.b32.cont [6/16] (narrow) %v532_v20, 16  ;;  %v687_v20 = vadd.f32 %v655_v54, %v654_v3 }
 0x212   :  { %549 = vxpose.xlu0.b32.cont [7/16] (narrow) %v533_v10, 16  ;;  %v666_v10 = vmul.f32 %v3463_v61, %v3463_v61 }
 0x216   :  { %550 = vxpose.xlu0.b32.cont [8/16] (narrow) %v534_v35, 16  ;;  %v667_v35 = vmul.f32 %v3468_v2, %v3468_v2 }
 0x21a   :  { %551 = vxpose.xlu0.b32.cont [9/16] (narrow) %v535_v4, 16  ;;  %v3477_v4 = vld [vmem:[%s5091_s2 + $0x20] sm:$0xff] }
 0x21e   :  { %552 = vxpose.xlu0.b32.cont [10/16] (narrow) %v536_v45, 16  ;;  %v3482_v45 = vld [vmem:[%s5091_s2 + $0x28] sm:$0xff] }
 0x222   :  { %553 = vxpose.xlu0.b32.cont [11/16] (narrow) %v537_v15, 16  ;;  %v705_v15 = vadd.f32 %v667_v35, %v666_v10  ;;  %v3584_v10 = vld [vmem:[%s5091_s2 + $0xd8] sm:$0xff] }
 0x226   :  { %554 = vxpose.xlu0.b32.cont [12/16] (narrow) %v538_v23, 16  ;;  %v656_v23 = vmul.f32 %v3477_v4, %v3477_v4 }
 0x22a   :  { %555 = vxpose.xlu0.b32.cont [13/16] (narrow) %v539_v25, 16  ;;  %v657_v25 = vmul.f32 %v3482_v45, %v3482_v45 }
 0x22c   :  { %v690_v13 = vadd.f32 %v657_v25, %v656_v23  ;;  %v679_v23 = vmul.f32 %v3584_v10, %v3584_v10  ;;  %v3593_v25 = vld [vmem:[%s5091_s2 + $0xe0] sm:$0xff] }
 0x22e   :  { %556 = vxpose.xlu0.b32.cont [14/16] (narrow) %v540_v14, 16 }
 0x232   :  { %557 = vxpose.xlu0.b32.cont [15/16] (narrow) %v541_v56, 16  ;;  %v664_v56 = vmul.f32 %v3435_v17, %v3435_v17 }
 0x236   :  { %558 = vxpose.xlu0.b32.end [16/16] (narrow) %v542_v44, 16  ;;  %v665_v44 = vmul.f32 %v3440_v48, %v3440_v48 }
 0x238   :  { %v702_v0 = vadd.f32 %v665_v44, %v664_v56  ;;  %v3565_v56 = vld [vmem:[%s5091_s2 + $0xc0] sm:$0xff]  ;;  %v3570_v44 = vld [vmem:[%s5091_s2 + $0xc8] sm:$0xff] }
 0x239   :  { %v676_v3 = vmul.f32 %v3565_v56, %v3565_v56  ;;  %v677_v54 = vmul.f32 %v3570_v44, %v3570_v44 }
 0x23b   :  { %v720_v35 = vadd.f32 %v677_v54, %v676_v3  ;;  %v3649_v54 = vld [vmem:[%s5092_s3 + $0x28] sm:$0xff] }
 0x263   :  { %1295 = vmax.xlane.f32.xlu0 %v1294_v21 }
 0x267   :  { %1313 = vmax.xlane.f32.xlu0 %v1312_v18  ;;  %v3509_v18 = vld [vmem:[%s5091_s2 + $0x30] sm:$0xff] }
 0x26b   :  { %1316 = vmax.xlane.f32.xlu0 %v1315_v34  ;;  %v3514_v34 = vld [vmem:[%s5091_s2 + $0x38] sm:$0xff] }
 0x26f   :  { %1319 = vmax.xlane.f32.xlu0 %v1318_v49 }
 0x273   :  { %1322 = vmax.xlane.f32.xlu0 %v1321_v30  ;;  %v658_v30 = vmul.f32 %v3509_v18, %v3509_v18 }
 0x277   :  { %1325 = vmax.xlane.f32.xlu0 %v1324_v42  ;;  %v659_v42 = vmul.f32 %v3514_v34, %v3514_v34 }
 0x27a   :  { %v559_v11 = vpop.trf.xlu0 }
 0x27b   :  { %640 = vmatmul.mubr.f32.vlgmr.msra.gmra.mrb[0].mxu0 %v559_v11  ;;  %1328 = vmax.xlane.f32.xlu0 %v1327_v52  ;;  %v3493_v11 = vld [vmem:[%s5091_s2 + $0x80] sm:$0xff]  ;;  %v3528_v52 = vld [vmem:[%s5091_s2 + $0x98] sm:$0xff] }
 0x27c   :  { %645 = vmatprep.mubr.f32.mxu0 %v5095_v29  ;;  %v668_v7 = vmul.f32 %v3493_v11, %v3493_v11 }
 0x27e   :  { %v560_v39 = vpop.trf.xlu0 }
 0x27f   :  { %646 = vmatmul.mubr.f32.gmra.mrb[2].mxu0 %v560_v39  ;;  %v3498_v39 = vld [vmem:[%s5091_s2 + $0x88] sm:$0xff] }
 0x280   :  { %v669_v12 = vmul.f32 %v3498_v39, %v3498_v39 }
 0x282   :  { %v708_v49 = vadd.f32 %v669_v12, %v668_v7  ;;  %v680_v12 = vmul.f32 %v3593_v25, %v3593_v25 }
 0x28a   :  { %v698_v8 = vpop.xlane.xlu1 %697 }
 0x28b   :  { %v736_v63 = vmax.f32 %v698_v8, 1e-24  ;;  %v3551_v8 = vld [vmem:[%s5091_s2 + $0xb0] sm:$0xff] }
 0x28d   :  { %2517 = vrsqrt.f32 %v736_v63  ;;  %v674_v63 = vmul.f32 %v3551_v8, %v3551_v8 }
 0x297   :  { %v3488_v14 = vpop.eup %2517 }
 0x298   :  { %v773_v21 = vmul.f32 %v3488_v14, %v3321_v19  ;;  %v3523_v19 = vld [vmem:[%s5091_s2 + $0x90] sm:$0xff] }
 0x29a   :  { %901 = vmatprep.mubr.f32.mxu1 %v773_v21 }
 0x34e   :  { %v3402_v43 = vpop.f32.mrb[0].mxu0 }
 0x34f   :  { %v796_v50 = vmul.f32 %v3402_v43, %v3402_v43  ;;  %v3406_v5 = vpop.f32.mrb[1].mxu0 }
 0x350   :  { %v797_v9 = vmul.f32 %v3406_v5, %v3406_v5 }
 0x352   :  { %v3410_v55 = vpop.f32.mrb[2].mxu0  ;;  %v800_v26 = vadd.f32 %v797_v9, %v796_v50  ;;  %v693_v50 = vadd.f32 %v659_v42, %v658_v30  ;;  %v670_v9 = vmul.f32 %v3523_v19, %v3523_v19  ;;  %v3612_v30 = vld [vmem:[%s5091_s2 + $0xf8] sm:$0xff] }
 0x353   :  { %v798_v60 = vmul.f32 %v3410_v55, %v3410_v55  ;;  %v3424_v46 = vpop.f32.mrb[3].mxu0 }
 0x354   :  { %v799_v16 = vmul.f32 %v3424_v46, %v3424_v46  ;;  %801 = vadd.xlane.f32.xlu1 %v800_v26  ;;  %v671_v26 = vmul.f32 %v3528_v52, %v3528_v52 }
 0x355   :  { %v804_v59 = vsel %vm803_vm4, %v798_v60, 0.0  ;;  %v3537_v60 = vld [vmem:[%s5091_s2 + $0xa0] sm:$0xff] }
 0x356   :  { %v805_v47 = vsel %vm803_vm4, %v799_v16, 0.0  ;;  %v3542_v16 = vld [vmem:[%s5091_s2 + $0xa8] sm:$0xff]  ;;  %v672_v62 = vmul.f32 %v3537_v60, %v3537_v60 }
 0x357   :  { %v806_v57 = vadd.f32 %v805_v47, %v804_v59  ;;  %v711_v59 = vadd.f32 %v671_v26, %v670_v9  ;;  %v673_v6 = vmul.f32 %v3542_v16, %v3542_v16  ;;  %v3556_v47 = vld [vmem:[%s5091_s2 + $0xb8] sm:$0xff]  ;;  %v683_v9 = vmul.f32 %v3612_v30, %v3612_v30 }
 0x359   :  { %807 = vadd.xlane.f32.xlu1 %v806_v57  ;;  %v714_v57 = vadd.f32 %v673_v6, %v672_v62  ;;  %v3628_v6 = vld [vmem:[%s5092_s3 + $0x8] sm:$0xff] }
 0x35d   :  { %685 = vadd.xlane.f32.xlu1 %v684_v51  ;;  %v675_v51 = vmul.f32 %v3556_v47, %v3556_v47 }
 0x361   :  { %703 = vadd.xlane.f32.xlu1 %v702_v0  ;;  %v717_v0 = vadd.f32 %v675_v51, %v674_v63  ;;  %v3635_v63 = vld [vmem:[%s5092_s3 + $0x10] sm:$0xff] }
 0x362   :  { %v1288_v51 = vsel %vm117_vm0, %v3635_v63, -inf }
 0x365   :  { %688 = vadd.xlane.f32.xlu1 %v687_v20  ;;  %v3579_v20 = vld [vmem:[%s5091_s2 + $0xd0] sm:$0xff] }
 0x369   :  { %706 = vadd.xlane.f32.xlu1 %v705_v15  ;;  %v678_v15 = vmul.f32 %v3579_v20, %v3579_v20 }
 0x36b   :  { %v723_v7 = vadd.f32 %v679_v23, %v678_v15  ;;  %v3656_v15 = vld [vmem:[%s5092_s3 + $0x30] sm:$0xff] }
 0x36c   :  { %v1300_v23 = vsel %vm117_vm0, %v3656_v15, -inf }
 0x36d   :  { %691 = vadd.xlane.f32.xlu1 %v690_v13  ;;  %v3598_v13 = vld [vmem:[%s5091_s2 + $0xe8] sm:$0xff] }
 0x36e   :  { %v681_v21 = vmul.f32 %v3598_v13, %v3598_v13 }
 0x370   :  { %v726_v42 = vadd.f32 %v681_v21, %v680_v12  ;;  %v3670_v21 = vld [vmem:[%s5092_s3 + $0x40] sm:$0xff] }
 0x371   :  { %709 = vadd.xlane.f32.xlu1 %v708_v49  ;;  %v3607_v49 = vld [vmem:[%s5091_s2 + $0xf0] sm:$0xff] }
 0x375   :  { %694 = vadd.xlane.f32.xlu1 %v693_v50  ;;  %v682_v50 = vmul.f32 %v3607_v49, %v3607_v49 }
 0x377   :  { %v729_v26 = vadd.f32 %v683_v9, %v682_v50  ;;  %v3677_v50 = vld [vmem:[%s5092_s3 + $0x48] sm:$0xff] }
 0x378   :  { %v1309_v9 = vsel %vm117_vm0, %v3677_v50, -inf }
 0x379   :  { %712 = vadd.xlane.f32.xlu1 %v711_v59  ;;  %v3621_v59 = vld [vmem:[%s5092_s3] sm:$0xff] }
 0x37a   :  { %v1282_v62 = vsel %vm117_vm0, %v3621_v59, -inf }
 0x37d   :  { %715 = vadd.xlane.f32.xlu1 %v714_v57  ;;  %v1285_v57 = vsel %vm117_vm0, %v3628_v6, -inf }
 0x381   :  { %718 = vadd.xlane.f32.xlu1 %v717_v0  ;;  %v3642_v0 = vld [vmem:[%s5092_s3 + $0x18] sm:$0xff] }
 0x382   :  { %v1291_v3 = vsel %vm117_vm0, %v3642_v0, -inf }
 0x385   :  { %721 = vadd.xlane.f32.xlu1 %v720_v35  ;;  %v1297_v35 = vsel %vm117_vm0, %v3649_v54, -inf }
 0x389   :  { %724 = vadd.xlane.f32.xlu1 %v723_v7  ;;  %v3663_v7 = vld [vmem:[%s5092_s3 + $0x38] sm:$0xff] }
 0x38a   :  { %v1303_v12 = vsel %vm117_vm0, %v3663_v7, -inf }
 0x38d   :  { %727 = vadd.xlane.f32.xlu1 %v726_v42  ;;  %v1306_v42 = vsel %vm117_vm0, %v3670_v21, -inf }
 0x391   :  { %730 = vadd.xlane.f32.xlu1 %v729_v26  ;;  %v701_v26 = vpop.xlane.xlu1 %700 }
 0x395   :  { %1283 = vmax.xlane.f32.xlu1 %v1282_v62 }
 0x399   :  { %1286 = vmax.xlane.f32.xlu1 %v1285_v57 }
 0x39d   :  { %1289 = vmax.xlane.f32.xlu1 %v1288_v51 }
 0x3a1   :  { %1292 = vmax.xlane.f32.xlu1 %v1291_v3 }
 0x3a5   :  { %1298 = vmax.xlane.f32.xlu1 %v1297_v35 }
 0x3a9   :  { %1301 = vmax.xlane.f32.xlu1 %v1300_v23 }
 0x3ad   :  { %1304 = vmax.xlane.f32.xlu1 %v1303_v12  ;;  %v737_v12 = vmax.f32 %v701_v26, 1e-24 }
 0x3b1   :  { %1307 = vmax.xlane.f32.xlu1 %v1306_v42 }
 0x3b5   :  { %1310 = vmax.xlane.f32.xlu1 %v1309_v9 }
 0x3e1   :  { %v802_v62 = vpop.xlane.xlu1 %801 }
 0x3e2   :  { %v809_v57 = vmax.f32 %v802_v62, 1e-24 }
 0x3e4   :  { %2519 = vrsqrt.f32 %v809_v57 }
 0x3e6   :  { %v808_v51 = vpop.xlane.xlu1 %807 }
 0x3e7   :  { %v810_v3 = vmax.f32 %v808_v51, 1e-24 }
 0x3e9   :  { %2521 = vrsqrt.f32 %v810_v3 }
 0x3ea   :  { %v686_v35 = vpop.xlane.xlu1 %685 }
 0x3eb   :  { %v732_v23 = vmax.f32 %v686_v35, 1e-24 }
 0x3ed   :  { %2523 = vrsqrt.f32 %v732_v23 }
 0x3ee   :  { %v704_v29 = vpop.xlane.xlu1 %703  ;;  %v2520_v41 = vpop.eup %2519  ;;  %2525 = vrsqrt.f32 %v737_v12 }
 0x3ef   :  { %v738_v40 = vmax.f32 %v704_v29, 1e-24  ;;  %v814_v9 = vmul.f32 %v2520_v41, %v3406_v5  ;;  %v813_v62 = vmul.f32 %v2520_v41, %v3402_v43 }
 0x3f2   :  { %v689_v42 = vpop.xlane.xlu1 %688 }
 0x3f3   :  { %v2522_v28 = vpop.eup %2521  ;;  %v733_v1 = vmax.f32 %v689_v42, 1e-24 }
 0x3f4   :  { %v816_v27 = vmul.f32 %v2522_v28, %v3424_v46  ;;  %v815_v57 = vmul.f32 %v2522_v28, %v3410_v55 }
 0x3f5   :  { %2527 = vrsqrt.f32 %v733_v1 }
 0x3f6   :  { %2529 = vrsqrt.f32 %v738_v40  ;;  %v707_v51 = vpop.xlane.xlu1 %706  ;;  %v2506_v3 = vpack.c.bf16 %v816_v27, %v814_v9  ;;  %v2508_v26 = vpack.c.bf16 %v815_v57, %v813_v62  ;;  %v772_v27 = vmul.f32 %v3488_v14, %v3316_v53 }
 0x3f7   :  { %v2524_v35 = vpop.eup %2523  ;;  %v739_v23 = vmax.f32 %v707_v51, 1e-24 }
 0x3f8   :  { %2507 = vmatprep.subr.bf16.mxu0 %v2506_v3  ;;  %2510 = vmatprep.subr.bf16.mxu1 %v2506_v3  ;;  %v765_v29 = vmul.f32 %v2524_v35, %v3420_v38  ;;  %v2526_v41 = vpop.eup %2525  ;;  %v764_v1 = vmul.f32 %v2524_v35, %v3415_v32 }
 0x3f9   :  { %2509 = vmatpush1.bf16.xpose.msra.mxu0 %v2508_v26  ;;  %2511 = vmatpush1.bf16.xpose.msra.mxu1 %v2508_v26  ;;  %2531 = vrsqrt.f32 %v739_v23  ;;  %v775_v55 = vmul.f32 %v2526_v41, %v3347_v58  ;;  %v774_v32 = vmul.f32 %v2526_v41, %v3342_v31 }
 0x3fa   :  { %881 = vmatprep.mubr.f32.mxu0 %v765_v29  ;;  %v692_v5 = vpop.xlane.xlu1 %691 }
 0x3fb   :  { %v734_v46 = vmax.f32 %v692_v5, 1e-24 }
 0x3fd   :  { %2533 = vrsqrt.f32 %v734_v46 }
 0x3fe   :  { %v710_v28 = vpop.xlane.xlu1 %709 }
 0x3ff   :  { %v2528_v40 = vpop.eup %2527  ;;  %v740_v43 = vmax.f32 %v710_v28, 1e-24 }
 0x400   :  { %v2530_v12 = vpop.eup %2529  ;;  %882 = vmatmul.mubr.f32.vlgmr.msra.gmra.mrb[4].mxu0 %v764_v1  ;;  %902 = vmatmul.mubr.f32.vlgmr.msra.gmra.mrb[0].mxu1 %v772_v27  ;;  %v767_v38 = vmul.f32 %v2528_v40, %v3454_v22  ;;  %v766_v9 = vmul.f32 %v2528_v40, %v3449_v37 }
 0x401   :  { %2535 = vrsqrt.f32 %v740_v43  ;;  %906 = vmatprep.mubr.f32.mxu1 %v775_v55  ;;  %v777_v53 = vmul.f32 %v2530_v12, %v3440_v48  ;;  %v776_v57 = vmul.f32 %v2530_v12, %v3435_v17 }
 0x402   :  { %886 = vmatprep.mubr.f32.mxu0 %v767_v38  ;;  %v695_v42 = vpop.xlane.xlu1 %694 }
 0x403   :  { %v735_v62 = vmax.f32 %v695_v42, 1e-24  ;;  %v2532_v14 = vpop.eup %2531 }
 0x404   :  { %887 = vmatmul.mubr.f32.gmra.mrb[6].mxu0 %v766_v9  ;;  %907 = vmatmul.mubr.f32.gmra.mrb[2].mxu1 %v774_v32  ;;  %v779_v3 = vmul.f32 %v2532_v14, %v3468_v2  ;;  %v778_v26 = vmul.f32 %v2532_v14, %v3463_v61 }
 0x405   :  { %2537 = vrsqrt.f32 %v735_v62  ;;  %911 = vmatprep.mubr.f32.mxu1 %v777_v53 }
 0x406   :  { %v713_v58 = vpop.xlane.xlu1 %712 }
 0x407   :  { %v2534_v22 = vpop.eup %2533  ;;  %v741_v51 = vmax.f32 %v713_v58, 1e-24  ;;  %v1296_v58 = vpop.xlane.xlu0 %1295 }
 0x408   :  { %912 = vmatmul.mubr.f32.gmra.mrb[4].mxu1 %v776_v57  ;;  %v769_v37 = vmul.f32 %v2534_v22, %v3482_v45  ;;  %v768_v31 = vmul.f32 %v2534_v22, %v3477_v4  ;;  %vm1334_vm7 = vcmp.eq.f32.partialorder %v3356_v24, %v1296_v58 }
 0x409   :  { %2539 = vrsqrt.f32 %v741_v51  ;;  %916 = vmatprep.mubr.f32.mxu1 %v779_v3 }
 0x40a   :  { %891 = vmatprep.mubr.f32.mxu0 %v769_v37  ;;  %v716_v48 = vpop.xlane.xlu1 %715 }
 0x40b   :  { %v2536_v35 = vpop.eup %2535  ;;  %v742_v23 = vmax.f32 %v716_v48, 1e-24  ;;  %892 = vmatmul.mubr.f32.gmra.mrb[8].mxu0 %v768_v31 }
 0x40c   :  { %917 = vmatmul.mubr.f32.gmra.mrb[6].mxu1 %v778_v26  ;;  %v781_v17 = vmul.f32 %v2536_v35, %v3498_v39  ;;  %v780_v29 = vmul.f32 %v2536_v35, %v3493_v11  ;;  %v3739_v26 = vsub.f32 %v3356_v24, %v1296_v58 }
 0x40d   :  { %2541 = vrsqrt.f32 %v742_v23 }
 0x40e   :  { %921 = vmatprep.mubr.f32.mxu1 %v781_v17  ;;  %v719_v2 = vpop.xlane.xlu1 %718  ;;  %5160 = vst [vmem:[#allocation13_spill] sm:$0xff] %v3739_v26 }
 0x40f   :  { %v2538_v45 = vpop.eup %2537  ;;  %v743_v5 = vmax.f32 %v719_v2, 1e-24 }
 0x410   :  { %922 = vmatmul.mubr.f32.gmra.mrb[8].mxu1 %v780_v29  ;;  %v771_v4 = vmul.f32 %v2538_v45, %v3514_v34  ;;  %v770_v46 = vmul.f32 %v2538_v45, %v3509_v18 }
 0x411   :  { %2543 = vrsqrt.f32 %v743_v5  ;;  %v1626_v5 = vmul.f32 1.442695, %v3739_v26 }
 0x412   :  { %896 = vmatprep.mubr.f32.mxu0 %v771_v4  ;;  %v722_v61 = vpop.xlane.xlu1 %721 }
 0x413   :  { %v2540_v41 = vpop.eup %2539  ;;  %v744_v28 = vmax.f32 %v722_v61, 1e-24  ;;  %897 = vmatmul.mubr.f32.gmra.mrb[10].mxu0 %v770_v46 }
 0x414   :  { %v783_v39 = vmul.f32 %v2540_v41, %v3528_v52  ;;  %v782_v1 = vmul.f32 %v2540_v41, %v3523_v19 }
 0x415   :  { %2545 = vrsqrt.f32 %v744_v28 }
 0x416   :  { %926 = vmatprep.mubr.f32.mxu1 %v783_v39  ;;  %v725_v11 = vpop.xlane.xlu1 %724 }
 0x417   :  { %v2542_v27 = vpop.eup %2541  ;;  %v745_v40 = vmax.f32 %v725_v11, 1e-24  ;;  %927 = vmatmul.mubr.f32.gmra.mrb[10].mxu1 %v782_v1 }
 0x418   :  { %v785_v34 = vmul.f32 %v2542_v27, %v3542_v16  ;;  %v784_v18 = vmul.f32 %v2542_v27, %v3537_v60 }
 0x419   :  { %2547 = vrsqrt.f32 %v745_v40 }
 0x41a   :  { %931 = vmatprep.mubr.f32.mxu1 %v785_v34  ;;  %v728_v43 = vpop.xlane.xlu1 %727 }
 0x41b   :  { %v2544_v55 = vpop.eup %2543  ;;  %v746_v12 = vmax.f32 %v728_v43, 1e-24  ;;  %932 = vmatmul.mubr.f32.gmra.mrb[12].mxu1 %v784_v18  ;;  %v3783_v43 = vpop.xlane.xlu0 %1313 }
 0x41c   :  { %v787_v52 = vmul.f32 %v2544_v55, %v3556_v47  ;;  %v786_v19 = vmul.f32 %v2544_v55, %v3551_v8  ;;  %vm1340_vm14 = vcmp.eq.f32.partialorder %v3363_v36, %v3783_v43 }
 0x41d   :  { %2549 = vrsqrt.f32 %v746_v12 }
 0x41e   :  { %936 = vmatprep.mubr.f32.mxu1 %v787_v52  ;;  %v731_v38 = vpop.xlane.xlu1 %730 }
 0x41f   :  { %v2546_v42 = vpop.eup %2545  ;;  %v747_v9 = vmax.f32 %v731_v38, 1e-24  ;;  %937 = vmatmul.mubr.f32.gmra.mrb[14].mxu1 %v786_v19 }
 0x420   :  { %v789_v16 = vmul.f32 %v2546_v42, %v3570_v44  ;;  %v788_v60 = vmul.f32 %v2546_v42, %v3565_v56 }
 0x421   :  { %2551 = vrsqrt.f32 %v747_v9 }
 0x422   :  { %941 = vmatprep.mubr.f32.mxu1 %v789_v16  ;;  %v1284_v32 = vpop.xlane.xlu1 %1283 }
 0x423   :  { %v2548_v62 = vpop.eup %2547  ;;  %vm1330_vm5 = vcmp.eq.f32.partialorder %v3621_v59, %v1284_v32  ;;  %v3713_v47 = vsub.f32 %v3621_v59, %v1284_v32  ;;  %942 = vmatmul.mubr.f32.gmra.mrb[16].mxu1 %v788_v60 }
 0x424   :  { %v791_v8 = vmul.f32 %v2548_v62, %v3584_v10  ;;  %v790_v53 = vmul.f32 %v2548_v62, %v3579_v20  ;;  %v1346_v14 = vsel %vm1330_vm5, %v2871_v33, 9 }
 0x425   :  { %v1618_v44 = vmul.f32 1.442695, %v3713_v47  ;;  %v3720_v56 = vsel %vm117_vm0, %v1346_v14, 2147483647 }
 0x426   :  { %946 = vmatprep.mubr.f32.mxu1 %v791_v8  ;;  %v3722_v57 = vpop.xlane.xlu1 %1286  ;;  %v1364_v22 = vshra.s32 %v3720_v56, 16  ;;  %v3808_v8 = vpop.xlane.xlu0 %1316 }
 0x427   :  { %v2550_v59 = vpop.eup %2549  ;;  %2553 = vpow2.f32 %v1618_v44  ;;  %vm1331_vm6 = vcmp.eq.f32.partialorder %v3628_v6, %v3722_v57  ;;  %947 = vmatmul.mubr.f32.gmra.mrb[18].mxu1 %v790_v53 }
 0x428   :  { %v1347_v20 = vsel %vm1331_vm6, %v2871_v33, 9  ;;  %v793_v10 = vmul.f32 %v2550_v59, %v3598_v13  ;;  %v3730_v51 = vcvt.s32.f32 %v1364_v22  ;;  %v792_v3 = vmul.f32 %v2550_v59, %v3593_v25 }
 0x429   :  { %v3734_v37 = vsel %vm117_vm0, %v1347_v20, 2147483647  ;;  %v1350_v25 = vsel %vm1334_vm7, %v2871_v33, 9 }
 0x42a   :  { %951 = vmatprep.mubr.f32.mxu1 %v793_v10  ;;  %1367 = vmin.xlane.f32.xlu0 %v3730_v51  ;;  %v1290_v31 = vpop.xlane.xlu1 %1289  ;;  %v1379_v48 = vshra.s32 %v3734_v37, 16 }
 0x42b   :  { %v2552_v35 = vpop.eup %2551  ;;  %vm1332_vm8 = vcmp.eq.f32.partialorder %v3635_v63, %v1290_v31  ;;  %v3743_v13 = vsub.f32 %v3635_v63, %v1290_v31  ;;  %952 = vmatmul.mubr.f32.gmra.mrb[20].mxu1 %v792_v3 }
 0x42c   :  { %v795_v23 = vmul.f32 %v2552_v35, %v3612_v30  ;;  %v3747_v17 = vcvt.s32.f32 %v1379_v48  ;;  %v794_v2 = vmul.f32 %v2552_v35, %v3607_v49  ;;  %v1348_v29 = vsel %vm1332_vm8, %v2871_v33, 9  ;;  %v3827_v48 = vpop.xlane.xlu0 %1319 }
 0x42d   :  { %v1622_v24 = vmul.f32 1.442695, %v3743_v13  ;;  %v3753_v45 = vsel %vm117_vm0, %v1348_v29, 2147483647  ;;  %v3763_v30 = vsel %vm117_vm0, %v1350_v25, 2147483647 }
 0x42e   :  { %956 = vmatprep.mubr.f32.mxu1 %v795_v23  ;;  %1382 = vmin.xlane.f32.xlu1 %v3747_v17  ;;  %v1293_v63 = vpop.xlane.xlu1 %1292  ;;  %v1394_v4 = vshra.s32 %v3753_v45, 16  ;;  %v1424_v27 = vshra.s32 %v3763_v30, 16 }
 0x42f   :  { %2555 = vpow2.f32 %v1622_v24  ;;  %vm1333_vm9 = vcmp.eq.f32.partialorder %v3642_v0, %v1293_v63  ;;  %v3760_v49 = vsub.f32 %v3642_v0, %v1293_v63  ;;  %957 = vmatmul.mubr.f32.gmra.mrb[22].mxu1 %v794_v2 }
 0x430   :  { %v3765_v46 = vcvt.s32.f32 %v1394_v4  ;;  %v1349_v61 = vsel %vm1333_vm9, %v2871_v33, 9  ;;  %2557 = vpow2.f32 %v1626_v5  ;;  %v3790_v52 = vcvt.s32.f32 %v1424_v27  ;;  %v5163_v4 = vld [vmem:[#allocation8_spill] sm:$0xff]  ;;  %v5164_v27 = vld [vmem:[#allocation9_spill] sm:$0xff] }
 0x431   :  { %5161 = vst [vmem:[#allocation14_spill] sm:$0xff] %v3760_v49  ;;  %v2554_v41 = vpop.eup %2553  ;;  %v1624_v28 = vmul.f32 1.442695, %v3760_v49  ;;  %v3770_v39 = vsel %vm117_vm0, %v1349_v61, 2147483647  ;;  %v1356_v5 = vsel %vm1340_vm14, %v2871_v33, 9  ;;  %vm1341_vm1 = vcmp.eq.f32.partialorder %v5163_v4, %v3808_v8 }
 0x432   :  { %1397 = vmin.xlane.f32.xlu0 %v3765_v46  ;;  %v1650_v0 = vsel %vm117_vm0, %v2554_v41, 0.0  ;;  %v1409_v1 = vshra.s32 %v3770_v39, 16  ;;  %v1299_v11 = vpop.xlane.xlu1 %1298  ;;  %vm1342_vm2 = vcmp.eq.f32.partialorder %v5164_v27, %v3827_v48 }
 0x433   :  { %2559 = vpow2.f32 %v1624_v28  ;;  %1651 = vadd.xlane.f32.xlu1 %v1650_v0  ;;  %vm1335_vm10 = vcmp.eq.f32.partialorder %v3649_v54, %v1299_v11  ;;  %v3778_v40 = vsub.f32 %v3649_v54, %v1299_v11  ;;  %v3854_v0 = vpop.xlane.xlu0 %1322  ;;  %v1357_v11 = vsel %vm1341_vm1, %v2871_v33, 9 }
 0x434   :  { %v3780_v34 = vcvt.s32.f32 %v1409_v1  ;;  %v1351_v18 = vsel %vm1335_vm10, %v2871_v33, 9  ;;  %v3857_v1 = vsel %vm117_vm0, %v1356_v5, 2147483647 }
 0x435   :  { %5162 = vst [vmem:[#allocation15_spill] sm:$0xff] %v3778_v40  ;;  %v1628_v55 = vmul.f32 1.442695, %v3778_v40  ;;  %v3787_v12 = vsel %vm117_vm0, %v1351_v18, 2147483647 }
 0x436   :  { %1412 = vmin.xlane.f32.xlu0 %v3780_v34  ;;  %v3792_v19 = vpop.xlane.xlu1 %1301  ;;  %v1439_v54 = vshra.s32 %v3787_v12, 16 }
 0x437   :  { %2561 = vpow2.f32 %v1628_v55  ;;  %vm1336_vm11 = vcmp.eq.f32.partialorder %v3656_v15, %v3792_v19  ;;  %v1514_v55 = vshra.s32 %v3857_v1, 16 }
 0x438   :  { %v1352_v38 = vsel %vm1336_vm11, %v2871_v33, 9  ;;  %v3803_v60 = vcvt.s32.f32 %v1439_v54  ;;  %v3867_v54 = vsel %vm117_vm0, %v1357_v11, 2147483647 }
 0x439   :  { %v2556_v42 = vpop.eup %2555  ;;  %v3799_v9 = vsel %vm117_vm0, %v1352_v38, 2147483647  ;;  %v3869_v38 = vpop.xlane.xlu0 %1325 }
 0x43a   :  { %1427 = vmin.xlane.f32.xlu0 %v3790_v52  ;;  %v1656_v16 = vsel %vm117_vm0, %v2556_v42, 0.0  ;;  %v3805_v32 = vpop.xlane.xlu1 %1304  ;;  %v1454_v62 = vshra.s32 %v3799_v9, 16  ;;  %v2558_v53 = vpop.eup %2557  ;;  %v1358_v42 = vsel %vm1342_vm2, %v2871_v33, 9 }
 0x43b   :  { %1657 = vadd.xlane.f32.xlu1 %v1656_v16  ;;  %vm1337_vm12 = vcmp.eq.f32.partialorder %v3663_v7, %v3805_v32  ;;  %v1662_v3 = vsel %vm117_vm0, %v2558_v53, 0.0  ;;  %v5165_v16 = vld [vmem:[#allocation10_spill] sm:$0xff]  ;;  %v1529_v53 = vshra.s32 %v3867_v54, 16 }
 0x43c   :  { %v1353_v14 = vsel %vm1337_vm12, %v2871_v33, 9  ;;  %v3818_v59 = vcvt.s32.f32 %v1454_v62  ;;  %vm1343_vm3 = vcmp.eq.f32.partialorder %v5165_v16, %v3854_v0  ;;  %v3875_v62 = vcvt.s32.f32 %v1514_v55 }
 0x43d   :  { %v2560_v58 = vpop.eup %2559  ;;  %v3814_v44 = vsel %vm117_vm0, %v1353_v14, 2147483647  ;;  %v3879_v14 = vsel %vm117_vm0, %v1358_v42, 2147483647 }
 0x43e   :  { %1442 = vmin.xlane.f32.xlu0 %v3803_v60  ;;  %v1659_v22 = vsel %vm117_vm0, %v2560_v58, 0.0  ;;  %v3820_v20 = vpop.xlane.xlu1 %1307  ;;  %v1469_v10 = vshra.s32 %v3814_v44, 16  ;;  %v1359_v58 = vsel %vm1343_vm3, %v2871_v33, 9 }
 0x43f   :  { %1660 = vadd.xlane.f32.xlu1 %v1659_v22  ;;  %vm1338_vm13 = vcmp.eq.f32.partialorder %v3670_v21, %v3820_v20  ;;  %v5166_v22 = vld [vmem:[#allocation11_spill] sm:$0xff] }
 0x440   :  { %v1354_v31 = vsel %vm1338_vm13, %v2871_v33, 9  ;;  %v3835_v23 = vcvt.s32.f32 %v1469_v10  ;;  %vm1344_vm4 = vcmp.eq.f32.partialorder %v5166_v22, %v3869_v38  ;;  %v3885_v10 = vcvt.s32.f32 %v1529_v53 }
 0x441   :  { %v2562_v35 = vpop.eup %2561  ;;  %v3832_v25 = vsel %vm117_vm0, %v1354_v31, 2147483647  ;;  %v3888_v31 = vpop.xlane.xlu0 %1328 }
 0x442   :  { %1457 = vmin.xlane.f32.xlu0 %v3818_v59  ;;  %v3837_v2 = vpop.xlane.xlu1 %1310  ;;  %v1484_v29 = vshra.s32 %v3832_v25, 16  ;;  %v1665_v24 = vsel %vm117_vm0, %v2562_v35, 0.0  ;;  %v3891_v35 = vsel %vm117_vm0, %v1359_v58, 2147483647 }
 0x443   :  { %1663 = vadd.xlane.f32.xlu1 %v1662_v3  ;;  %vm1339_vm15 = vcmp.eq.f32.partialorder %v3677_v50, %v3837_v2  ;;  %v1544_v3 = vshra.s32 %v3879_v14, 16 }
 0x444   :  { %v1355_v63 = vsel %vm1339_vm15, %v2871_v33, 9  ;;  %v3851_v41 = vcvt.s32.f32 %v1484_v29  ;;  %v3895_v29 = vsub.f32 %v3628_v6, %v3722_v57 }
 0x445   :  { %v3848_v61 = vsel %vm117_vm0, %v1355_v63, 2147483647  ;;  %v5168_v63 = vld [vmem:[#allocation12_spill] sm:$0xff]  ;;  %v3901_v5 = vcvt.s32.f32 %v1544_v3 }
 0x446   :  { %1472 = vmin.xlane.f32.xlu0 %v3835_v23  ;;  %v1499_v28 = vshra.s32 %v3848_v61, 16  ;;  %5167 = vst [vmem:[#allocation8_spill] sm:$0xff] %v3895_v29  ;;  %vm1345_vm5 = vcmp.eq.f32.partialorder %v5168_v63, %v3888_v31  ;;  %v1620_v27 = vmul.f32 1.442695, %v3895_v29 }
 0x447   :  { %1666 = vadd.xlane.f32.xlu1 %v1665_v24  ;;  %v1360_v24 = vsel %vm1344_vm4, %v2871_v33, 9  ;;  %v1361_v55 = vsel %vm1345_vm5, %v2871_v33, 9 }
 0x448   :  { %v3863_v18 = vcvt.s32.f32 %v1499_v28  ;;  %v1559_v28 = vshra.s32 %v3891_v35, 16  ;;  %v3905_v11 = vsel %vm117_vm0, %v1360_v24, 2147483647  ;;  %v3914_v42 = vsel %vm117_vm0, %v1361_v55, 2147483647 }
 0x449   :  { %v1574_v57 = vshra.s32 %v3905_v11, 16  ;;  %2563 = vpow2.f32 %v1620_v27  ;;  %v1589_v53 = vshra.s32 %v3914_v42, 16  ;;  %v3927_v24 = vsub.f32 %v3656_v15, %v3792_v19 }
 0x44a   :  { %1487 = vmin.xlane.f32.xlu0 %v3851_v41  ;;  %v3910_v6 = vcvt.s32.f32 %v1559_v28  ;;  %v3932_v28 = vsub.f32 %v3663_v7, %v3805_v32  ;;  %v3937_v55 = vsub.f32 %v3670_v21, %v3820_v20  ;;  %v3942_v15 = vsub.f32 %v3677_v50, %v3837_v2 }
 0x44b   :  { %v3917_v16 = vcvt.s32.f32 %v1574_v57  ;;  %v3921_v58 = vcvt.s32.f32 %v1589_v53  ;;  %5170 = vst [vmem:[#allocation10_spill] sm:$0xff] %v3927_v24  ;;  %v1630_v63 = vmul.f32 1.442695, %v3927_v24  ;;  %v1363_v19 = vand.u32 65535, %v3720_v56 }
 0x44c   :  { %5171 = vst [vmem:[#allocation11_spill] sm:$0xff] %v3932_v28  ;;  %v1632_v27 = vmul.f32 1.442695, %v3932_v28  ;;  %5172 = vst [vmem:[#allocation12_spill] sm:$0xff] %v3937_v55  ;;  %v1634_v57 = vmul.f32 1.442695, %v3937_v55  ;;  %v3951_v21 = vsub.f32 %v3363_v36, %v3783_v43  ;;  %v3962_v36 = vsub.f32 %v5163_v4, %v3808_v8 }
 0x44d   :  { %5169 = vst [vmem:[#allocation9_spill] sm:$0xff] %v3921_v58  ;;  %2565 = vpow2.f32 %v1630_v63  ;;  %5173 = vst [vmem:[#allocation16_spill] sm:$0xff] %v3942_v15  ;;  %v1636_v7 = vmul.f32 1.442695, %v3942_v15  ;;  %v1365_v53 = vcvt.s32.f32 %v1363_v19  ;;  %v1393_v56 = vand.u32 65535, %v3753_v45 }
 0x44e   :  { %1502 = vmin.xlane.f32.xlu0 %v3863_v18  ;;  %2567 = vpow2.f32 %v1632_v27  ;;  %5174 = vst [vmem:[#allocation17_spill] sm:$0xff] %v3951_v21  ;;  %5175 = vst [vmem:[#allocation18_spill] sm:$0xff] %v3962_v36  ;;  %v1408_v45 = vand.u32 65535, %v3770_v39 }
 0x44f   :  { %2569 = vpow2.f32 %v1634_v57  ;;  %v1395_v57 = vcvt.s32.f32 %v1393_v56 }
 0x450   :  { %2571 = vpow2.f32 %v1636_v7 }
 0x452   :  { %1517 = vmin.xlane.f32.xlu0 %v3875_v62 }
 0x453   :  { %v2564_v22 = vpop.eup %2563 }
 0x454   :  { %v1653_v3 = vsel %vm117_vm0, %v2564_v22, 0.0  ;;  %v1378_v22 = vand.u32 65535, %v3734_v37  ;;  %v1638_v37 = vmul.f32 1.442695, %v3951_v21 }
 0x456   :  { %1532 = vmin.xlane.f32.xlu0 %v3885_v10  ;;  %v1380_v63 = vcvt.s32.f32 %v1378_v22  ;;  %2573 = vpow2.f32 %v1638_v37  ;;  %v1410_v22 = vcvt.s32.f32 %v1408_v45  ;;  %v1453_v37 = vand.u32 65535, %v3799_v9 }
 0x45a   :  { %1547 = vmin.xlane.f32.xlu0 %v3901_v5 }
 0x45e   :  { %1562 = vmin.xlane.f32.xlu0 %v3910_v6 }
 0x462   :  { %1577 = vmin.xlane.f32.xlu0 %v3917_v16 }
 0x466   :  { %1592 = vmin.xlane.f32.xlu0 %v3921_v58 }
 0x46a   :  { %1654 = vadd.xlane.f32.xlu0 %v1653_v3  ;;  %v2566_v3 = vpop.eup %2565 }
 0x46b   :  { %v1668_v2 = vsel %vm117_vm0, %v2566_v3, 0.0  ;;  %v2568_v27 = vpop.eup %2567 }
 0x46c   :  { %v1671_v19 = vsel %vm117_vm0, %v2568_v27, 0.0  ;;  %v2570_v7 = vpop.eup %2569 }
 0x46d   :  { %v1674_v39 = vsel %vm117_vm0, %v2570_v7, 0.0  ;;  %v2572_v3 = vpop.eup %2571  ;;  %v1468_v7 = vand.u32 65535, %v3814_v44 }
 0x46e   :  { %v2574_v27 = vpop.eup %2573 }
 0x4b7   :  { %v3946_v32 = vpop.xlane.xlu0 %1367 }
 0x4b8   :  { %vm1369_vm6 = vcmp.eq.f32.partialorder %v3730_v51, %v3946_v32 }
 0x4b9   :  { %v1370_v50 = vsel %vm1369_vm6, %v1365_v53, inf  ;;  %v1640_v53 = vmul.f32 1.442695, %v3962_v36 }
 0x4ba   :  { %1371 = vmin.xlane.f32.xlu1 %v1370_v50 }
 0x4bb   :  { %v3956_v20 = vpop.xlane.xlu1 %1382  ;;  %2575 = vpow2.f32 %v1640_v53 }
 0x4bc   :  { %vm1384_vm7 = vcmp.eq.f32.partialorder %v3747_v17, %v3956_v20  ;;  %v1423_v17 = vand.u32 65535, %v3763_v30  ;;  %v1677_v30 = vsel %vm117_vm0, %v2572_v3, 0.0  ;;  %v1470_v3 = vcvt.s32.f32 %v1468_v7 }
 0x4bd   :  { %v1385_v51 = vsel %vm1384_vm7, %v1380_v63, inf }
 0x4be   :  { %1669 = vadd.xlane.f32.xlu1 %v1668_v2  ;;  %1386 = vmin.xlane.f32.xlu0 %v1385_v51  ;;  %v1425_v2 = vcvt.s32.f32 %v1423_v17  ;;  %v1483_v17 = vand.u32 65535, %v3832_v25 }
 0x4bf   :  { %v3967_v43 = vpop.xlane.xlu0 %1397 }
 0x4c0   :  { %vm1399_vm8 = vcmp.eq.f32.partialorder %v3765_v46, %v3967_v43  ;;  %v1438_v46 = vand.u32 65535, %v3787_v12  ;;  %v1680_v12 = vsel %vm117_vm0, %v2574_v27, 0.0 }
 0x4c1   :  { %v1400_v8 = vsel %vm1399_vm8, %v1395_v57, inf }
 0x4c2   :  { %1401 = vmin.xlane.f32.xlu1 %v1400_v8  ;;  %1672 = vadd.xlane.f32.xlu0 %v1671_v19  ;;  %v1440_v51 = vcvt.s32.f32 %v1438_v46 }
 0x4c3   :  { %v3974_v4 = vpop.xlane.xlu0 %1412 }
 0x4c4   :  { %vm1414_vm9 = vcmp.eq.f32.partialorder %v3780_v34, %v3974_v4 }
 0x4c5   :  { %v1415_v50 = vsel %vm1414_vm9, %v1410_v22, inf  ;;  %v2576_v57 = vpop.eup %2575 }
 0x4c6   :  { %1675 = vadd.xlane.f32.xlu1 %v1674_v39  ;;  %1416 = vmin.xlane.f32.xlu0 %v1415_v50  ;;  %v1683_v9 = vsel %vm117_vm0, %v2576_v57, 0.0 }
 0x4c7   :  { %v3980_v56 = vpop.xlane.xlu0 %1427 }
 0x4c8   :  { %5176 = vst [vmem:[#allocation19_spill] sm:$0xff] %v3980_v56  ;;  %vm1429_vm10 = vcmp.eq.f32.partialorder %v3790_v52, %v3980_v56  ;;  %v1455_v52 = vcvt.s32.f32 %v1453_v37 }
 0x4c9   :  { %v1430_v63 = vsel %vm1429_vm10, %v1425_v2, inf }
 0x4ca   :  { %1431 = vmin.xlane.f32.xlu1 %v1430_v63  ;;  %1678 = vadd.xlane.f32.xlu0 %v1677_v30  ;;  %v1485_v63 = vcvt.s32.f32 %v1483_v17 }
 0x4cb   :  { %v3986_v34 = vpop.xlane.xlu0 %1442 }
 0x4cc   :  { %5177 = vst [vmem:[#allocation20_spill] sm:$0xff] %v3986_v34  ;;  %vm1444_vm11 = vcmp.eq.f32.partialorder %v3803_v60, %v3986_v34 }
 0x4cd   :  { %v1445_v45 = vsel %vm1444_vm11, %v1440_v51, inf }
 0x4ce   :  { %1681 = vadd.xlane.f32.xlu1 %v1680_v12  ;;  %1446 = vmin.xlane.f32.xlu0 %v1445_v45 }
 0x4cf   :  { %v3991_v19 = vpop.xlane.xlu0 %1457 }
 0x4d0   :  { %5178 = vst [vmem:[#allocation21_spill] sm:$0xff] %v3991_v19  ;;  %vm1459_vm12 = vcmp.eq.f32.partialorder %v3818_v59, %v3991_v19 }
 0x4d1   :  { %v1460_v53 = vsel %vm1459_vm12, %v1455_v52, inf }
 0x4d2   :  { %1684 = vadd.xlane.f32.xlu1 %v1683_v9  ;;  %1461 = vmin.xlane.f32.xlu0 %v1460_v53 }
 0x4d3   :  { %v3997_v60 = vpop.f32.mrb[4].mxu0  ;;  %v3999_v8 = vpop.f32.mrb[0].mxu1 }
 0x4d4   :  { %v4002_v39 = vpop.xlane.xlu0 %1472  ;;  %v885_v22 = vpop.f32.mrb[5].mxu0  ;;  %v962_v44 = vsel %vm117_vm0, %v3997_v60, -inf  ;;  %v974_v37 = vsel %vm117_vm0, %v3999_v8, -inf }
 0x4d5   :  { %5179 = vst [vmem:[#allocation22_spill] sm:$0xff] %v4002_v39  ;;  %v905_v50 = vpop.f32.mrb[1].mxu1  ;;  %vm1474_vm13 = vcmp.eq.f32.partialorder %v3835_v23, %v4002_v39 }
 0x4d6   :  { %963 = vmax.xlane.f32.xlu1 %v962_v44  ;;  %v1475_v59 = vsel %vm1474_vm13, %v1470_v3, inf }
 0x4d7   :  { %1476 = vmin.xlane.f32.xlu0 %v1475_v59  ;;  %v4008_v46 = vpop.f32.mrb[6].mxu0  ;;  %v4010_v2 = vpop.f32.mrb[2].mxu1 }
 0x4d8   :  { %v4012_v30 = vpop.xlane.xlu0 %1487  ;;  %v890_v25 = vpop.f32.mrb[7].mxu0  ;;  %v965_v45 = vsel %vm117_vm0, %v4008_v46, -inf  ;;  %v977_v53 = vsel %vm117_vm0, %v4010_v2, -inf }
 0x4d9   :  { %5180 = vst [vmem:[#allocation23_spill] sm:$0xff] %v4012_v30  ;;  %v910_v27 = vpop.f32.mrb[3].mxu1  ;;  %vm1489_vm14 = vcmp.eq.f32.partialorder %v3851_v41, %v4012_v30 }
 0x4da   :  { %975 = vmax.xlane.f32.xlu1 %v974_v37  ;;  %v1490_v23 = vsel %vm1489_vm14, %v1485_v63, inf }
 0x4db   :  { %1491 = vmin.xlane.f32.xlu0 %v1490_v23  ;;  %v4018_v51 = vpop.f32.mrb[4].mxu1 }
 0x4dc   :  { %v915_v12 = vpop.f32.mrb[5].mxu1  ;;  %v980_v50 = vsel %vm117_vm0, %v4018_v51, -inf }
 0x4de   :  { %v4022_v57 = vpop.f32.mrb[8].mxu0  ;;  %966 = vmax.xlane.f32.xlu1 %v965_v45 }
 0x4df   :  { %v895_v52 = vpop.f32.mrb[9].mxu0  ;;  %v4024_v7 = vpop.f32.mrb[6].mxu1  ;;  %v968_v22 = vsel %vm117_vm0, %v4022_v57, -inf }
 0x4e0   :  { %v920_v9 = vpop.f32.mrb[7].mxu1  ;;  %v983_v23 = vsel %vm117_vm0, %v4024_v7, -inf }
 0x4e2   :  { %978 = vmax.xlane.f32.xlu1 %v977_v53 }
 0x4e3   :  { %v4028_v41 = vpop.f32.mrb[8].mxu1 }
 0x4e4   :  { %v925_v17 = vpop.f32.mrb[9].mxu1  ;;  %v986_v52 = vsel %vm117_vm0, %v4028_v41, -inf }
 0x4e6   :  { %v4032_v44 = vpop.f32.mrb[10].mxu0  ;;  %969 = vmax.xlane.f32.xlu1 %v968_v22 }
 0x4e7   :  { %v900_v3 = vpop.f32.mrb[11].mxu0  ;;  %v971_v63 = vsel %vm117_vm0, %v4032_v44, -inf }
 0x4ea   :  { %v4036_v59 = vpop.f32.mrb[10].mxu1  ;;  %981 = vmax.xlane.f32.xlu1 %v980_v50 }
 0x4eb   :  { %v930_v25 = vpop.f32.mrb[11].mxu1  ;;  %v989_v17 = vsel %vm117_vm0, %v4036_v59, -inf }
 0x4ee   :  { %v4040_v27 = vpop.f32.mrb[12].mxu1  ;;  %972 = vmax.xlane.f32.xlu1 %v971_v63 }
 0x4ef   :  { %v935_v37 = vpop.f32.mrb[13].mxu1  ;;  %v992_v50 = vsel %vm117_vm0, %v4040_v27, -inf }
 0x4f0   :  { %v2683_v37 = vld [vmem:[%s5092_s3 + $0x60] sm:$0xff] }
 0x4f2   :  { %v4044_v12 = vpop.f32.mrb[14].mxu1  ;;  %984 = vmax.xlane.f32.xlu1 %v983_v23  ;;  %v4062_v23 = vsub.f32 %v2683_v37, %v3827_v48 }
 0x4f3   :  { %v940_v45 = vpop.f32.mrb[15].mxu1 }
 0x4f4   :  { %5181 = vst [vmem:[#allocation24_spill] sm:$0xff] %v4062_v23  ;;  %v995_v45 = vsel %vm117_vm0, %v4044_v12, -inf }
 0x4f6   :  { %v4048_v9 = vpop.f32.mrb[16].mxu1  ;;  %987 = vmax.xlane.f32.xlu1 %v986_v52 }
 0x4f7   :  { %v945_v53 = vpop.f32.mrb[17].mxu1 }
 0x4fa   :  { %v4052_v22 = vpop.f32.mrb[18].mxu1  ;;  %990 = vmax.xlane.f32.xlu1 %v989_v17  ;;  %v1642_v17 = vmul.f32 1.442695, %v4062_v23 }
 0x4fb   :  { %v950_v3 = vpop.f32.mrb[19].mxu1 }
 0x4fc   :  { %v998_v3 = vsel %vm117_vm0, %v4048_v9, -inf  ;;  %2577 = vpow2.f32 %v1642_v17 }
 0x4fe   :  { %v4056_v25 = vpop.f32.mrb[20].mxu1  ;;  %993 = vmax.xlane.f32.xlu1 %v992_v50  ;;  %v1001_v50 = vsel %vm117_vm0, %v4052_v22, -inf }
 0x4ff   :  { %v955_v63 = vpop.f32.mrb[21].mxu1  ;;  %v1004_v48 = vsel %vm117_vm0, %v4056_v25, -inf }
 0x502   :  { %v4066_v52 = vpop.f32.mrb[22].mxu1  ;;  %996 = vmax.xlane.f32.xlu1 %v995_v45 }
 0x503   :  { %v960_v53 = vpop.f32.mrb[23].mxu1  ;;  %v1007_v63 = vsel %vm117_vm0, %v4066_v52, -inf }
 0x504   :  { %v4078_v53 = vpop.xlane.xlu1 %1651 }
 0x506   :  { %999 = vmax.xlane.f32.xlu1 %v998_v3  ;;  %v2578_v37 = vpop.eup %2577 }
 0x507   :  { %v1686_v45 = vsel %vm117_vm0, %v2578_v37, 0.0 }
 0x508   :  { %v4080_v3 = vpop.xlane.xlu1 %1657 }
 0x50a   :  { %1002 = vmax.xlane.f32.xlu1 %v1001_v50 }
 0x50c   :  { %v4082_v17 = vpop.xlane.xlu1 %1660 }
 0x50d   :  { %5182 = vst [vmem:[#allocation25_spill] sm:$0xff] %v4082_v17 }
 0x50e   :  { %1005 = vmax.xlane.f32.xlu1 %v1004_v48 }
 0x510   :  { %v4084_v23 = vpop.xlane.xlu1 %1663 }
 0x511   :  { %5183 = vst [vmem:[#allocation26_spill] sm:$0xff] %v4084_v23 }
 0x512   :  { %1008 = vmax.xlane.f32.xlu1 %v1007_v63 }
 0x514   :  { %v4086_v50 = vpop.xlane.xlu1 %1666 }
 0x515   :  { %5184 = vst [vmem:[#allocation27_spill] sm:$0xff] %v4086_v50 }
 0x516   :  { %1687 = vadd.xlane.f32.xlu1 %v1686_v45 }
 0x547   :  { %v4088_v21 = vpop.xlane.xlu1 %1371 }
 0x54b   :  { %v4090_v48 = vpop.xlane.xlu1 %1669 }
 0x54c   :  { %5185 = vst [vmem:[#allocation28_spill] sm:$0xff] %v4090_v48 }
 0x54f   :  { %v4092_v55 = vpop.xlane.xlu1 %1401 }
 0x553   :  { %v4094_v63 = vpop.xlane.xlu1 %1675 }
 0x554   :  { %5186 = vst [vmem:[#allocation29_spill] sm:$0xff] %v4094_v63 }
 0x557   :  { %v4096_v37 = vpop.xlane.xlu1 %1431 }
 0x558   :  { %5187 = vst [vmem:[#allocation30_spill] sm:$0xff] %v4096_v37 }
 0x55b   :  { %v4098_v45 = vpop.xlane.xlu1 %1681 }
 0x55c   :  { %5188 = vst [vmem:[#allocation31_spill] sm:$0xff] %v4098_v45 }
 0x55f   :  { %v4100_v24 = vpop.xlane.xlu1 %1684 }
 0x560   :  { %5189 = vst [vmem:[#allocation32_spill] sm:$0xff] %v4100_v24 }
 0x563   :  { %v964_v36 = vpop.xlane.xlu1 %963 }
 0x564   :  { %vm1010_vm15 = vcmp.eq.f32.partialorder %v3997_v60, %v964_v36 }
 0x565   :  { %v1026_v15 = vsel %vm1010_vm15, %v2871_v33, 9 }
 0x566   :  { %v4105_v26 = vsel %vm117_vm0, %v1026_v15, 2147483647 }
 0x567   :  { %v976_v30 = vpop.xlane.xlu1 %975  ;;  %v1044_v28 = vshra.s32 %v4105_v26, 16 }
 0x568   :  { %vm1014_vm1 = vcmp.eq.f32.partialorder %v3999_v8, %v976_v30  ;;  %v4110_v63 = vsub.f32 %v3999_v8, %v976_v30  ;;  %v4126_v30 = vsub.f32 %v3997_v60, %v964_v36 }
 0x569   :  { %v1030_v45 = vsel %vm1014_vm1, %v2871_v33, 9  ;;  %v4113_v19 = vcvt.s32.f32 %v1044_v28 }
 0x56a   :  { %5190 = vst [vmem:[#allocation33_spill] sm:$0xff] %v4110_v63  ;;  %v1770_v48 = vmul.f32 1.442695, %v4110_v63  ;;  %v4117_v40 = vsel %vm117_vm0, %v1030_v45, 2147483647  ;;  %5192 = vst [vmem:[#allocation35_spill] sm:$0xff] %v4126_v30 }
 0x56b   :  { %1047 = vmin.xlane.f32.xlu1 %v4113_v19  ;;  %v967_v15 = vpop.xlane.xlu1 %966  ;;  %v1104_v24 = vshra.s32 %v4117_v40, 16  ;;  %v1762_v60 = vmul.f32 1.442695, %v4126_v30 }
 0x56c   :  { %2579 = vpow2.f32 %v1770_v48  ;;  %vm1011_vm2 = vcmp.eq.f32.partialorder %v4008_v46, %v967_v15  ;;  %v4123_v8 = vsub.f32 %v4008_v46, %v967_v15 }
 0x56d   :  { %v1027_v28 = vsel %vm1011_vm2, %v2871_v33, 9  ;;  %v4129_v63 = vcvt.s32.f32 %v1104_v24 }
 0x56e   :  { %5191 = vst [vmem:[#allocation34_spill] sm:$0xff] %v4123_v8  ;;  %v1764_v45 = vmul.f32 1.442695, %v4123_v8  ;;  %v4133_v37 = vsel %vm117_vm0, %v1027_v28, 2147483647 }
 0x56f   :  { %1107 = vmin.xlane.f32.xlu1 %v4129_v63  ;;  %v979_v48 = vpop.xlane.xlu1 %978  ;;  %v1059_v23 = vshra.s32 %v4133_v37, 16 }
 0x570   :  { %2581 = vpow2.f32 %v1764_v45  ;;  %vm1015_vm3 = vcmp.eq.f32.partialorder %v4010_v2, %v979_v48  ;;  %v4139_v36 = vsub.f32 %v4010_v2, %v979_v48 }
 0x571   :  { %v1031_v24 = vsel %vm1015_vm3, %v2871_v33, 9  ;;  %v4143_v46 = vcvt.s32.f32 %v1059_v23 }
 0x572   :  { %5193 = vst [vmem:[#allocation36_spill] sm:$0xff] %v4139_v36  ;;  %v1772_v15 = vmul.f32 1.442695, %v4139_v36  ;;  %v4147_v28 = vsel %vm117_vm0, %v1031_v24, 2147483647 }
 0x573   :  { %1062 = vmin.xlane.f32.xlu1 %v4143_v46  ;;  %v970_v56 = vpop.xlane.xlu1 %969  ;;  %v1119_v45 = vshra.s32 %v4147_v28, 16 }
 0x574   :  { %2583 = vpow2.f32 %v1772_v15  ;;  %vm1012_vm4 = vcmp.eq.f32.partialorder %v4022_v57, %v970_v56  ;;  %v4153_v2 = vsub.f32 %v4022_v57, %v970_v56 }
 0x575   :  { %2585 = vpow2.f32 %v1762_v60  ;;  %v1028_v23 = vsel %vm1012_vm4, %v2871_v33, 9  ;;  %v4156_v48 = vcvt.s32.f32 %v1119_v45 }
 0x576   :  { %5194 = vst [vmem:[#allocation37_spill] sm:$0xff] %v4153_v2  ;;  %v2580_v36 = vpop.eup %2579  ;;  %v1766_v24 = vmul.f32 1.442695, %v4153_v2  ;;  %v4160_v49 = vsel %vm117_vm0, %v1028_v23, 2147483647 }
 0x577   :  { %1122 = vmin.xlane.f32.xlu1 %v4156_v48  ;;  %v982_v39 = vpop.xlane.xlu1 %981  ;;  %v1806_v15 = vsel %vm117_vm0, %v2580_v36, 0.0  ;;  %v1074_v34 = vshra.s32 %v4160_v49, 16 }
 0x578   :  { %2587 = vpow2.f32 %v1766_v24  ;;  %vm1016_vm5 = vcmp.eq.f32.partialorder %v4018_v51, %v982_v39  ;;  %v4167_v56 = vsub.f32 %v4018_v51, %v982_v39  ;;  %1807 = vadd.xlane.f32.xlu0 %v1806_v15 }
 0x579   :  { %v1032_v57 = vsel %vm1016_vm5, %v2871_v33, 9  ;;  %v4170_v60 = vcvt.s32.f32 %v1074_v34 }
 0x57a   :  { %5195 = vst [vmem:[#allocation38_spill] sm:$0xff] %v4167_v56  ;;  %v2582_v45 = vpop.eup %2581  ;;  %v1774_v23 = vmul.f32 1.442695, %v4167_v56  ;;  %v4174_v30 = vsel %vm117_vm0, %v1032_v57, 2147483647 }
 0x57b   :  { %1077 = vmin.xlane.f32.xlu1 %v4170_v60  ;;  %v973_v36 = vpop.xlane.xlu1 %972  ;;  %v1797_v24 = vsel %vm117_vm0, %v2582_v45, 0.0  ;;  %v1134_v2 = vshra.s32 %v4174_v30, 16 }
 0x57c   :  { %2589 = vpow2.f32 %v1774_v23  ;;  %vm1013_vm6 = vcmp.eq.f32.partialorder %v4032_v44, %v973_v36  ;;  %v4181_v39 = vsub.f32 %v4032_v44, %v973_v36  ;;  %1798 = vadd.xlane.f32.xlu0 %v1797_v24 }
 0x57d   :  { %v1029_v34 = vsel %vm1013_vm6, %v2871_v33, 9  ;;  %v4184_v51 = vcvt.s32.f32 %v1134_v2 }
 0x57e   :  { %5196 = vst [vmem:[#allocation39_spill] sm:$0xff] %v4181_v39  ;;  %v2584_v15 = vpop.eup %2583  ;;  %v1768_v57 = vmul.f32 1.442695, %v4181_v39  ;;  %v4188_v56 = vsel %vm117_vm0, %v1029_v34, 2147483647 }
 0x57f   :  { %v2586_v45 = vpop.eup %2585  ;;  %1137 = vmin.xlane.f32.xlu1 %v4184_v51  ;;  %v985_v23 = vpop.xlane.xlu1 %984  ;;  %v1809_v50 = vsel %vm117_vm0, %v2584_v15, 0.0  ;;  %v1089_v36 = vshra.s32 %v4188_v56, 16 }
 0x580   :  { %2591 = vpow2.f32 %v1768_v57  ;;  %vm1017_vm7 = vcmp.eq.f32.partialorder %v4024_v7, %v985_v23  ;;  %1810 = vadd.xlane.f32.xlu0 %v1809_v50  ;;  %v4195_v2 = vsub.f32 %v4024_v7, %v985_v23  ;;  %v1794_v34 = vsel %vm117_vm0, %v2586_v45, 0.0 }
 0x581   :  { %v1033_v44 = vsel %vm1017_vm7, %v2871_v33, 9  ;;  %v4209_v23 = vcvt.s32.f32 %v1089_v36 }
 0x582   :  { %5197 = vst [vmem:[#allocation40_spill] sm:$0xff] %v4195_v2  ;;  %v2588_v24 = vpop.eup %2587  ;;  %v4200_v39 = vsel %vm117_vm0, %v1033_v44, 2147483647  ;;  %v1776_v7 = vmul.f32 1.442695, %v4195_v2 }
 0x583   :  { %1795 = vadd.xlane.f32.xlu1 %v1794_v34  ;;  %v988_v8 = vpop.xlane.xlu1 %987  ;;  %v1800_v15 = vsel %vm117_vm0, %v2588_v24, 0.0  ;;  %v1149_v45 = vshra.s32 %v4200_v39, 16 }
 0x584   :  { %vm1018_vm8 = vcmp.eq.f32.partialorder %v4028_v41, %v988_v8  ;;  %v4205_v50 = vsub.f32 %v4028_v41, %v988_v8  ;;  %1801 = vadd.xlane.f32.xlu0 %v1800_v15 }
 0x585   :  { %v1034_v57 = vsel %vm1018_vm8, %v2871_v33, 9  ;;  %v4220_v36 = vcvt.s32.f32 %v1149_v45 }
 0x586   :  { %5198 = vst [vmem:[#allocation41_spill] sm:$0xff] %v4205_v50  ;;  %v2590_v44 = vpop.eup %2589  ;;  %v1778_v34 = vmul.f32 1.442695, %v4205_v50  ;;  %v4214_v29 = vsel %vm117_vm0, %v1034_v57, 2147483647 }
 0x587   :  { %1092 = vmin.xlane.f32.xlu1 %v4209_v23  ;;  %v991_v24 = vpop.xlane.xlu1 %990  ;;  %v1812_v41 = vsel %vm117_vm0, %v2590_v44, 0.0  ;;  %v1164_v15 = vshra.s32 %v4214_v29, 16 }
 0x588   :  { %2593 = vpow2.f32 %v1778_v34  ;;  %vm1019_vm9 = vcmp.eq.f32.partialorder %v4036_v59, %v991_v24  ;;  %1813 = vadd.xlane.f32.xlu0 %v1812_v41 }
 0x589   :  { %2595 = vpow2.f32 %v1776_v7  ;;  %v1035_v8 = vsel %vm1019_vm9, %v2871_v33, 9  ;;  %v4233_v7 = vsub.f32 %v4036_v59, %v991_v24  ;;  %v4235_v45 = vcvt.s32.f32 %v1164_v15 }
 0x58a   :  { %v2592_v50 = vpop.eup %2591  ;;  %v4224_v57 = vsel %vm117_vm0, %v1035_v8, 2147483647 }
 0x58b   :  { %5199 = vst [vmem:[#allocation42_spill] sm:$0xff] %v4224_v57  ;;  %1152 = vmin.xlane.f32.xlu1 %v4220_v36  ;;  %v994_v2 = vpop.xlane.xlu1 %993  ;;  %v1803_v44 = vsel %vm117_vm0, %v2592_v50, 0.0  ;;  %5201 = vst [vmem:[#allocation44_spill] sm:$0xff] %v4233_v7  ;;  %v1179_v41 = vshra.s32 %v4224_v57, 16  ;;  %v1780_v59 = vmul.f32 1.442695, %v4233_v7 }
 0x58c   :  { %vm1020_vm10 = vcmp.eq.f32.partialorder %v4040_v27, %v994_v2  ;;  %v4230_v34 = vsub.f32 %v4040_v27, %v994_v2  ;;  %1804 = vadd.xlane.f32.xlu0 %v1803_v44  ;;  %5202 = vst [vmem:[#allocation45_spill] sm:$0xff] %v4235_v45 }
 0x58d   :  { %v1036_v58 = vsel %vm1020_vm10, %v2871_v33, 9  ;;  %v4246_v2 = vcvt.s32.f32 %v1179_v41 }
 0x58e   :  { %5200 = vst [vmem:[#allocation43_spill] sm:$0xff] %v4230_v34  ;;  %v1782_v8 = vmul.f32 1.442695, %v4230_v34  ;;  %v4250_v44 = vsel %vm117_vm0, %v1036_v58, 2147483647 }
 0x58f   :  { %1167 = vmin.xlane.f32.xlu1 %v4235_v45  ;;  %v997_v50 = vpop.xlane.xlu1 %996  ;;  %5204 = vst [vmem:[#allocation47_spill] sm:$0xff] %v4246_v2  ;;  %5205 = vst [vmem:[#allocation48_spill] sm:$0xff] %v4250_v44  ;;  %v1194_v41 = vshra.s32 %v4250_v44, 16 }
 0x590   :  { %2597 = vpow2.f32 %v1782_v8  ;;  %vm1021_vm11 = vcmp.eq.f32.partialorder %v4044_v12, %v997_v50  ;;  %v4243_v27 = vsub.f32 %v4044_v12, %v997_v50 }
 0x591   :  { %v1037_v17 = vsel %vm1021_vm11, %v2871_v33, 9 }
 0x592   :  { %5203 = vst [vmem:[#allocation46_spill] sm:$0xff] %v4243_v27  ;;  %v2594_v24 = vpop.eup %2593  ;;  %v1784_v15 = vmul.f32 1.442695, %v4243_v27  ;;  %v4262_v27 = vsel %vm117_vm0, %v1037_v17, 2147483647 }
 0x593   :  { %v2596_v34 = vpop.eup %2595  ;;  %1182 = vmin.xlane.f32.xlu1 %v4246_v2  ;;  %v1000_v8 = vpop.xlane.xlu1 %999  ;;  %v1818_v45 = vsel %vm117_vm0, %v2594_v24, 0.0  ;;  %5207 = vst [vmem:[#allocation50_spill] sm:$0xff] %v4262_v27  ;;  %v4265_v24 = vcvt.s32.f32 %v1194_v41 }
 0x594   :  { %2599 = vpow2.f32 %v1784_v15  ;;  %v4256_v12 = vsub.f32 %v4048_v9, %v1000_v8  ;;  %1819 = vadd.xlane.f32.xlu0 %v1818_v45  ;;  %v1815_v58 = vsel %vm117_vm0, %v2596_v34, 0.0  ;;  %vm1022_vm12 = vcmp.eq.f32.partialorder %v4048_v9, %v1000_v8 }
 0x595   :  { %2601 = vpow2.f32 %v1780_v59  ;;  %5208 = vst [vmem:[#allocation51_spill] sm:$0xff] %v4265_v24  ;;  %v1209_v15 = vshra.s32 %v4262_v27, 16  ;;  %v4268_v59 = vpop.xlane.xlu0 %1502  ;;  %v1038_v44 = vsel %vm1022_vm12, %v2871_v33, 9 }
 0x596   :  { %5206 = vst [vmem:[#allocation49_spill] sm:$0xff] %v4256_v12  ;;  %v1786_v50 = vmul.f32 1.442695, %v4256_v12  ;;  %v4277_v8 = vsel %vm117_vm0, %v1038_v44, 2147483647  ;;  %vm1504_vm1 = vcmp.eq.f32.partialorder %v3863_v18, %v4268_v59 }
 0x597   :  { %1816 = vadd.xlane.f32.xlu1 %v1815_v58  ;;  %v1003_v7 = vpop.xlane.xlu1 %1002  ;;  %v4274_v58 = vcvt.s32.f32 %v1209_v15  ;;  %5210 = vst [vmem:[#allocation53_spill] sm:$0xff] %v4277_v8 }
 0x598   :  { %2603 = vpow2.f32 %v1786_v50  ;;  %vm1023_vm13 = vcmp.eq.f32.partialorder %v4052_v22, %v1003_v7  ;;  %v1498_v50 = vand.u32 65535, %v3848_v61  ;;  %v1224_v61 = vshra.s32 %v4277_v8, 16  ;;  %v2685_v8 = vld [vmem:[%s5092_s3 + $0x70] sm:$0xff] }
 0x599   :  { %5209 = vst [vmem:[#allocation52_spill] sm:$0xff] %v4274_v58  ;;  %v1039_v12 = vsel %vm1023_vm13, %v2871_v33, 9  ;;  %v4290_v44 = vpop.xlane.xlu0 %1517 }
 0x59a   :  { %v2598_v45 = vpop.eup %2597  ;;  %v4298_v2 = vsel %vm117_vm0, %v1039_v12, 2147483647  ;;  %v4313_v12 = vcvt.s32.f32 %v1224_v61  ;;  %vm1519_vm2 = vcmp.eq.f32.partialorder %v3875_v62, %v4290_v44 }
 0x59b   :  { %1197 = vmin.xlane.f32.xlu1 %v4265_v24  ;;  %v1006_v34 = vpop.xlane.xlu1 %1005  ;;  %v1824_v17 = vsel %vm117_vm0, %v2598_v45, 0.0  ;;  %v2684_v45 = vld [vmem:[%s5092_s3 + $0x68] sm:$0xff] }
 0x59c   :  { %1825 = vadd.xlane.f32.xlu0 %v1824_v17  ;;  %v4287_v15 = vsub.f32 %v2684_v45, %v3854_v0  ;;  %vm1024_vm14 = vcmp.eq.f32.partialorder %v4056_v25, %v1006_v34 }
 0x59d   :  { %v1040_v0 = vsel %vm1024_vm14, %v2871_v33, 9 }
 0x59e   :  { %v2600_v9 = vpop.eup %2599  ;;  %5211 = vst [vmem:[#allocation54_spill] sm:$0xff] %v4287_v15  ;;  %v1644_v57 = vmul.f32 1.442695, %v4287_v15 }
 0x59f   :  { %v2602_v41 = vpop.eup %2601  ;;  %1212 = vmin.xlane.f32.xlu1 %v4274_v58  ;;  %v1827_v27 = vsel %vm117_vm0, %v2600_v9, 0.0  ;;  %v1009_v17 = vpop.xlane.xlu1 %1008  ;;  %v4294_v58 = vsub.f32 %v4052_v22, %v1003_v7  ;;  %v4307_v22 = vsub.f32 %v2685_v8, %v3869_v38  ;;  %v1513_v7 = vand.u32 65535, %v3857_v1 }
 0x5a0   :  { %1828 = vadd.xlane.f32.xlu0 %v1827_v27  ;;  %v1821_v9 = vsel %vm117_vm0, %v2602_v41, 0.0  ;;  %v1500_v27 = vcvt.s32.f32 %v1498_v50  ;;  %vm1025_vm15 = vcmp.eq.f32.partialorder %v4066_v52, %v1009_v17  ;;  %v4318_v50 = vsub.f32 %v4056_v25, %v1006_v34  ;;  %v4323_v8 = vpop.xlane.xlu0 %1532  ;;  %v2686_v25 = vld [vmem:[%s5092_s3 + $0x78] sm:$0xff]  ;;  %s2736_s3 = smov [#allocation2]  }
 0x5a1   :  { %5212 = vst [vmem:[#allocation55_spill] sm:$0xff] %v4294_v58  ;;  %5213 = vst [vmem:[#allocation56_spill] sm:$0xff] %v4307_v22  ;;  %v1788_v41 = vmul.f32 1.442695, %v4294_v58  ;;  %v4321_v38 = vsel %vm117_vm0, %v1040_v0, 2147483647  ;;  %2605 = vpow2.f32 %v1644_v57  ;;  %v4335_v34 = vsub.f32 %v2686_v25, %v3888_v31 }
 0x5a2   :  { %v2604_v24 = vpop.eup %2603  ;;  %5214 = vst [vmem:[#allocation57_spill] sm:$0xff] %v4318_v50  ;;  %v1505_v18 = vsel %vm1504_vm1, %v1500_v27, inf  ;;  %v1528_v1 = vand.u32 65535, %v3867_v54  ;;  %v1646_v61 = vmul.f32 1.442695, %v4307_v22  ;;  %v1254_v57 = vshra.s32 %v4321_v38, 16 }
 0x5a3   :  { %1822 = vadd.xlane.f32.xlu1 %v1821_v9  ;;  %v1830_v45 = vsel %vm117_vm0, %v2604_v24, 0.0  ;;  %v1239_v24 = vshra.s32 %v4298_v2, 16  ;;  %v1041_v9 = vsel %vm1025_vm15, %v2871_v33, 9  ;;  %5215 = vst [vmem:[#allocation58_spill] sm:$0xff] %v4335_v34  ;;  %2607 = vpow2.f32 %v1788_v41  ;;  %s2388_s6 = sshll.u32 %s2736_s3, 4  ;;  %s2389_s6 = int_to_ptr.vmem [resolvable:$true] %s2388_s6 }
 0x5a4   :  { %1831 = vadd.xlane.f32.xlu0 %v1830_v45  ;;  %v1515_v45 = vcvt.s32.f32 %v1513_v7  ;;  %v1790_v54 = vmul.f32 1.442695, %v4318_v50  ;;  %v4342_v27 = vsub.f32 %v4066_v52, %v1009_v17  ;;  %v4345_v62 = vsel %vm117_vm0, %v1041_v9, 2147483647  ;;  %s2687_s9 = scalar_lea.vmem %s2389_s6, 16  ;;  %s2691_s2 = scalar_lea.vmem %s2389_s6, 32 }
 0x5a5   :  { %v4337_v0 = vcvt.s32.f32 %v1239_v24  ;;  %2609 = vpow2.f32 %v1646_v61  ;;  %v1543_v31 = vand.u32 65535, %v3879_v14  ;;  %vm1534_vm3 = vcmp.eq.f32.partialorder %v3885_v10, %v4323_v8  ;;  %v4352_v24 = vpop.xlane.xlu0 %1547  ;;  %p2688_p0 = scmp.ne.s32.totalorder %s2389_s6, %s2687_s9  ;;  %p2692_p1 = scmp.lt.s32.totalorder %s2389_s6, %s2389_s6 }
 0x5a6   :  { %5216 = vst [vmem:[#allocation59_spill] sm:$0xff] %v4342_v27  ;;  %v1648_v7 = vmul.f32 1.442695, %v4335_v34  ;;  %v4354_v41 = vcvt.s32.f32 %v1254_v57  ;;  %v1530_v52 = vcvt.s32.f32 %v1528_v1  ;;  %v1269_v17 = vshra.s32 %v4345_v62, 16  ;;  %p2693_p2 = scmp.lt.s32.totalorder %s2691_s2, %s2687_s9 }
 0x5a7   :  { %1227 = vmin.xlane.f32.xlu1 %v4313_v12  ;;  %2611 = vpow2.f32 %v1790_v54  ;;  %v1792_v9 = vmul.f32 1.442695, %v4342_v27  ;;  %vm1549_vm4 = vcmp.eq.f32.partialorder %v3901_v5, %v4352_v24  ;;  %v1545_v10 = vcvt.s32.f32 %v1543_v31 }
 0x5a8   :  { %1506 = vmin.xlane.f32.xlu0 %v1505_v18  ;;  %v1520_v18 = vsel %vm1519_vm2, %v1515_v45, inf  ;;  %v1535_v61 = vsel %vm1534_vm3, %v1530_v52, inf  ;;  %2613 = vpow2.f32 %v1648_v7  ;;  %v4361_v14 = vcvt.s32.f32 %v1269_v17  ;;  %p2694_p3 = por %p2693_p2, %p2692_p1 }
 0x5a9   :  { %2615 = vpow2.f32 %v1792_v9  ;;  %v1550_v1 = vsel %vm1549_vm4, %v1545_v10, inf  ;;  %v4370_v10 = vpop.xlane.xlu0 %1562  ;;  %v1103_v34 = vand.u32 65535, %v4117_v40 }
 0x5aa   :  { %2617 = vlog2.f32 %v4078_v53  ;;  %vm1564_vm14 = vcmp.eq.f32.partialorder %v3910_v6, %v4370_v10  ;;  %v1419_v6 = vcvt.f32.s32 %v3974_v4  ;;  %p2695_p4 = pnand %p2694_p3, %p2688_p0 }
 0x5ab   :  { %1242 = vmin.xlane.f32.xlu1 %v4337_v0  ;;  %v2606_v25 = vpop.eup %2605  ;;  %v1105_v58 = vcvt.s32.f32 %v1103_v34  ;;  %2619 = vlog2.f32 %v4080_v3 }
 0x5ac   :  { %1521 = vmin.xlane.f32.xlu0 %v1520_v18  ;;  %v1689_v54 = vsel %vm117_vm0, %v2606_v25, 0.0 }
 0x5ad   :  { %v2608_v45 = vpop.eup %2607  ;;  %v4372_v25 = vpop.xlane.xlu0 %1577 }
 0x5ae   :  { %v1833_v18 = vsel %vm117_vm0, %v2608_v45, 0.0  ;;  %vm1579_vm1 = vcmp.eq.f32.partialorder %v3917_v16, %v4372_v25  ;;  %v5223_v16 = vld [vmem:[#allocation9_spill] sm:$0xff] }
 0x5af   :  { %1257 = vmin.xlane.f32.xlu1 %v4354_v41  ;;  %v2610_v57 = vpop.eup %2609 }
 0x5b0   :  { %1536 = vmin.xlane.f32.xlu0 %v1535_v61  ;;  %v1692_v5 = vsel %vm117_vm0, %v2610_v57, 0.0 }
 0x5b1   :  { %v2612_v52 = vpop.eup %2611 }
 0x5b2   :  { %v2614_v7 = vpop.eup %2613  ;;  %v1836_v31 = vsel %vm117_vm0, %v2612_v52, 0.0 }
 0x5b3   :  { %1272 = vmin.xlane.f32.xlu1 %v4361_v14  ;;  %v2616_v17 = vpop.eup %2615  ;;  %v1695_v9 = vsel %vm117_vm0, %v2614_v7, 0.0  ;;  %v4388_v7 = vpop.xlane.xlu1 %1687 }
 0x5b4   :  { %1551 = vmin.xlane.f32.xlu0 %v1550_v1  ;;  %v1839_v61 = vsel %vm117_vm0, %v2616_v17, 0.0  ;;  %v4374_v1 = vpop.xlane.xlu0 %1592 }
 0x5b5   :  { %vm1594_vm4 = vcmp.eq.f32.partialorder %v5223_v16, %v4374_v1 }
 0x5b7   :  { %1690 = vadd.xlane.f32.xlu1 %v1689_v54 }
 0x5b8   :  { %1834 = vadd.xlane.f32.xlu0 %v1833_v18  ;;  %v4376_v45 = vpop.xlane.xlu0 %1654 }
 0x5b9   :  { %2621 = vlog2.f32 %v4376_v45  ;;  %v1558_v45 = vand.u32 65535, %v3891_v35  ;;  %v1573_v35 = vand.u32 65535, %v3905_v11 }
 0x5bb   :  { %1693 = vadd.xlane.f32.xlu1 %v1692_v5 }
 0x5bc   :  { %1837 = vadd.xlane.f32.xlu0 %v1836_v31  ;;  %v4378_v57 = vpop.xlane.xlu0 %1386  ;;  %v1043_v31 = vand.u32 65535, %v4105_v26  ;;  %v1058_v26 = vand.u32 65535, %v4133_v37 }
 0x5bf   :  { %1696 = vadd.xlane.f32.xlu1 %v1695_v9 }
 0x5c0   :  { %1840 = vadd.xlane.f32.xlu0 %v1839_v61  ;;  %v4380_v54 = vpop.xlane.xlu0 %1672  ;;  %v1045_v61 = vcvt.s32.f32 %v1043_v31  ;;  %v1374_v31 = vcvt.f32.s32 %v3946_v32 }
 0x5c2   :  { %v1375_v37 = vshll.u32 %v1374_v31, 16 }
 0x5c4   :  { %v4382_v18 = vpop.xlane.xlu0 %1416 }
 0x5c8   :  { %v4384_v52 = vpop.xlane.xlu0 %1678 }
 0x5cc   :  { %v4386_v5 = vpop.xlane.xlu0 %1446 }
 0x5d0   :  { %v4391_v17 = vpop.xlane.xlu0 %1461 }
 0x5d4   :  { %v4399_v27 = vpop.xlane.xlu0 %1476 }
 0x5d8   :  { %v4412_v15 = vpop.xlane.xlu0 %1491 }
 0x5f8   :  { %v4393_v9 = vpop.xlane.xlu1 %1047 }
 0x5f9   :  { %vm1049_vm5 = vcmp.eq.f32.partialorder %v4113_v19, %v4393_v9  ;;  %v1373_v19 = vcvt.f32.s32 %v4088_v21  ;;  %v1403_v21 = vcvt.f32.s32 %v4092_v55  ;;  %v1133_v55 = vand.u32 65535, %v4174_v30 }
 0x5fa   :  { %v1050_v22 = vsel %vm1049_vm5, %v1045_v61, inf  ;;  %v1060_v61 = vcvt.s32.f32 %v1058_v26 }
 0x5fb   :  { %1051 = vmin.xlane.f32.xlu0 %v1050_v22  ;;  %v1118_v22 = vand.u32 65535, %v4147_v28  ;;  %v4417_v3 = vadd.s32 %v1375_v37, %v1373_v19  ;;  %v1073_v28 = vand.u32 65535, %v4160_v49 }
 0x5fc   :  { %v4401_v50 = vpop.xlane.xlu1 %1107 }
 0x5fd   :  { %vm1109_vm6 = vcmp.eq.f32.partialorder %v4129_v63, %v4401_v50  ;;  %v1404_v63 = vcvt.f32.s32 %v3967_v43  ;;  %v1120_v26 = vcvt.s32.f32 %v1118_v22  ;;  %v1075_v37 = vcvt.s32.f32 %v1073_v28 }
 0x5fe   :  { %v1110_v40 = vsel %vm1109_vm6, %v1105_v58, inf  ;;  %v2618_v58 = vpop.eup %2617  ;;  %vm1938_vm9 = vcmp.eq.s32.totalorder %v4417_v3, %v2871_v33 }
 0x5ff   :  { %1111 = vmin.xlane.f32.xlu1 %v1110_v40  ;;  %v1699_v43 = vmul.f32 0.6931472, %v2618_v58  ;;  %v2620_v49 = vpop.eup %2619 }
 0x600   :  { %v4409_v53 = vpop.xlane.xlu1 %1062  ;;  %v1703_v58 = vmul.f32 0.6931472, %v2620_v49 }
 0x601   :  { %vm1064_vm7 = vcmp.eq.f32.partialorder %v4143_v46, %v4409_v53  ;;  %v1405_v46 = vshll.u32 %v1404_v63, 16  ;;  %v5217_v63 = vmov 0.0   ;;  %v4442_v28 = vsub.f32 %v3713_v47, %v1699_v43 }
 0x602   :  { %v1065_v32 = vsel %vm1064_vm7, %v1060_v61, inf  ;;  %v4457_v43 = vsub.f32 %v3743_v13, %v1703_v58  ;;  %v1148_v58 = vand.u32 65535, %v4200_v39 }
 0x603   :  { %1066 = vmin.xlane.f32.xlu0 %v1065_v32  ;;  %v4427_v61 = vadd.s32 %v1405_v46, %v1403_v21  ;;  %v4437_v32 = vsel %vm1938_vm9, 1.0, %v5217_v63  ;;  %5218 = vst [vmem:[#allocation60_spill] sm:$0xff] %v4442_v28 }
 0x604   :  { %v4420_v34 = vpop.xlane.xlu1 %1122  ;;  %v2238_v46 = vmul.f32 %v4437_v32, %v4442_v28  ;;  %5219 = vst [vmem:[#allocation61_spill] sm:$0xff] %v4457_v43 }
 0x605   :  { %v4423_v40 = vpop.xlane.xlu0 %1807  ;;  %vm1124_vm8 = vcmp.eq.f32.partialorder %v4156_v48, %v4420_v34  ;;  %vm1940_vm11 = vcmp.eq.s32.totalorder %v4427_v61, %v2871_v33 }
 0x606   :  { %v1125_v31 = vsel %vm1124_vm8, %v1120_v26, inf  ;;  %v1135_v26 = vcvt.s32.f32 %v1133_v55  ;;  %v2254_v49 = vsel %vm117_vm0, %v2238_v46, 0.0 }
 0x607   :  { %1126 = vmin.xlane.f32.xlu0 %v1125_v31  ;;  %v4454_v31 = vsel %vm1940_vm11, 1.0, %v5217_v63 }
 0x608   :  { %v4429_v19 = vpop.xlane.xlu1 %1077 }
 0x609   :  { %v1799_v22 = vpop.xlane.xlu0 %1798  ;;  %vm1079_vm10 = vcmp.eq.f32.partialorder %v4170_v60, %v4429_v19 }
 0x60a   :  { %v1080_v48 = vsel %vm1079_vm10, %v1075_v37, inf  ;;  %2623 = vlog2.f32 %v1799_v22  ;;  %v1088_v37 = vand.u32 65535, %v4188_v56 }
 0x60b   :  { %1081 = vmin.xlane.f32.xlu1 %v1080_v48  ;;  %v2240_v48 = vmul.f32 %v4454_v31, %v4457_v43 }
 0x60c   :  { %v4439_v21 = vpop.xlane.xlu1 %1137  ;;  %v1090_v13 = vcvt.s32.f32 %v1088_v37  ;;  %v1150_v37 = vcvt.s32.f32 %v1148_v58 }
 0x60d   :  { %v4446_v30 = vpop.xlane.xlu0 %1810  ;;  %vm1139_vm12 = vcmp.eq.f32.partialorder %v4184_v51, %v4439_v21  ;;  %v1389_v51 = vcvt.f32.s32 %v3956_v20 }
 0x60e   :  { %v1140_v60 = vsel %vm1139_vm12, %v1135_v26, inf  ;;  %v1388_v26 = vcvt.f32.s32 %v4378_v57 }
 0x60f   :  { %1141 = vmin.xlane.f32.xlu1 %v1140_v60  ;;  %v1390_v20 = vshll.u32 %v1389_v51, 16  ;;  %v2260_v60 = vsel %vm117_vm0, %v2240_v48, 0.0 }
 0x610   :  { %v1796_v47 = vpop.xlane.xlu1 %1795 }
 0x611   :  { %v1802_v55 = vpop.xlane.xlu0 %1801  ;;  %2625 = vlog2.f32 %v1796_v47  ;;  %v4477_v57 = vadd.s32 %v1390_v20, %v1388_v26  ;;  %v1560_v47 = vcvt.s32.f32 %v1558_v45  ;;  %v1575_v26 = vcvt.s32.f32 %v1573_v35  ;;  %v5220_v20 = vld [vmem:[#allocation42_spill] sm:$0xff] }
 0x612   :  { %2627 = vlog2.f32 %v1802_v55  ;;  %v1163_v55 = vand.u32 65535, %v4214_v29 }
 0x613   :  { %2255 = vadd.xlane.f32.xlu1 %v2254_v49  ;;  %v1565_v11 = vsel %vm1564_vm14, %v1560_v47, inf  ;;  %vm1939_vm2 = vcmp.eq.s32.totalorder %v4477_v57, %v2871_v33  ;;  %v1580_v35 = vsel %vm1579_vm1, %v1575_v26, inf  ;;  %v5226_v26 = vld [vmem:[#allocation34_spill] sm:$0xff] }
 0x614   :  { %v4466_v22 = vpop.xlane.xlu1 %1092  ;;  %v1165_v58 = vcvt.s32.f32 %v1163_v55 }
 0x615   :  { %v4469_v56 = vpop.xlane.xlu0 %1813  ;;  %vm1094_vm13 = vcmp.eq.f32.partialorder %v4209_v23, %v4466_v22  ;;  %v2622_v23 = vpop.eup %2621 }
 0x616   :  { %v1095_v46 = vsel %vm1094_vm13, %v1090_v13, inf  ;;  %v2624_v49 = vpop.eup %2623  ;;  %v1588_v13 = vand.u32 65535, %v3914_v42  ;;  %v1701_v29 = vmul.f32 0.6931472, %v2622_v23  ;;  %v5221_v42 = vld [vmem:[#allocation45_spill] sm:$0xff]  ;;  %v2443_v23 = vsel %vm1939_vm2, 1.0, %v5217_v63 }
 0x617   :  { %2261 = vadd.xlane.f32.xlu1 %v2260_v60  ;;  %1096 = vmin.xlane.f32.xlu0 %v1095_v46  ;;  %v1845_v60 = vmul.f32 0.6931472, %v2624_v49  ;;  %v5222_v46 = vld [vmem:[#allocation25_spill] sm:$0xff]  ;;  %v1418_v49 = vcvt.f32.s32 %v4382_v18 }
 0x618   :  { %v4479_v39 = vpop.xlane.xlu1 %1152  ;;  %v1590_v55 = vcvt.s32.f32 %v1588_v13 }
 0x619   :  { %v1805_v51 = vpop.xlane.xlu0 %1804  ;;  %vm1154_vm15 = vcmp.eq.f32.partialorder %v4220_v36, %v4479_v39  ;;  %v1178_v36 = vand.u32 65535, %v5220_v20  ;;  %v5224_v20 = vld [vmem:[#allocation8_spill] sm:$0xff] }
 0x61a   :  { %2629 = vlog2.f32 %v1805_v51  ;;  %v1155_v48 = vsel %vm1154_vm15, %v1150_v37, inf  ;;  %v1420_v51 = vshll.u32 %v1419_v6, 16 }
 0x61b   :  { %1566 = vmin.xlane.f32.xlu0 %v1565_v11  ;;  %1156 = vmin.xlane.f32.xlu1 %v1155_v48  ;;  %v2626_v4 = vpop.eup %2625  ;;  %2631 = vlog2.f32 %v5222_v46  ;;  %v1180_v48 = vcvt.s32.f32 %v1178_v36  ;;  %v5227_v46 = vld [vmem:[#allocation47_spill] sm:$0xff] }
 0x61c   :  { %v4488_v45 = vpop.xlane.xlu1 %1167  ;;  %v2628_v37 = vpop.eup %2627  ;;  %2633 = vlog2.f32 %v4446_v30  ;;  %v1843_v13 = vmul.f32 0.6931472, %v2626_v4  ;;  %v4510_v36 = vadd.s32 %v1420_v51, %v1418_v49 }
 0x61d   :  { %vm1169_vm3 = vcmp.eq.f32.partialorder %v5221_v42, %v4488_v45  ;;  %v4503_v42 = vsub.f32 %v5224_v20, %v1701_v29  ;;  %v5228_v20 = vld [vmem:[#allocation48_spill] sm:$0xff] }
 0x61e   :  { %v1170_v47 = vsel %vm1169_vm3, %v1165_v58, inf  ;;  %v1875_v58 = vsub.f32 %v5226_v26, %v1845_v60  ;;  %v1193_v43 = vand.u32 65535, %v5228_v20  ;;  %v5229_v60 = vld [vmem:[#allocation27_spill] sm:$0xff]  ;;  %vm1941_vm6 = vcmp.eq.s32.totalorder %v4510_v36, %v2871_v33 }
 0x61f   :  { %1581 = vmin.xlane.f32.xlu0 %v1580_v35  ;;  %1171 = vmin.xlane.f32.xlu1 %v1170_v47  ;;  %5225 = vst [vmem:[#allocation42_spill] sm:$0xff] %v4503_v42  ;;  %v1595_v35 = vsel %vm1594_vm4, %v1590_v55, inf  ;;  %v1847_v47 = vmul.f32 0.6931472, %v2628_v37  ;;  %v2239_v6 = vmul.f32 %v2443_v23, %v4503_v42  ;;  %2635 = vlog2.f32 %v5229_v60 }
 0x620   :  { %v4500_v11 = vpop.xlane.xlu1 %1182  ;;  %v2067_v26 = vmul.f32 %v2443_v23, %v1875_v58  ;;  %v1195_v28 = vcvt.s32.f32 %v1193_v43  ;;  %v1448_v20 = vcvt.f32.s32 %v4386_v5  ;;  %v5233_v23 = vld [vmem:[#allocation51_spill] sm:$0xff] }
 0x621   :  { %vm1184_vm5 = vcmp.eq.f32.partialorder %v5227_v46, %v4500_v11  ;;  %v4514_v30 = vpop.xlane.xlu0 %1819  ;;  %v5230_v46 = vld [vmem:[#allocation37_spill] sm:$0xff]  ;;  %v2257_v37 = vsel %vm117_vm0, %v2239_v6, 0.0 }
 0x622   :  { %v1185_v16 = vsel %vm1184_vm5, %v1180_v48, inf  ;;  %v1876_v55 = vsub.f32 %v5230_v46, %v1847_v47  ;;  %v5231_v48 = vld [vmem:[#allocation35_spill] sm:$0xff] }
 0x623   :  { %1596 = vmin.xlane.f32.xlu0 %v1595_v35  ;;  %1186 = vmin.xlane.f32.xlu1 %v1185_v16  ;;  %v1874_v42 = vsub.f32 %v5231_v48, %v1843_v13  ;;  %v5232_v35 = vld [vmem:[#allocation20_spill] sm:$0xff]  ;;  %v2085_v13 = vsel %vm117_vm0, %v2067_v26, 0.0  ;;  %v5234_v47 = vld [vmem:[#allocation39_spill] sm:$0xff] }
 0x624   :  { %v2630_v18 = vpop.eup %2629  ;;  %v1817_v29 = vpop.xlane.xlu1 %1816  ;;  %v1449_v16 = vcvt.f32.s32 %v5232_v35  ;;  %v2068_v60 = vmul.f32 %v4454_v31, %v1876_v55 }
 0x625   :  { %v1849_v4 = vmul.f32 0.6931472, %v2630_v18  ;;  %v2632_v51 = vpop.eup %2631  ;;  %2637 = vlog2.f32 %v1817_v29  ;;  %v2066_v43 = vmul.f32 %v4437_v32, %v1874_v42  ;;  %v5235_v29 = vld [vmem:[#allocation50_spill] sm:$0xff]  ;;  %v2445_v32 = vsel %vm1941_vm6, 1.0, %v5217_v63 }
 0x626   :  { %v2634_v46 = vpop.eup %2633  ;;  %v1705_v48 = vmul.f32 0.6931472, %v2632_v51  ;;  %2639 = vlog2.f32 %v4380_v54  ;;  %v1208_v35 = vand.u32 65535, %v5235_v29  ;;  %v2088_v42 = vsel %vm117_vm0, %v2068_v60, 0.0  ;;  %v5237_v51 = vld [vmem:[#allocation52_spill] sm:$0xff]  ;;  %v5242_v29 = vld [vmem:[#allocation26_spill] sm:$0xff] }
 0x627   :  { %2258 = vadd.xlane.f32.xlu0 %v2257_v37  ;;  %v1877_v6 = vsub.f32 %v5234_v47, %v1849_v4  ;;  %v1450_v37 = vshll.u32 %v1449_v16, 16  ;;  %2641 = vlog2.f32 %v4423_v40  ;;  %v1853_v31 = vmul.f32 0.6931472, %v2634_v46  ;;  %v5236_v4 = vld [vmem:[#allocation22_spill] sm:$0xff] }
 0x628   :  { %v4520_v49 = vpop.xlane.xlu1 %1197  ;;  %v2082_v54 = vsel %vm117_vm0, %v2066_v43, 0.0  ;;  %v1479_v16 = vcvt.f32.s32 %v5236_v4  ;;  %v5238_v40 = vld [vmem:[#allocation14_spill] sm:$0xff]  ;;  %v1210_v46 = vcvt.s32.f32 %v1208_v35  ;;  %2643 = vlog2.f32 %v5242_v29 }
 0x629   :  { %vm1199_vm7 = vcmp.eq.f32.partialorder %v5233_v23, %v4520_v49  ;;  %v4527_v58 = vpop.xlane.xlu0 %1825  ;;  %v4537_v23 = vadd.s32 %v1450_v37, %v1448_v20  ;;  %v2069_v26 = vmul.f32 %v2445_v32, %v1877_v6  ;;  %v2636_v55 = vpop.eup %2635  ;;  %v4552_v20 = vsub.f32 %v5238_v40, %v1705_v48  ;;  %v5241_v37 = vld [vmem:[#allocation53_spill] sm:$0xff] }
 0x62a   :  { %v1200_v18 = vsel %vm1199_vm7, %v1195_v28, inf  ;;  %v1223_v60 = vand.u32 65535, %v5241_v37  ;;  %v1509_v6 = vcvt.f32.s32 %v4268_v59  ;;  %v1478_v43 = vcvt.f32.s32 %v4399_v27  ;;  %v5244_v59 = vld [vmem:[#allocation30_spill] sm:$0xff] }
 0x62b   :  { %2086 = vadd.xlane.f32.xlu0 %v2085_v13  ;;  %1201 = vmin.xlane.f32.xlu1 %v1200_v18  ;;  %5239 = vst [vmem:[#allocation45_spill] sm:$0xff] %v4552_v20  ;;  %v5240_v13 = vld [vmem:[#allocation19_spill] sm:$0xff]  ;;  %v2091_v48 = vsel %vm117_vm0, %v2069_v26, 0.0  ;;  %vm1943_vm9 = vcmp.eq.s32.totalorder %v4537_v23, %v2871_v33  ;;  %v1709_v37 = vmul.f32 0.6931472, %v2636_v55  ;;  %2645 = vlog2.f32 %v4384_v52 }
 0x62c   :  { %v4534_v5 = vpop.xlane.xlu1 %1212  ;;  %v1434_v47 = vcvt.f32.s32 %v5240_v13  ;;  %v1480_v13 = vshll.u32 %v1479_v16, 16  ;;  %v1433_v29 = vcvt.f32.s32 %v5244_v59  ;;  %2647 = vlog2.f32 %v4469_v56  ;;  %v5247_v59 = vld [vmem:[#allocation28_spill] sm:$0xff] }
 0x62d   :  { %v4540_v28 = vpop.xlane.xlu0 %1828  ;;  %vm1214_vm8 = vcmp.eq.f32.partialorder %v5237_v51, %v4534_v5  ;;  %v1238_v26 = vand.u32 65535, %v4298_v2  ;;  %v2447_v52 = vsel %vm1943_vm9, 1.0, %v5217_v63  ;;  %v1539_v2 = vcvt.f32.s32 %v4323_v8 }
 0x62e   :  { %v1215_v40 = vsel %vm1214_vm8, %v1210_v46, inf  ;;  %v1435_v27 = vshll.u32 %v1434_v47, 16  ;;  %v1510_v46 = vshll.u32 %v1509_v6, 16 }
 0x62f   :  { %2089 = vadd.xlane.f32.xlu0 %v2088_v42  ;;  %2083 = vadd.xlane.f32.xlu1 %v2082_v54  ;;  %v2241_v42 = vmul.f32 %v2445_v32, %v4552_v20  ;;  %v5243_v54 = vld [vmem:[#allocation36_spill] sm:$0xff]  ;;  %v2638_v35 = vpop.eup %2637 }
 0x630   :  { %v1823_v18 = vpop.xlane.xlu1 %1822  ;;  %v1879_v51 = vsub.f32 %v5243_v54, %v1853_v31  ;;  %v1225_v31 = vcvt.s32.f32 %v1223_v60  ;;  %v4572_v54 = vadd.s32 %v1480_v13, %v1478_v43  ;;  %v2640_v16 = vpop.eup %2639  ;;  %v1857_v47 = vmul.f32 0.6931472, %v2638_v35  ;;  %v5245_v43 = vld [vmem:[#allocation32_spill] sm:$0xff] }
 0x631   :  { %v4559_v4 = vpop.xlane.xlu0 %1831  ;;  %v2263_v56 = vsel %vm117_vm0, %v2241_v42, 0.0  ;;  %v4582_v6 = vadd.s32 %v1435_v27, %v1433_v29  ;;  %2649 = vlog2.f32 %v5245_v43  ;;  %v1240_v42 = vcvt.s32.f32 %v1238_v26  ;;  %v5248_v27 = vld [vmem:[#allocation40_spill] sm:$0xff] }
 0x632   :  { %v2071_v60 = vmul.f32 %v2447_v52, %v1879_v51  ;;  %2651 = vlog2.f32 %v5247_v59  ;;  %v1253_v51 = vand.u32 65535, %v4321_v38  ;;  %vm1945_vm12 = vcmp.eq.s32.totalorder %v4572_v54, %v2871_v33 }
 0x633   :  { %2092 = vadd.xlane.f32.xlu0 %v2091_v48  ;;  %1216 = vmin.xlane.f32.xlu1 %v1215_v40  ;;  %v2642_v40 = vpop.eup %2641  ;;  %2653 = vlog2.f32 %v1823_v18  ;;  %v1540_v18 = vshll.u32 %v1539_v2, 16  ;;  %v1713_v43 = vmul.f32 0.6931472, %v2640_v16  ;;  %vm1942_vm13 = vcmp.eq.s32.totalorder %v4582_v6, %v2871_v33 }
 0x634   :  { %v4569_v32 = vpop.xlane.xlu1 %1227  ;;  %v2644_v26 = vpop.eup %2643  ;;  %2655 = vlog2.f32 %v4514_v30 }
 0x635   :  { %vm1229_vm10 = vcmp.eq.f32.partialorder %v4313_v12, %v4569_v32  ;;  %v1507_v55 = vpop.xlane.xlu0 %1506  ;;  %v5246_v12 = vld [vmem:[#allocation15_spill] sm:$0xff]  ;;  %2657 = vlog2.f32 %v4540_v28  ;;  %v2446_v28 = vsel %vm1942_vm13, 1.0, %v5217_v63 }
 0x636   :  { %v1230_v48 = vsel %vm1229_vm10, %v1225_v31, inf  ;;  %v4586_v13 = vsub.f32 %v5246_v12, %v1709_v37  ;;  %v1508_v20 = vcvt.f32.s32 %v1507_v55  ;;  %v1851_v37 = vmul.f32 0.6931472, %v2642_v40  ;;  %v2646_v12 = vpop.eup %2645 }
 0x637   :  { %2264 = vadd.xlane.f32.xlu0 %v2263_v56  ;;  %1231 = vmin.xlane.f32.xlu1 %v1230_v48  ;;  %v1881_v31 = vsub.f32 %v5248_v27, %v1857_v47  ;;  %v2097_v55 = vsel %vm117_vm0, %v2071_v60, 0.0  ;;  %v5249_v48 = vld [vmem:[#allocation21_spill] sm:$0xff]  ;;  %v1255_v47 = vcvt.s32.f32 %v1253_v51  ;;  %v1268_v60 = vand.u32 65535, %v4345_v62 }
 0x638   :  { %v4589_v35 = vpop.xlane.xlu1 %1242  ;;  %v2243_v29 = vmul.f32 %v2447_v52, %v4586_v13  ;;  %v1464_v38 = vcvt.f32.s32 %v5249_v48  ;;  %v4605_v52 = vadd.s32 %v1510_v46, %v1508_v20  ;;  %v2648_v20 = vpop.eup %2647  ;;  %v5250_v46 = vld [vmem:[#allocation33_spill] sm:$0xff] }
 0x639   :  { %vm1244_vm11 = vcmp.eq.f32.partialorder %v4337_v0, %v4589_v35  ;;  %v4594_v8 = vpop.xlane.xlu0 %1521  ;;  %v1463_v0 = vcvt.f32.s32 %v4391_v17  ;;  %v2449_v17 = vsel %vm1945_vm12, 1.0, %v5217_v63  ;;  %v1878_v59 = vsub.f32 %v5250_v46, %v1851_v37  ;;  %v5254_v46 = vld [vmem:[#allocation29_spill] sm:$0xff] }
 0x63a   :  { %v1245_v56 = vsel %vm1244_vm11, %v1240_v42, inf  ;;  %v2269_v2 = vsel %vm117_vm0, %v2243_v29, 0.0  ;;  %v2073_v62 = vmul.f32 %v2449_v17, %v1881_v31  ;;  %v1465_v27 = vshll.u32 %v1464_v38, 16 }
 0x63b   :  { %2098 = vadd.xlane.f32.xlu0 %v2097_v55  ;;  %1246 = vmin.xlane.f32.xlu1 %v1245_v56  ;;  %v1707_v55 = vmul.f32 0.6931472, %v2644_v26  ;;  %v1717_v29 = vmul.f32 0.6931472, %v2646_v12  ;;  %vm1947_vm15 = vcmp.eq.s32.totalorder %v4605_v52, %v2871_v33  ;;  %v1270_v37 = vcvt.s32.f32 %v1268_v60 }
 0x63c   :  { %v4607_v40 = vpop.xlane.xlu1 %1257  ;;  %v4629_v31 = vadd.s32 %v1465_v27, %v1463_v0  ;;  %v1855_v26 = vmul.f32 0.6931472, %v2648_v20  ;;  %2659 = vlog2.f32 %v5254_v46  ;;  %v5255_v20 = vld [vmem:[#allocation13_spill] sm:$0xff]  ;;  %v5257_v27 = vld [vmem:[#allocation38_spill] sm:$0xff] }
 0x63d   :  { %vm1259_vm14 = vcmp.eq.f32.partialorder %v4354_v41, %v4607_v40  ;;  %v1537_v16 = vpop.xlane.xlu0 %1536  ;;  %v5251_v41 = vld [vmem:[#allocation11_spill] sm:$0xff] }
 0x63e   :  { %v1538_v42 = vcvt.f32.s32 %v1537_v16  ;;  %v1260_v51 = vsel %vm1259_vm14, %v1255_v47, inf  ;;  %v4621_v30 = vsub.f32 %v5251_v41, %v1713_v43  ;;  %v2650_v47 = vpop.eup %2649  ;;  %v2103_v43 = vsel %vm117_vm0, %v2073_v62, 0.0 }
 0x63f   :  { %2270 = vadd.xlane.f32.xlu0 %v2269_v2  ;;  %1261 = vmin.xlane.f32.xlu1 %v1260_v51  ;;  %v2652_v38 = vpop.eup %2651  ;;  %v2070_v16 = vmul.f32 %v2446_v28, %v1878_v59  ;;  %v5253_v2 = vld [vmem:[#allocation23_spill] sm:$0xff]  ;;  %v1721_v51 = vmul.f32 0.6931472, %v2650_v47  ;;  %v1493_v62 = vcvt.f32.s32 %v4412_v15  ;;  %v1880_v41 = vsub.f32 %v5257_v27, %v1855_v26  ;;  %v5259_v26 = vld [vmem:[#allocation18_spill] sm:$0xff] }
 0x640   :  { %v4625_v56 = vadd.s32 %v1540_v18, %v1538_v42  ;;  %v4627_v48 = vpop.xlane.xlu1 %1272  ;;  %v2245_v12 = vmul.f32 %v2449_v17, %v4621_v30  ;;  %v2654_v60 = vpop.eup %2653  ;;  %v1494_v0 = vcvt.f32.s32 %v5253_v2  ;;  %v4646_v42 = vsub.f32 %v5255_v20, %v1707_v55  ;;  %v5256_v17 = vld [vmem:[#allocation16_spill] sm:$0xff]  ;;  %v5258_v20 = vld [vmem:[#allocation31_spill] sm:$0xff] }
 0x641   :  { %5252 = vst [vmem:[#allocation25_spill] sm:$0xff] %v4627_v48  ;;  %vm1274_vm1 = vcmp.eq.f32.partialorder %v4361_v14, %v4627_v48  ;;  %v2451_v14 = vsel %vm1947_vm15, 1.0, %v5217_v63  ;;  %v4651_v59 = vsub.f32 %v5256_v17, %v1717_v29  ;;  %vm1944_vm3 = vcmp.eq.s32.totalorder %v4629_v31, %v2871_v33  ;;  %v2656_v2 = vpop.eup %2655 }
 0x642   :  { %v1275_v18 = vsel %vm1274_vm1, %v1270_v37, inf  ;;  %vm1949_vm2 = vcmp.eq.s32.totalorder %v4625_v56, %v2871_v33  ;;  %v2242_v37 = vmul.f32 %v2446_v28, %v4646_v42  ;;  %v2275_v55 = vsel %vm117_vm0, %v2245_v12, 0.0 }
 0x643   :  { %2104 = vadd.xlane.f32.xlu0 %v2103_v43  ;;  %1276 = vmin.xlane.f32.xlu1 %v1275_v18  ;;  %v1861_v43 = vmul.f32 0.6931472, %v2654_v60  ;;  %v2094_v47 = vsel %vm117_vm0, %v2070_v16, 0.0  ;;  %v2247_v18 = vmul.f32 %v2451_v14, %v4651_v59  ;;  %v1495_v46 = vshll.u32 %v1494_v0, 16  ;;  %v2658_v16 = vpop.eup %2657 }
 0x644   :  { %v1711_v29 = vmul.f32 0.6931472, %v2652_v38  ;;  %2661 = vlog2.f32 %v5258_v20  ;;  %v2453_v15 = vsel %vm1949_vm2, 1.0, %v5217_v63  ;;  %v4667_v28 = vsub.f32 %v5259_v26, %v1721_v51  ;;  %v5262_v51 = vld [vmem:[#allocation10_spill] sm:$0xff] }
 0x645   :  { %v2448_v12 = vsel %vm1944_vm3, 1.0, %v5217_v63  ;;  %v1524_v60 = vcvt.f32.s32 %v4290_v44  ;;  %v4671_v17 = vadd.s32 %v1495_v46, %v1493_v62  ;;  %v2266_v38 = vsel %vm117_vm0, %v2242_v37, 0.0 }
 0x646   :  { %5260 = vst [vmem:[#allocation9_spill] sm:$0xff] %v4667_v28  ;;  %v2072_v0 = vmul.f32 %v2448_v12, %v1880_v41  ;;  %v1859_v27 = vmul.f32 0.6931472, %v2656_v2  ;;  %v2281_v20 = vsel %vm117_vm0, %v2247_v18, 0.0  ;;  %v2249_v48 = vmul.f32 %v2453_v15, %v4667_v28  ;;  %v2660_v46 = vpop.eup %2659  ;;  %v5263_v2 = vld [vmem:[#allocation41_spill] sm:$0xff] }
 0x647   :  { %2276 = vadd.xlane.f32.xlu0 %v2275_v55  ;;  %2095 = vadd.xlane.f32.xlu1 %v2094_v47  ;;  %v5261_v55 = vld [vmem:[#allocation44_spill] sm:$0xff]  ;;  %2663 = vlog2.f32 %v4388_v7  ;;  %v4679_v26 = vsub.f32 %v5262_v51, %v1711_v29  ;;  %v1865_v44 = vmul.f32 0.6931472, %v2658_v16  ;;  %v1523_v62 = vcvt.f32.s32 %v4594_v8  ;;  %v5264_v16 = vld [vmem:[#allocation46_spill] sm:$0xff] }
 0x648   :  { %v1883_v47 = vsub.f32 %v5261_v55, %v1861_v43  ;;  %v1525_v37 = vshll.u32 %v1524_v60, 16  ;;  %v1554_v41 = vcvt.f32.s32 %v4352_v24  ;;  %vm1946_vm4 = vcmp.eq.s32.totalorder %v4671_v17, %v2871_v33  ;;  %v1552_v43 = vpop.xlane.xlu0 %1551 }
 0x649   :  { %v2244_v18 = vmul.f32 %v2448_v12, %v4679_v26  ;;  %v1882_v7 = vsub.f32 %v5263_v2, %v1859_v27  ;;  %v2100_v29 = vsel %vm117_vm0, %v2072_v0, 0.0  ;;  %2665 = vlog2.f32 %v4527_v58 }
 0x64a   :  { %v2075_v55 = vmul.f32 %v2451_v14, %v1883_v47  ;;  %v1715_v8 = vmul.f32 0.6931472, %v2660_v46  ;;  %v1885_v24 = vsub.f32 %v5264_v16, %v1865_v44  ;;  %v4691_v60 = vadd.s32 %v1525_v37, %v1523_v62  ;;  %v5266_v44 = vld [vmem:[#allocation12_spill] sm:$0xff] }
 0x64b   :  { %2282 = vadd.xlane.f32.xlu0 %v2281_v20  ;;  %2267 = vadd.xlane.f32.xlu1 %v2266_v38  ;;  %v2287_v38 = vsel %vm117_vm0, %v2249_v48, 0.0  ;;  %v1553_v20 = vcvt.f32.s32 %v1552_v43  ;;  %v1555_v28 = vshll.u32 %v1554_v41, 16  ;;  %v2450_v48 = vsel %vm1946_vm4, 1.0, %v5217_v63 }
 0x64c   :  { %v2109_v12 = vsel %vm117_vm0, %v2075_v55, 0.0  ;;  %v2272_v14 = vsel %vm117_vm0, %v2244_v18, 0.0  ;;  %v2077_v58 = vmul.f32 %v2453_v15, %v1885_v24  ;;  %v2074_v0 = vmul.f32 %v2450_v48, %v1882_v7 }
 0x64d   :  { %2667 = vlog2.f32 %v4559_v4  ;;  %vm1948_vm5 = vcmp.eq.s32.totalorder %v4691_v60, %v2871_v33  ;;  %v4702_v47 = vadd.s32 %v1555_v28, %v1553_v20  ;;  %v4705_v62 = vsub.f32 %v5266_v44, %v1715_v8  ;;  %v5267_v28 = vld [vmem:[#allocation17_spill] sm:$0xff]  ;;  %v5268_v8 = vld [vmem:[#allocation24_spill] sm:$0xff] }
 0x64e   :  { %v2662_v51 = vpop.eup %2661  ;;  %v2115_v37 = vsel %vm117_vm0, %v2077_v58, 0.0  ;;  %v2106_v41 = vsel %vm117_vm0, %v2074_v0, 0.0  ;;  %v2452_v4 = vsel %vm1948_vm5, 1.0, %v5217_v63 }
 0x64f   :  { %2288 = vadd.xlane.f32.xlu0 %v2287_v38  ;;  %2101 = vadd.xlane.f32.xlu1 %v2100_v29  ;;  %v1719_v27 = vmul.f32 0.6931472, %v2662_v51  ;;  %5265 = vst [vmem:[#allocation8_spill] sm:$0xff] %v4702_v47  ;;  %v2246_v15 = vmul.f32 %v2450_v48, %v4705_v62  ;;  %vm1950_vm6 = vcmp.eq.s32.totalorder %v4702_v47, %v2871_v33  ;;  %v5270_v48 = vld [vmem:[#allocation43_spill] sm:$0xff] }
 0x650   :  { %v2454_v29 = vsel %vm1950_vm6, 1.0, %v5217_v63 }
 0x651   :  { %v2664_v46 = vpop.eup %2663  ;;  %v4714_v18 = vsub.f32 %v5267_v28, %v1719_v27  ;;  %v2278_v7 = vsel %vm117_vm0, %v2246_v15, 0.0  ;;  %v5271_v27 = vld [vmem:[#allocation49_spill] sm:$0xff]  ;;  %v1835_v15 = vpop.xlane.xlu0 %1834 }
 0x652   :  { %v1723_v43 = vmul.f32 0.6931472, %v2664_v46  ;;  %v1691_v28 = vpop.xlane.xlu1 %1690 }
 0x653   :  { %2110 = vadd.xlane.f32.xlu0 %v2109_v12  ;;  %2273 = vadd.xlane.f32.xlu1 %v2272_v14  ;;  %v2666_v2 = vpop.eup %2665  ;;  %v2248_v38 = vmul.f32 %v2452_v4, %v4714_v18  ;;  %2669 = vlog2.f32 %v1691_v28  ;;  %v1114_v28 = vcvt.f32.s32 %v4401_v50 }
 0x654   :  { %v1863_v55 = vmul.f32 0.6931472, %v2666_v2  ;;  %v4720_v16 = vsub.f32 %v5268_v8, %v1723_v43  ;;  %2671 = vlog2.f32 %v1835_v15  ;;  %v1129_v15 = vcvt.f32.s32 %v4420_v34 }
 0x655   :  { %v2284_v20 = vsel %vm117_vm0, %v2248_v38, 0.0  ;;  %v1838_v43 = vpop.xlane.xlu0 %1837  ;;  %v1054_v38 = vcvt.f32.s32 %v4393_v9  ;;  %v1084_v9 = vcvt.f32.s32 %v4429_v19  ;;  %v1115_v34 = vshll.u32 %v1114_v28, 16 }
 0x656   :  { %5269 = vst [vmem:[#allocation34_spill] sm:$0xff] %v4720_v16  ;;  %v2250_v51 = vmul.f32 %v2454_v29, %v4720_v16  ;;  %v1884_v12 = vsub.f32 %v5270_v48, %v1863_v55  ;;  %v4732_v55 = vpop.xlane.xlu1 %1693  ;;  %2673 = vlog2.f32 %v1838_v43 }
 0x657   :  { %2116 = vadd.xlane.f32.xlu0 %v2115_v37  ;;  %2107 = vadd.xlane.f32.xlu1 %v2106_v41  ;;  %v2668_v24 = vpop.eup %2667  ;;  %v1055_v8 = vshll.u32 %v1054_v38, 16 }
 0x658   :  { %v1867_v14 = vmul.f32 0.6931472, %v2668_v24  ;;  %v2290_v58 = vsel %vm117_vm0, %v2250_v51, 0.0  ;;  %v2076_v0 = vmul.f32 %v2452_v4, %v1884_v12  ;;  %v1069_v24 = vcvt.f32.s32 %v4409_v53 }
 0x659   :  { %v4729_v2 = vpop.xlane.xlu0 %1840 }
 0x65a   :  { %v1886_v44 = vsub.f32 %v5271_v27, %v1867_v14  ;;  %v2112_v46 = vsel %vm117_vm0, %v2076_v0, 0.0  ;;  %v1070_v48 = vshll.u32 %v1069_v24, 16  ;;  %v1099_v24 = vcvt.f32.s32 %v4466_v22 }
 0x65b   :  { %2279 = vadd.xlane.f32.xlu1 %v2278_v7  ;;  %2675 = vlog2.f32 %v4729_v2 }
 0x65c   :  { %v2078_v37 = vmul.f32 %v2454_v29, %v1886_v44  ;;  %v4737_v29 = vpop.xlane.xlu1 %1696  ;;  %2677 = vlog2.f32 %v4732_v55 }
 0x65d   :  { %2679 = vlog2.f32 %v4737_v29 }
 0x65e   :  { %v2118_v41 = vsel %vm117_vm0, %v2078_v37, 0.0 }
 0x65f   :  { %2285 = vadd.xlane.f32.xlu1 %v2284_v20 }
 0x663   :  { %2291 = vadd.xlane.f32.xlu1 %v2290_v58 }
 0x667   :  { %2113 = vadd.xlane.f32.xlu1 %v2112_v46  ;;  %v1085_v46 = vshll.u32 %v1084_v9, 16 }
 0x66b   :  { %2119 = vadd.xlane.f32.xlu1 %v2118_v41 }
 0x688   :  { %v1052_v7 = vpop.xlane.xlu0 %1051 }
 0x689   :  { %v1053_v4 = vcvt.f32.s32 %v1052_v7  ;;  %v1584_v7 = vcvt.f32.s32 %v4372_v25 }
 0x68b   :  { %v4735_v20 = vadd.s32 %v1055_v8, %v1053_v4  ;;  %v1599_v4 = vcvt.f32.s32 %v4374_v1  ;;  %v1585_v9 = vshll.u32 %v1584_v7, 16  ;;  %v2670_v1 = vpop.eup %2669 }
 0x68c   :  { %v1112_v58 = vpop.xlane.xlu1 %1111  ;;  %v1725_v47 = vmul.f32 0.6931472, %v2670_v1 }
 0x68d   :  { %vm2190_vm7 = vcmp.eq.s32.totalorder %v4417_v3, %v4735_v20  ;;  %v4769_v50 = vshll.u32 %v1599_v4, 16  ;;  %vm1890_vm10 = vcmp.eq.s32.totalorder %v4735_v20, %v2871_v33 }
 0x68e   :  { %v2458_v53 = vsel %vm2190_vm7, 1.0, %v5217_v63 }
 0x690   :  { %v1067_v51 = vpop.xlane.xlu0 %1066 }
 0x691   :  { %v1068_v12 = vcvt.f32.s32 %v1067_v51 }
 0x693   :  { %v4739_v14 = vadd.s32 %v1070_v48, %v1068_v12  ;;  %v1159_v48 = vcvt.f32.s32 %v4479_v39  ;;  %v1113_v12 = vcvt.f32.s32 %v1112_v58  ;;  %v1204_v39 = vcvt.f32.s32 %v4520_v49 }
 0x694   :  { %v1127_v8 = vpop.xlane.xlu0 %1126 }
 0x695   :  { %vm2191_vm8 = vcmp.eq.s32.totalorder %v4477_v57, %v4739_v14  ;;  %v1569_v57 = vcvt.f32.s32 %v4370_v10  ;;  %v1174_v10 = vcvt.f32.s32 %v4488_v45  ;;  %v1160_v7 = vshll.u32 %v1159_v48, 16 }
 0x696   :  { %v4748_v0 = vsel %vm2191_vm8, 1.0, %v5217_v63  ;;  %v1128_v4 = vcvt.f32.s32 %v1127_v8  ;;  %v1219_v8 = vcvt.f32.s32 %v4534_v5  ;;  %vm1891_vm14 = vcmp.eq.s32.totalorder %v4739_v14, %v2871_v33  ;;  %v5279_v5 = vld [vmem:[#allocation45_spill] sm:$0xff] }
 0x697   :  { %v2318_v27 = vadd.f32 %v4748_v0, %v2458_v53  ;;  %v1570_v25 = vshll.u32 %v1569_v57, 16 }
 0x698   :  { %v1082_v44 = vpop.xlane.xlu1 %1081 }
 0x699   :  { %v1083_v37 = vcvt.f32.s32 %v1082_v44  ;;  %v1130_v44 = vshll.u32 %v1129_v15, 16 }
 0x69b   :  { %v4751_v41 = vadd.s32 %v1085_v46, %v1083_v37  ;;  %v1189_v46 = vcvt.f32.s32 %v4500_v11 }
 0x69c   :  { %v4753_v3 = vpop.xlane.xlu1 %1141 }
 0x69d   :  { %vm2192_vm9 = vcmp.eq.s32.totalorder %v4427_v61, %v4751_v41  ;;  %v1144_v61 = vcvt.f32.s32 %v4439_v21  ;;  %v1100_v21 = vshll.u32 %v1099_v24, 16  ;;  %v1190_v15 = vshll.u32 %v1189_v46, 16 }
 0x69e   :  { %v2460_v19 = vsel %vm2192_vm9, 1.0, %v5217_v63  ;;  %v1143_v20 = vcvt.f32.s32 %v4753_v3  ;;  %vm1892_vm5 = vcmp.eq.s32.totalorder %v4751_v41, %v2871_v33 }
 0x69f   :  { %v2319_v38 = vadd.f32 %v2460_v19, %v2318_v27  ;;  %v1145_v57 = vshll.u32 %v1144_v61, 16 }
 0x6a0   :  { %v2256_v43 = vpop.xlane.xlu1 %2255 }
 0x6a1   :  { %v2302_v51 = vsub.f32 0.0, %v2256_v43  ;;  %v2672_v43 = vpop.eup %2671 }
 0x6a2   :  { %v2674_v58 = vpop.eup %2673  ;;  %v1869_v24 = vmul.f32 0.6931472, %v2672_v43 }
 0x6a3   :  { %v4767_v27 = vmul.f32 %v2458_v53, %v2302_v51  ;;  %v1175_v53 = vshll.u32 %v1174_v10, 16  ;;  %v1116_v51 = vadd.s32 %v1115_v34, %v1113_v12  ;;  %v1871_v61 = vmul.f32 0.6931472, %v2674_v58  ;;  %v5273_v34 = vld [vmem:[#allocation55_spill] sm:$0xff] }
 0x6a4   :  { %v1097_v22 = vpop.xlane.xlu0 %1096  ;;  %v2262_v37 = vpop.xlane.xlu1 %2261  ;;  %v1887_v46 = vsub.f32 %v5273_v34, %v1869_v24  ;;  %v2427_v24 = vsel %vm1891_vm14, 1.0, %v5217_v63 }
 0x6a5   :  { %v1098_v16 = vcvt.f32.s32 %v1097_v22  ;;  %v2304_v45 = vsub.f32 0.0, %v2262_v37  ;;  %v4780_v37 = vshll.u32 %v1204_v39, 16  ;;  %vm1894_vm12 = vcmp.eq.s32.totalorder %v1116_v51, %v2871_v33  ;;  %v5274_v39 = vld [vmem:[#allocation57_spill] sm:$0xff]  ;;  %v2676_v34 = vpop.eup %2675 }
 0x6a6   :  { %vm2194_vm13 = vcmp.eq.s32.totalorder %v4582_v6, %v1116_v51  ;;  %v2430_v58 = vsel %vm1894_vm12, 1.0, %v5217_v63 }
 0x6a7   :  { %v4775_v28 = vadd.s32 %v1100_v21, %v1098_v16  ;;  %v4777_v11 = vmul.f32 %v2460_v19, %v2304_v45  ;;  %v2426_v16 = vsel %vm1890_vm10, 1.0, %v5217_v63  ;;  %v1131_v19 = vadd.s32 %v1130_v44, %v1128_v4 }
 0x6a8   :  { %v1567_v49 = vpop.xlane.xlu0 %1566  ;;  %v1157_v22 = vpop.xlane.xlu1 %1156  ;;  %v1888_v44 = vsub.f32 %v5274_v39, %v1871_v61  ;;  %v4813_v14 = vsel %vm2194_vm13, 1.0, %v5217_v63 }
 0x6a9   :  { %v1568_v48 = vcvt.f32.s32 %v1567_v49  ;;  %vm2193_vm11 = vcmp.eq.s32.totalorder %v4510_v36, %v4775_v28  ;;  %v5272_v36 = vld [vmem:[#allocation54_spill] sm:$0xff]  ;;  %v1158_v45 = vcvt.f32.s32 %v1157_v22  ;;  %vm1895_vm1 = vcmp.eq.s32.totalorder %v1131_v19, %v2871_v33 }
 0x6aa   :  { %v4791_v2 = vsel %vm2193_vm11, 1.0, %v5217_v63  ;;  %v4798_v1 = vsub.f32 %v5272_v36, %v1725_v47  ;;  %v4819_v49 = vadd.s32 %v1145_v57, %v1143_v20  ;;  %vm2195_vm2 = vcmp.eq.s32.totalorder %v4537_v23, %v1131_v19 }
 0x6ab   :  { %v4793_v10 = vadd.s32 %v1570_v25, %v1568_v48  ;;  %v2320_v12 = vadd.f32 %v4791_v2, %v2319_v38  ;;  %v5275_v25 = vld [vmem:[#allocation60_spill] sm:$0xff]  ;;  %vm1893_vm11 = vcmp.eq.s32.totalorder %v4775_v28, %v2871_v33  ;;  %v1220_v28 = vshll.u32 %v1219_v8, 16 }
 0x6ac   :  { %v1582_v43 = vpop.xlane.xlu0 %1581  ;;  %v1172_v21 = vpop.xlane.xlu1 %1171  ;;  %v1986_v6 = vmul.f32 %v2426_v16, %v5275_v25  ;;  %vm2196_vm4 = vcmp.eq.s32.totalorder %v4629_v31, %v4819_v49  ;;  %vm1896_vm10 = vcmp.eq.s32.totalorder %v4819_v49, %v2871_v33  ;;  %v1234_v49 = vcvt.f32.s32 %v4569_v32 }
 0x6ad   :  { %vm1951_vm15 = vcmp.eq.s32.totalorder %v4793_v10, %v2871_v33  ;;  %v1583_v38 = vcvt.f32.s32 %v1582_v43  ;;  %v1173_v61 = vcvt.f32.s32 %v1172_v21  ;;  %v2321_v51 = vadd.f32 %v4813_v14, %v2320_v12  ;;  %v5276_v43 = vld [vmem:[#allocation42_spill] sm:$0xff] }
 0x6ae   :  { %v2455_v47 = vsel %vm1951_vm15, 1.0, %v5217_v63  ;;  %v1987_v21 = vmul.f32 %v2427_v24, %v5276_v43 }
 0x6af   :  { %v4816_v3 = vadd.s32 %v1585_v9, %v1583_v38  ;;  %v2079_v4 = vmul.f32 %v2455_v47, %v1887_v46  ;;  %v1990_v9 = vmul.f32 %v2430_v58, %v4646_v42  ;;  %v4826_v46 = vadd.s32 %v1160_v7, %v1158_v45 }
 0x6b0   :  { %v1597_v22 = vpop.xlane.xlu0 %1596  ;;  %v1187_v48 = vpop.xlane.xlu1 %1186  ;;  %v2431_v42 = vsel %vm1895_vm1, 1.0, %v5217_v63  ;;  %v4841_v7 = vsel %vm2195_vm2, 1.0, %v5217_v63  ;;  %v4843_v39 = vadd.s32 %v1175_v53, %v1173_v61  ;;  %v1873_v45 = vmul.f32 0.6931472, %v2676_v34 }
 0x6b1   :  { %vm1952_vm3 = vcmp.eq.s32.totalorder %v4816_v3, %v2871_v33  ;;  %v1598_v16 = vcvt.f32.s32 %v1597_v22  ;;  %v1188_v36 = vcvt.f32.s32 %v1187_v48  ;;  %v2121_v57 = vsel %vm117_vm0, %v2079_v4, 0.0 }
 0x6b2   :  { %v4830_v20 = vsel %vm1952_vm3, 1.0, %v5217_v63  ;;  %2122 = vadd.xlane.f32.xlu0 %v2121_v57  ;;  %v2014_v58 = vsel %vm117_vm0, %v1990_v9, 0.0  ;;  %v2002_v53 = vsel %vm117_vm0, %v1986_v6, 0.0  ;;  %vm2197_vm6 = vcmp.eq.s32.totalorder %v4572_v54, %v4826_v46 }
 0x6b3   :  { %v4834_v23 = vadd.s32 %v4769_v50, %v1598_v16  ;;  %v2080_v12 = vmul.f32 %v4830_v20, %v1888_v44  ;;  %v4845_v38 = vadd.s32 %v1190_v15, %v1188_v36  ;;  %v2322_v50 = vadd.f32 %v4841_v7, %v2321_v51 }
 0x6b4   :  { %v2259_v25 = vpop.xlane.xlu0 %2258  ;;  %v2005_v15 = vsel %vm117_vm0, %v1987_v21, 0.0  ;;  %v1991_v41 = vmul.f32 %v2431_v42, %v4586_v13  ;;  %v4863_v4 = vsel %vm2196_vm4, 1.0, %v5217_v63  ;;  %v2428_v6 = vsel %vm1892_vm5, 1.0, %v5217_v63  ;;  %v5278_v21 = vld [vmem:[#allocation61_spill] sm:$0xff] }
 0x6b5   :  { %v2303_v44 = vsub.f32 0.0, %v2259_v25  ;;  %v2124_v19 = vsel %vm117_vm0, %v2080_v12, 0.0  ;;  %vm1953_vm7 = vcmp.eq.s32.totalorder %v4834_v23, %v2871_v33  ;;  %vm2199_vm8 = vcmp.eq.s32.totalorder %v4605_v52, %v4845_v38 }
 0x6b6   :  { %2125 = vadd.xlane.f32.xlu1 %v2124_v19  ;;  %2015 = vadd.xlane.f32.xlu0 %v2014_v58  ;;  %v2323_v54 = vadd.f32 %v4863_v4, %v2322_v50  ;;  %vm2198_vm9 = vcmp.eq.s32.totalorder %v4671_v17, %v4843_v39  ;;  %v4877_v22 = vsel %vm2197_vm6, 1.0, %v5217_v63  ;;  %v2251_v52 = vmul.f32 %v2455_v47, %v4798_v1  ;;  %v5277_v47 = vld [vmem:[#allocation59_spill] sm:$0xff] }
 0x6b7   :  { %v2340_v31 = vmul.f32 %v4748_v0, %v2303_v44  ;;  %v4886_v17 = vsel %vm1953_vm7, 1.0, %v5217_v63  ;;  %v4894_v16 = vsel %vm2199_vm8, 1.0, %v5217_v63  ;;  %v4897_v36 = vsel %vm2198_vm9, 1.0, %v5217_v63 }
 0x6b8   :  { %v4865_v24 = vpop.xlane.xlu0 %2086  ;;  %v1202_v61 = vpop.xlane.xlu1 %1201  ;;  %v2324_v48 = vadd.f32 %v4877_v22, %v2323_v54  ;;  %v1889_v9 = vsub.f32 %v5277_v47, %v1873_v45  ;;  %v2017_v43 = vsel %vm117_vm0, %v1991_v41, 0.0  ;;  %vm1897_vm12 = vcmp.eq.s32.totalorder %v4826_v46, %v2871_v33 }
 0x6b9   :  { %v2355_v13 = vadd.f32 %v2340_v31, %v4767_v27  ;;  %v1203_v0 = vcvt.f32.s32 %v1202_v61  ;;  %v2432_v42 = vsel %vm1896_vm10, 1.0, %v5217_v63  ;;  %v2293_v25 = vsel %vm117_vm0, %v2251_v52, 0.0 }
 0x6ba   :  { %2003 = vadd.xlane.f32.xlu1 %v2002_v53  ;;  %2006 = vadd.xlane.f32.xlu0 %v2005_v15  ;;  %v2325_v12 = vadd.f32 %v4897_v36, %v2324_v48  ;;  %v2081_v50 = vmul.f32 %v4886_v17, %v1889_v9  ;;  %vm1898_vm14 = vcmp.eq.s32.totalorder %v4843_v39, %v2871_v33  ;;  %v2433_v32 = vsel %vm1897_vm12, 1.0, %v5217_v63 }
 0x6bb   :  { %v1206_v27 = vadd.s32 %v4780_v37, %v1203_v0  ;;  %v4891_v51 = vadd.f32 %v2355_v13, %v4777_v11  ;;  %v1988_v37 = vmul.f32 %v2428_v6, %v5278_v21  ;;  %v2429_v11 = vsel %vm1893_vm11, 1.0, %v5217_v63 }
 0x6bc   :  { %v4900_v34 = vpop.xlane.xlu0 %2089  ;;  %v4902_v57 = vpop.xlane.xlu1 %2083  ;;  %v2326_v44 = vadd.f32 %v4894_v16, %v2325_v12  ;;  %v1992_v58 = vmul.f32 %v2432_v42, %v4679_v26  ;;  %v1989_v8 = vmul.f32 %v2429_v11, %v5279_v5  ;;  %v2127_v55 = vsel %vm117_vm0, %v2081_v50, 0.0  ;;  %v5280_v50 = vld [vmem:[#allocation8_spill] sm:$0xff] }
 0x6bd   :  { %vm2200_vm13 = vcmp.eq.s32.totalorder %v4691_v60, %v1206_v27  ;;  %v2008_v31 = vsel %vm117_vm0, %v1988_v37, 0.0  ;;  %vm1899_vm15 = vcmp.eq.s32.totalorder %v4845_v38, %v2871_v33  ;;  %vm1900_vm1 = vcmp.eq.s32.totalorder %v1206_v27, %v2871_v33  ;;  %v2678_v12 = vpop.eup %2677 }
 0x6be   :  { %2018 = vadd.xlane.f32.xlu1 %v2017_v43  ;;  %v4921_v45 = vsel %vm2200_vm13, 1.0, %v5217_v63  ;;  %2294 = vadd.xlane.f32.xlu0 %v2293_v25  ;;  %v2434_v41 = vsel %vm1898_vm14, 1.0, %v5217_v63  ;;  %v1235_v61 = vshll.u32 %v1234_v49, 16  ;;  %v1249_v46 = vcvt.f32.s32 %v4589_v35  ;;  %v2680_v49 = vpop.eup %2679 }
 0x6bf   :  { %v2327_v53 = vadd.f32 %v4921_v45, %v2326_v44  ;;  %v2020_v54 = vsel %vm117_vm0, %v1992_v58, 0.0  ;;  %v1993_v13 = vmul.f32 %v2433_v32, %v4621_v30  ;;  %v2011_v48 = vsel %vm117_vm0, %v1989_v8, 0.0  ;;  %v5282_v32 = vld [vmem:[#allocation9_spill] sm:$0xff] }
 0x6c0   :  { %v4930_v60 = vpop.xlane.xlu0 %2092  ;;  %v1217_v19 = vpop.xlane.xlu1 %1216  ;;  %v1994_v47 = vmul.f32 %v2434_v41, %v4705_v62  ;;  %v2435_v35 = vsel %vm1899_vm15, 1.0, %v5217_v63  ;;  %v2436_v39 = vsel %vm1900_vm1, 1.0, %v5217_v63  ;;  %v1250_v43 = vshll.u32 %v1249_v46, 16  ;;  %v5283_v41 = vld [vmem:[#allocation34_spill] sm:$0xff] }
 0x6c1   :  { %v1218_v15 = vcvt.f32.s32 %v1217_v19  ;;  %v1264_v21 = vcvt.f32.s32 %v4607_v40  ;;  %v2023_v37 = vsel %vm117_vm0, %v1993_v13, 0.0  ;;  %v1995_v42 = vmul.f32 %v2435_v35, %v4651_v59  ;;  %v5281_v19 = vld [vmem:[#allocation25_spill] sm:$0xff]  ;;  %v5284_v13 = vld [vmem:[#allocation56_spill] sm:$0xff] }
 0x6c2   :  { %2009 = vadd.xlane.f32.xlu1 %v2008_v31  ;;  %2128 = vadd.xlane.f32.xlu0 %v2127_v55  ;;  %v1996_v25 = vmul.f32 %v2436_v39, %v4714_v18  ;;  %v1279_v58 = vcvt.f32.s32 %v5281_v19 }
 0x6c3   :  { %v1221_v26 = vadd.s32 %v1220_v28, %v1218_v15  ;;  %v1265_v59 = vshll.u32 %v1264_v21, 16  ;;  %v2029_v8 = vsel %vm117_vm0, %v1995_v42, 0.0 }
 0x6c4   :  { %v2265_v6 = vpop.xlane.xlu0 %2264  ;;  %v1232_v29 = vpop.xlane.xlu1 %1231 }
 0x6c5   :  { %v2305_v0 = vsub.f32 0.0, %v2265_v6  ;;  %v1233_v52 = vcvt.f32.s32 %v1232_v29  ;;  %vm2201_vm2 = vcmp.eq.s32.totalorder %v4625_v56, %v1221_v26  ;;  %vm1901_vm3 = vcmp.eq.s32.totalorder %v1221_v26, %v2871_v33 }
 0x6c6   :  { %2012 = vadd.xlane.f32.xlu1 %v2011_v48  ;;  %v4963_v30 = vsel %vm2201_vm2, 1.0, %v5217_v63  ;;  %2021 = vadd.xlane.f32.xlu0 %v2020_v54  ;;  %v2437_v40 = vsel %vm1901_vm3, 1.0, %v5217_v63  ;;  %v2032_v26 = vsel %vm117_vm0, %v1996_v25, 0.0  ;;  %v1280_v54 = vshll.u32 %v1279_v58, 16 }
 0x6c7   :  { %v2342_v9 = vmul.f32 %v4791_v2, %v2305_v0  ;;  %v1236_v56 = vadd.s32 %v1235_v61, %v1233_v52  ;;  %v2328_v62 = vadd.f32 %v4963_v30, %v2327_v53  ;;  %v2026_v2 = vsel %vm117_vm0, %v1994_v47, 0.0 }
 0x6c8   :  { %v1247_v38 = vpop.xlane.xlu1 %1246  ;;  %v1727_v53 = vmul.f32 0.6931472, %v2678_v12  ;;  %v4986_v15 = vpop.xlane.xlu0 %2098  ;;  %v1997_v55 = vmul.f32 %v2437_v40, %v5282_v32  ;;  %v1729_v52 = vmul.f32 0.6931472, %v2680_v49 }
 0x6c9   :  { %v4971_v27 = vadd.f32 %v4891_v51, %v2342_v9  ;;  %vm1902_vm4 = vcmp.eq.s32.totalorder %v1236_v56, %v2871_v33  ;;  %v1248_v11 = vcvt.f32.s32 %v1247_v38  ;;  %vm2202_vm5 = vcmp.eq.s32.totalorder %v5280_v50, %v1236_v56 }
 0x6ca   :  { %2024 = vadd.xlane.f32.xlu1 %v2023_v37  ;;  %2027 = vadd.xlane.f32.xlu0 %v2026_v2  ;;  %v2438_v51 = vsel %vm1902_vm4, 1.0, %v5217_v63  ;;  %v4983_v28 = vsel %vm2202_vm5, 1.0, %v5217_v63  ;;  %v1744_v0 = vsub.f32 %v5284_v13, %v1727_v53  ;;  %v2035_v39 = vsel %vm117_vm0, %v1997_v55, 0.0  ;;  %v5285_v37 = vld [vmem:[#allocation58_spill] sm:$0xff] }
 0x6cb   :  { %v1251_v44 = vadd.s32 %v1250_v43, %v1248_v11  ;;  %v2329_v31 = vadd.f32 %v4983_v28, %v2328_v62  ;;  %v1998_v61 = vmul.f32 %v2438_v51, %v5283_v41  ;;  %v1745_v12 = vsub.f32 %v5285_v37, %v1729_v52 }
 0x6cc   :  { %v1262_v18 = vpop.xlane.xlu1 %1261 }
 0x6cd   :  { %vm1903_vm6 = vcmp.eq.s32.totalorder %v1251_v44, %v2871_v33  ;;  %v1263_v5 = vcvt.f32.s32 %v1262_v18  ;;  %vm2203_vm7 = vcmp.eq.s32.totalorder %v4793_v10, %v1251_v44  ;;  %v2271_v10 = vpop.xlane.xlu0 %2270  ;;  %v2038_v56 = vsel %vm117_vm0, %v1998_v61, 0.0 }
 0x6ce   :  { %2030 = vadd.xlane.f32.xlu1 %v2029_v8  ;;  %v2439_v46 = vsel %vm1903_vm6, 1.0, %v5217_v63  ;;  %2033 = vadd.xlane.f32.xlu0 %v2032_v26  ;;  %v4997_v29 = vsel %vm2203_vm7, 1.0, %v5217_v63  ;;  %v2307_v49 = vsub.f32 0.0, %v2271_v10 }
 0x6cf   :  { %v1266_v6 = vadd.s32 %v1265_v59, %v1263_v5  ;;  %v2330_v47 = vadd.f32 %v4997_v29, %v2329_v31  ;;  %v1999_v9 = vmul.f32 %v2439_v46, %v4798_v1 }
 0x6d0   :  { %v1277_v48 = vpop.xlane.xlu1 %1276  ;;  %v2344_v53 = vmul.f32 %v4841_v7, %v2307_v49 }
 0x6d1   :  { %vm1904_vm8 = vcmp.eq.s32.totalorder %v1266_v6, %v2871_v33  ;;  %v1278_v35 = vcvt.f32.s32 %v1277_v48  ;;  %vm2204_vm9 = vcmp.eq.s32.totalorder %v4816_v3, %v1266_v6  ;;  %v2041_v42 = vsel %vm117_vm0, %v1999_v9, 0.0  ;;  %v5023_v44 = vpop.xlane.xlu0 %2104 }
 0x6d2   :  { %2036 = vadd.xlane.f32.xlu1 %v2035_v39  ;;  %v2440_v62 = vsel %vm1904_vm8, 1.0, %v5217_v63  ;;  %2039 = vadd.xlane.f32.xlu0 %v2038_v56  ;;  %v5008_v38 = vsel %vm2204_vm9, 1.0, %v5217_v63  ;;  %v2253_v3 = vmul.f32 %v4886_v17, %v1745_v12  ;;  %v2252_v17 = vmul.f32 %v4830_v20, %v1744_v0 }
 0x6d3   :  { %v1281_v43 = vadd.s32 %v1280_v54, %v1278_v35  ;;  %v2000_v21 = vmul.f32 %v2440_v62, %v1744_v0  ;;  %v2331_v1 = vadd.f32 %v5008_v38, %v2330_v47 }
 0x6d4   :  { %v5011_v11 = vpop.xlane.xlu1 %2095  ;;  %v2299_v58 = vsel %vm117_vm0, %v2253_v3, 0.0  ;;  %v2296_v31 = vsel %vm117_vm0, %v2252_v17, 0.0 }
 0x6d5   :  { %vm1905_vm10 = vcmp.eq.s32.totalorder %v1281_v43, %v2871_v33  ;;  %v2044_v2 = vsel %vm117_vm0, %v2000_v21, 0.0  ;;  %vm2205_vm11 = vcmp.eq.s32.totalorder %v4834_v23, %v1281_v43  ;;  %v2277_v5 = vpop.xlane.xlu0 %2276 }
 0x6d6   :  { %2042 = vadd.xlane.f32.xlu1 %v2041_v42  ;;  %v2441_v25 = vsel %vm1905_vm10, 1.0, %v5217_v63  ;;  %2045 = vadd.xlane.f32.xlu0 %v2044_v2  ;;  %v5021_v50 = vsel %vm2205_vm11, 1.0, %v5217_v63  ;;  %v2309_v55 = vsub.f32 0.0, %v2277_v5  ;;  %v2132_v2 = vsub.f32 0.0, %v4900_v34 }
 0x6d7   :  { %v2001_v40 = vmul.f32 %v2441_v25, %v1745_v12  ;;  %v5026_v33 = vadd.f32 %v5021_v50, %v2331_v1  ;;  %v2131_v12 = vsub.f32 0.0, %v4865_v24  ;;  %v2137_v34 = vsub.f32 0.0, %v5023_v44 }
 0x6d8   :  { %v2268_v51 = vpop.xlane.xlu1 %2267 }
 0x6d9   :  { %v2306_v59 = vsub.f32 0.0, %v2268_v51  ;;  %v2047_v19 = vsel %vm117_vm0, %v2001_v40, 0.0  ;;  %v2283_v41 = vpop.xlane.xlu0 %2282  ;;  %vm2379_vm0 = vcmask 0  }
 0x6da   :  { %2048 = vadd.xlane.f32.xlu1 %v2047_v19  ;;  %2300 = vadd.xlane.f32.xlu0 %v2299_v58  ;;  %v2311_v7 = vsub.f32 0.0, %v2283_v41 }
 0x6db   :  { %v2343_v23 = vmul.f32 %v4813_v14, %v2306_v59  ;;  %v2346_v14 = vmul.f32 %v4877_v22, %v2309_v55 }
 0x6dc   :  { %v2102_v63 = vpop.xlane.xlu1 %2101  ;;  %v2348_v48 = vmul.f32 %v4894_v16, %v2311_v7 }
 0x6dd   :  { %v2358_v18 = vadd.f32 %v4971_v27, %v2343_v23  ;;  %v2289_v27 = vpop.xlane.xlu0 %2288  ;;  %v2136_v19 = vsub.f32 0.0, %v2102_v63 }
 0x6de   :  { %2297 = vadd.xlane.f32.xlu1 %v2296_v31  ;;  %v2313_v47 = vsub.f32 0.0, %v2289_v27 }
 0x6df   :  { %v2359_v8 = vadd.f32 %v2358_v18, %v2344_v53 }
 0x6e0   :  { %v2274_v32 = vpop.xlane.xlu1 %2273  ;;  %v2350_v22 = vmul.f32 %v4963_v30, %v2313_v47  ;;  %v2134_v30 = vsub.f32 0.0, %v5011_v11 }
 0x6e1   :  { %v2308_v26 = vsub.f32 0.0, %v2274_v32  ;;  %v2111_v16 = vpop.xlane.xlu0 %2110 }
 0x6e3   :  { %v2345_v20 = vmul.f32 %v4863_v4, %v2308_v26 }
 0x6e4   :  { %v2108_v61 = vpop.xlane.xlu1 %2107 }
 0x6e5   :  { %v2360_v46 = vadd.f32 %v2359_v8, %v2345_v20  ;;  %v2117_v25 = vpop.xlane.xlu0 %2116 }
 0x6e7   :  { %v2361_v6 = vadd.f32 %v2360_v46, %v2346_v14 }
 0x6e8   :  { %v2280_v54 = vpop.xlane.xlu1 %2279 }
 0x6e9   :  { %v2310_v13 = vsub.f32 0.0, %v2280_v54 }
 0x6eb   :  { %v2347_v0 = vmul.f32 %v4897_v36, %v2310_v13  ;;  %v2130_v36 = vsub.f32 0.0, %v4902_v57  ;;  %v2135_v57 = vsub.f32 0.0, %v4986_v15  ;;  %v2139_v15 = vsub.f32 0.0, %v2111_v16 }
 0x6ec   :  { %v2286_v52 = vpop.xlane.xlu1 %2285  ;;  %v2333_v16 = vrot.slane %v5026_v33, 4 }
 0x6ed   :  { %v2362_v35 = vadd.f32 %v2361_v6, %v2347_v0  ;;  %v2312_v39 = vsub.f32 0.0, %v2286_v52  ;;  %v2167_v1 = vadd.f32 %v2131_v12, %v2130_v36  ;;  %v2141_v0 = vsub.f32 0.0, %v2117_v25 }
 0x6ef   :  { %v2363_v9 = vadd.f32 %v2362_v35, %v2348_v48  ;;  %v2349_v4 = vmul.f32 %v4921_v45, %v2312_v39  ;;  %v2133_v45 = vsub.f32 0.0, %v4930_v60  ;;  %v2168_v3 = vadd.f32 %v2167_v1, %v2132_v2 }
 0x6f0   :  { %v2292_v10 = vpop.xlane.xlu1 %2291  ;;  %v2138_v60 = vsub.f32 0.0, %v2108_v61 }
 0x6f1   :  { %v2364_v56 = vadd.f32 %v2363_v9, %v2349_v4  ;;  %v2314_v62 = vsub.f32 0.0, %v2292_v10  ;;  %v2169_v51 = vadd.f32 %v2168_v3, %v2133_v45 }
 0x6f3   :  { %v2365_v43 = vadd.f32 %v2364_v56, %v2350_v22  ;;  %v2351_v21 = vmul.f32 %v4983_v28, %v2314_v62  ;;  %v2170_v28 = vadd.f32 %v2169_v51, %v2134_v30 }
 0x6f4   :  { %v2114_v42 = vpop.xlane.xlu1 %2113 }
 0x6f5   :  { %v2366_v37 = vadd.f32 %v2365_v43, %v2351_v21  ;;  %v2171_v17 = vadd.f32 %v2170_v28, %v2135_v57  ;;  %v2140_v63 = vsub.f32 0.0, %v2114_v42 }
 0x6f7   :  { %v2172_v23 = vadd.f32 %v2171_v17, %v2136_v19 }
 0x6f8   :  { %v2120_v40 = vpop.xlane.xlu1 %2119 }
 0x6f9   :  { %v2173_v31 = vadd.f32 %v2172_v23, %v2137_v34 }
 0x6fb   :  { %v2174_v8 = vadd.f32 %v2173_v31, %v2138_v60 }
 0x6fd   :  { %v2175_v6 = vadd.f32 %v2174_v8, %v2139_v15 }
 0x6ff   :  { %v2176_v61 = vadd.f32 %v2175_v6, %v2140_v63 }
 0x701   :  { %v2177_v35 = vadd.f32 %v2176_v61, %v2141_v0 }
 0x73f   :  { %v2123_v49 = vpop.xlane.xlu0 %2122 }
 0x740   :  { %v2143_v10 = vsub.f32 0.0, %v2123_v49  ;;  %v2334_v49 = vadd.f32 %v2333_v16, %v5026_v33 }
 0x742   :  { %v2335_v23 = vrot.slane %v2334_v49, 2 }
 0x743   :  { %v2126_v59 = vpop.xlane.xlu1 %2125  ;;  %v2016_v24 = vpop.xlane.xlu0 %2015 }
 0x744   :  { %v2054_v52 = vsub.f32 0.0, %v2016_v24  ;;  %v2144_v21 = vsub.f32 0.0, %v2126_v59  ;;  %v2336_v8 = vadd.f32 %v2335_v23, %v2334_v49 }
 0x747   :  { %v2004_v58 = vpop.xlane.xlu1 %2003  ;;  %v2007_v53 = vpop.xlane.xlu0 %2006 }
 0x748   :  { %v2051_v32 = vsub.f32 0.0, %v2007_v53  ;;  %v2050_v55 = vsub.f32 0.0, %v2004_v58 }
 0x74a   :  { %v2146_v54 = vadd.f32 %v2051_v32, %v2050_v55 }
 0x74b   :  { %v2019_v18 = vpop.xlane.xlu1 %2018  ;;  %v2295_v5 = vpop.xlane.xlu0 %2294 }
 0x74c   :  { %v2315_v11 = vsub.f32 0.0, %v2295_v5  ;;  %v2055_v39 = vsub.f32 0.0, %v2019_v18 }
 0x74e   :  { %v2352_v26 = vmul.f32 %v4997_v29, %v2315_v11  ;;  %v2142_v29 = vsub.f32 0.0, %v2120_v40 }
 0x74f   :  { %v2010_v20 = vpop.xlane.xlu1 %2009  ;;  %v2129_v41 = vpop.xlane.xlu0 %2128 }
 0x750   :  { %v2052_v14 = vsub.f32 0.0, %v2010_v20  ;;  %v5050_v46 = vadd.f32 %v2366_v37, %v2352_v26  ;;  %v2178_v43 = vadd.f32 %v2177_v35, %v2142_v29  ;;  %v2145_v42 = vsub.f32 0.0, %v2129_v41 }
 0x752   :  { %v2147_v7 = vadd.f32 %v2146_v54, %v2052_v14  ;;  %v2179_v1 = vadd.f32 %v2178_v43, %v2143_v10  ;;  %v2337_v14 = vrot.slane %v2336_v8, 1 }
 0x753   :  { %v2013_v44 = vpop.xlane.xlu1 %2012  ;;  %v2022_v13 = vpop.xlane.xlu0 %2021 }
 0x754   :  { %v2053_v27 = vsub.f32 0.0, %v2013_v44  ;;  %v2056_v22 = vsub.f32 0.0, %v2022_v13  ;;  %v2180_v25 = vadd.f32 %v2179_v1, %v2144_v21 }
 0x756   :  { %v2148_v48 = vadd.f32 %v2147_v7, %v2053_v27  ;;  %v2181_v28 = vadd.f32 %v2180_v25, %v2145_v42  ;;  %v2338_v27 = vadd.f32 %v2337_v14, %v2336_v8 }
 0x757   :  { %v2025_v47 = vpop.xlane.xlu1 %2024  ;;  %v2028_v4 = vpop.xlane.xlu0 %2027 }
 0x758   :  { %v2149_v9 = vadd.f32 %v2148_v48, %v2054_v52  ;;  %v2057_v36 = vsub.f32 0.0, %v2025_v47  ;;  %v2058_v2 = vsub.f32 0.0, %v2028_v4  ;;  %v2182_v53 = vrot.slane %v2181_v28, 4 }
 0x759   :  { %2681 = vrcp.f32 %v2338_v27 }
 0x75a   :  { %v2150_v56 = vadd.f32 %v2149_v9, %v2055_v39  ;;  %v2183_v32 = vadd.f32 %v2182_v53, %v2181_v28 }
 0x75b   :  { %v2031_v62 = vpop.xlane.xlu1 %2030  ;;  %v2034_v12 = vpop.xlane.xlu0 %2033 }
 0x75c   :  { %v2151_v37 = vadd.f32 %v2150_v56, %v2056_v22  ;;  %v2059_v40 = vsub.f32 0.0, %v2031_v62  ;;  %v2060_v57 = vsub.f32 0.0, %v2034_v12  ;;  %v2184_v6 = vrot.slane %v2183_v32, 2 }
 0x75e   :  { %v2152_v45 = vadd.f32 %v2151_v37, %v2057_v36  ;;  %v2185_v0 = vadd.f32 %v2184_v6, %v2183_v32 }
 0x75f   :  { %v2037_v3 = vpop.xlane.xlu1 %2036  ;;  %v2040_v51 = vpop.xlane.xlu0 %2039 }
 0x760   :  { %v2153_v30 = vadd.f32 %v2152_v45, %v2058_v2  ;;  %v2061_v17 = vsub.f32 0.0, %v2037_v3  ;;  %v2062_v34 = vsub.f32 0.0, %v2040_v51  ;;  %v2186_v9 = vrot.slane %v2185_v0, 1 }
 0x762   :  { %v2154_v19 = vadd.f32 %v2153_v30, %v2059_v40  ;;  %v2187_v56 = vadd.f32 %v2186_v9, %v2185_v0 }
 0x763   :  { %v2043_v59 = vpop.xlane.xlu1 %2042  ;;  %v2046_v58 = vpop.xlane.xlu0 %2045 }
 0x764   :  { %v2155_v24 = vadd.f32 %v2154_v19, %v2060_v57  ;;  %v2063_v5 = vsub.f32 0.0, %v2043_v59  ;;  %v2064_v55 = vsub.f32 0.0, %v2046_v58  ;;  %v2682_v21 = vpop.eup %2681 }
 0x766   :  { %v2156_v60 = vadd.f32 %v2155_v24, %v2061_v17 }
 0x767   :  { %v2049_v18 = vpop.xlane.xlu1 %2048  ;;  %v2301_v11 = vpop.xlane.xlu0 %2300 }
 0x768   :  { %v2157_v31 = vadd.f32 %v2156_v60, %v2062_v34  ;;  %v2317_v20 = vsub.f32 0.0, %v2301_v11  ;;  %v2065_v63 = vsub.f32 0.0, %v2049_v18 }
 0x76a   :  { %v2158_v26 = vadd.f32 %v2157_v31, %v2063_v5  ;;  %v2354_v61 = vmul.f32 %v5021_v50, %v2317_v20 }
 0x76b   :  { %v2298_v33 = vpop.xlane.xlu1 %2297 }
 0x76c   :  { %v2159_v15 = vadd.f32 %v2158_v26, %v2064_v55  ;;  %v2316_v41 = vsub.f32 0.0, %v2298_v33 }
 0x76e   :  { %v2160_v54 = vadd.f32 %v2159_v15, %v2065_v63  ;;  %v2353_v44 = vmul.f32 %v5008_v38, %v2316_v41 }
 0x770   :  { %v2161_v7 = vrot.slane %v2160_v54, 4  ;;  %v2368_v13 = vadd.f32 %v5050_v46, %v2353_v44 }
 0x772   :  { %v2162_v52 = vadd.f32 %v2161_v7, %v2160_v54  ;;  %v2369_v48 = vadd.f32 %v2368_v13, %v2354_v61 }
 0x774   :  { %v2163_v47 = vrot.slane %v2162_v52, 2  ;;  %v2370_v35 = vrot.slane %v2369_v48, 4 }
 0x776   :  { %v2164_v29 = vadd.f32 %v2163_v47, %v2162_v52  ;;  %v2371_v39 = vadd.f32 %v2370_v35, %v2369_v48 }
 0x778   :  { %v2165_v4 = vrot.slane %v2164_v29, 1  ;;  %v2372_v10 = vrot.slane %v2371_v39, 2 }
 0x77a   :  { %v2166_v22 = vadd.f32 %v2165_v4, %v2164_v29  ;;  %v2373_v38 = vadd.f32 %v2372_v10, %v2371_v39 }
 0x77c   :  { %v2188_v62 = vadd.f32 %v2187_v56, %v2166_v22  ;;  %v2374_v50 = vrot.slane %v2373_v38, 1 }
 0x77e   :  { %v2189_v46 = vmul.f32 0.0078125, %v2188_v62  ;;  %v2375_v43 = vadd.f32 %v2374_v50, %v2373_v38 }
 0x780   :  { %v2378_v37 = vmul.f32 0.4, %v2189_v46  ;;  %v2377_v36 = vmul.f32 %v2682_v21, %v2375_v43 }
 0x782   :  { %2380 = vst.msk [vmem:[#allocation2] sm:$0x1] %vm2379_vm0, %v2378_v37  ;;  %2381 = vst.msk [vmem:[#allocation4] sm:$0x1] %vm2379_vm0, %v2377_v36 }
 0x783   :  { %2698 = shalt.err (!%p2695_p4)
}
 0x784   :  { %s2699_s11 = scalar_lea.hbm %s5093_s4, 16 }
 0x785   :  { %p2700_p5 = scmp.ne.s32.totalorder %s5093_s4, %s2699_s11  ;;  %p2703_p6 = scmp.lt.u32.totalorder %s2699_s11, %s5093_s4 }
 0x787   :  { %p2705_p7 = pnand %p2703_p6, %p2700_p5 }
 0x789   :  { %2708 = shalt.err (!%p2705_p7)
}
 0x78a   :  { %2391 = dma.vmem_to_hbm [thread:$0]  %s2389_s6, 16, %s5093_s4, [#allocation3]  }
 0x78b   :  { %s2709_s18 = scalar_lea.vmem %s5057_s8, 16  ;;  %s2713_s19 = scalar_lea.vmem %s5057_s8, 32 }
 0x78c   :  { %p2710_p8 = scmp.ne.s32.totalorder %s5057_s8, %s2709_s18  ;;  %p2714_p9 = scmp.lt.s32.totalorder %s5057_s8, %s5057_s8 }
 0x78d   :  { %p2715_p10 = scmp.lt.s32.totalorder %s2713_s19, %s2709_s18 }
 0x78f   :  { %p2716_p11 = por %p2715_p10, %p2714_p9 }
 0x791   :  { %p2717_p12 = pnand %p2716_p11, %p2710_p8 }
 0x793   :  { %2720 = shalt.err (!%p2717_p12)
}
 0x794   :  { %s2721_s22 = scalar_lea.hbm %s5094_s5, 16 }
 0x795   :  { %p2722_p13 = scmp.ne.s32.totalorder %s5094_s5, %s2721_s22  ;;  %p2725_p0 = scmp.lt.u32.totalorder %s2721_s22, %s5094_s5 }
 0x797   :  { %p2727_p1 = pnand %p2725_p0, %p2722_p13 }
 0x799   :  { %2730 = shalt.err (!%p2727_p1)
}
 0x79a   :  { %2401 = dma.vmem_to_hbm [thread:$0]  %s5057_s8, 16, %s5094_s5, [#allocation5]  }
 0x79b   :  { %2731 = dma.done.wait [#allocation3], 16  }
 0x79c   :  { %2732 = vsyncadd [#allocation3], 4294967280 }
 0x79d   :  { %2733 = dma.done.wait [#allocation5], 16  }
 0x79e   :  { %2734 = vsyncadd [#allocation5], 4294967280 }
 0x79f   :  { %2408 = vsyncpa [#allocation3], 1 }
 0x7a0   :  { %2409 = vsyncpa [#allocation5], 1 }

</bundles_post_ra>
